<compile_context>
chip_gen: v6e
topology: v6e:2x2x1
jax: 0.10.0
libtpu: 0.0.40
codegen_flags: <defaults>
</compile_context>

<pallas_src>
import functools

import jax
import jax.numpy as jnp
from jax import lax
from jax.experimental import pallas as pl
from jax.experimental.pallas import tpu as pltpu


def _bmm(a, b):
    # batched matmul on the MXU with f32 accumulation
    return jnp.einsum('gij,gjk->gik', a, b, preferred_element_type=jnp.float32)


def _gs_block_kernel(slab_ref, params_ref, out_ref, *, n, f, c, e, fw_is_identity):
    g = slab_ref.shape[0]

    slab = slab_ref[...]                                   # (G, N, F+N+C+1)
    x = slab[:, :, 0:f]                                    # (G, N, F)
    adj = slab[:, :, f:f + n]                              # (G, N, N)
    xlab = slab[:, :, f + n:f + n + c]                     # (G, N, C)
    km = slab[:, :, f + n + c:f + n + c + 1]               # (G, N, 1) binary 0/1

    params = params_ref[...]                               # (F+1, Wp)
    w1t = params[0:f, 0:e]                                 # (F, E)  == weight[:, :F].T
    w2t = params[0:f, e:2 * e]                             # (F, E)  == weight[:, F:].T
    attw = params[f:f + 1, 0:f]                            # (1, F)  attention row

    x_flat = x.reshape(g * n, f)                           # flatten batch into M

    # ---- fixed-weight transform: x @ (W1 + W2); identity -> pure-VPU x + x ----
    if fw_is_identity:
        xt = x + x
    else:
        fws = params[0:f, 2 * e:2 * e + f]                 # (F, F) = W1 + W2
        xt = jnp.dot(x_flat, fws,
                     preferred_element_type=jnp.float32).reshape(g, n, f)

    # ---- label propagation (20 iterations) via affine-map doubling ------------
    row_sum = jnp.sum(adj, axis=2, keepdims=True)          # (G, N, 1)
    adj_norm = adj / jnp.maximum(row_sum, 1e-10)           # clamp(min=1e-10)
    keep = km * xlab                                       # known rows keep xlab
    A = (1.0 - km) * adj_norm                              # known rows zeroed
    # lab_m = A^m @ xlab + q_m  with  q_m = (sum_{k<m} A^k) @ keep
    P, q = A, keep                                         # m = 1
    for _ in range(2):                                     # m: 1 -> 2 -> 4
        q = _bmm(P, q) + q
        P = _bmm(P, P)
    lab4 = _bmm(P, xlab) + q                               # lab after 4 steps
    for _ in range(2):                                     # m: 4 -> 8 -> 16
        q = _bmm(P, q) + q
        P = _bmm(P, P)
    lab20 = _bmm(P, lab4) + q                              # lab_20 = A^16 lab_4 + q_16

    # ---- aggregate (mean policy + attention, gcn=False) -----------------------
    att_scores = jnp.sum(xt * attw, axis=2, keepdims=True)            # (G, N, 1)
    att_max = jnp.max(att_scores, axis=1, keepdims=True)              # softmax over nodes
    att_exp = jnp.exp(att_scores - att_max)
    att = att_exp / jnp.sum(att_exp, axis=1, keepdims=True)           # exact divide

    # (adj - I) @ xt == adj @ xt - xt ; row_sum(adj - I) == row_sum - 1
    num_neigh = row_sum - 1.0                              # no clamp, as in torch
    neigh = (att / num_neigh) * (_bmm(adj, xt) - xt)       # (G, N, F)

    # ---- relu(W @ [x ; neigh].T).T == relu(x@W1.T + neigh@W2.T) ---------------
    h = (jnp.dot(x_flat, w1t, preferred_element_type=jnp.float32)
         + jnp.dot(neigh.reshape(g * n, f), w2t, preferred_element_type=jnp.float32))
    h = jnp.maximum(h, 0.0)                                # (G*N, E)

    # ---- F.normalize(h, p=2, dim=1), eps=1e-12: h * rsqrt(max(sumsq, eps^2)) --
    sumsq = jnp.sum(h * h, axis=1, keepdims=True)
    h = h * lax.rsqrt(jnp.maximum(sumsq, 1e-24))

    out_ref[:, :, 0:e] = h.reshape(g, n, e)
    out_ref[:, :, e:e + c] = lab20


def gs_block_forward(x, adj, x_label, known_label_mask,
                     weight, att_weight, fixed_w1=None, fixed_w2=None,
                     *, graphs_per_step=8):
    """Batched forward.

    x: (B, N, F), adj: (B, N, N), x_label: (B, N, C),
    known_label_mask: (B, N) with exactly 0/1 entries (binary mask assumed),
    weight: (E, 2F), att_weight: (F, 1).
    Returns (combined (B, N, E), label_propagation (B, N, C)).
    """
    b, n, f = x.shape
    c = x_label.shape[-1]
    e = weight.shape[0]
    fw_is_identity = (fixed_w1 is None) and (fixed_w2 is None)

    # ---- per-graph inputs packed into one slab (one DMA per grid step) --------
    mask_col = known_label_mask.reshape(b, n, 1).astype(jnp.float32)
    slab = jnp.concatenate(
        [x.astype(jnp.float32), adj.astype(jnp.float32),
         x_label.astype(jnp.float32), mask_col], axis=-1)          # (B, N, F+N+C+1)
    wt = f + n + c + 1

    # ---- static params packed into one slab (constant block index -> 1 fetch) -
    wp = (2 * e) if fw_is_identity else (2 * e + f)
    wp = max(wp, f)                                        # attw row needs F lanes
    params = jnp.zeros((f + 1, wp), jnp.float32)
    params = params.at[:f, :e].set(weight[:, :f].T)        # W1^T
    params = params.at[:f, e:2 * e].set(weight[:, f:].T)   # W2^T
    params = params.at[f, :f].set(att_weight.reshape(-1))  # attention row
    if not fw_is_identity:
        fw1 = jnp.eye(f, dtype=jnp.float32) if fixed_w1 is None else fixed_w1
        fw2 = jnp.eye(f, dtype=jnp.float32) if fixed_w2 is None else fixed_w2
        params = params.at[:f, 2 * e:2 * e + f].set(fw1 + fw2)     # folded matmul

    # ---- pad batch to a multiple of the per-step graph count ------------------
    g = min(graphs_per_step, b)
    steps = pl.cdiv(b, g)
    b_pad = steps * g
    if b_pad != b:
        # zero graphs are NaN-safe (everything stays 0) and are sliced off below
        slab = jnp.concatenate(
            [slab, jnp.zeros((b_pad - b, n, wt), jnp.float32)], axis=0)

    out_w = e + c
    kernel = functools.partial(_gs_block_kernel, n=n, f=f, c=c, e=e,
                               fw_is_identity=fw_is_identity)
    out = pl.pallas_call(
        kernel,
        out_shape=jax.ShapeDtypeStruct((b_pad, n, out_w), jnp.float32),
        grid_spec=pltpu.PrefetchScalarGridSpec(
            num_scalar_prefetch=0,
            grid=(steps,),
            in_specs=[
                pl.BlockSpec((g, n, wt), lambda i: (i, 0, 0)),
                pl.BlockSpec((f + 1, wp), lambda i: (0, 0)),
            ],
            out_specs=pl.BlockSpec((g, n, out_w), lambda i: (i, 0, 0)),
        ),
        compiler_params=pltpu.CompilerParams(
            dimension_semantics=("parallel",)),     # megacore on v7x; no-op v5e/v6e
    )(slab, params)

    combined = out[:b, :, :e]
    label_prop = out[:b, :, e:e + c]
    return combined, label_prop


def _xavier_uniform(key, shape):
    fan_out, fan_in = shape[0], shape[1]
    bound = jnp.sqrt(6.0 / (fan_in + fan_out))
    return jax.random.uniform(key, shape, jnp.float32, -bound, bound)


def _reference_forward(x, adj, x_label, kmask, weight, att_weight, fw1, fw2):
    # pure-JAX single-graph reference mirroring the PyTorch module
    xt = x @ fw1 + x @ fw2
    row_sum = adj.sum(axis=1, keepdims=True)
    adj_norm = adj / jnp.maximum(row_sum, 1e-10)
    lab = x_label
    for _ in range(20):
        prop = adj_norm @ lab
        lab = jnp.where(kmask[:, None] == 1.0, x_label, prop)
    n = adj.shape[0]
    adj2 = adj - jnp.eye(n, dtype=adj.dtype)
    att = jax.nn.softmax((xt @ att_weight)[:, 0], axis=0)
    mask_adj = adj2 / adj2.sum(axis=1, keepdims=True)
    neigh = (mask_adj * att[:, None]) @ xt
    combined = jnp.concatenate([x, neigh], axis=1)
    h = jnp.maximum(weight @ combined.T, 0.0).T
    h = h / jnp.maximum(jnp.sqrt(jnp.sum(h * h, axis=1, keepdims=True)), 1e-12)
    return h, lab


if __name__ == "__main__":
    N, FEAT, EMBED, CLASSES, BATCH = 16, 32, 32, 8, 64

    key = jax.random.PRNGKey(0)
    kx, kw, ka, klab, kmaskk, kedge, kfw1, kfw2 = jax.random.split(key, 8)

    # deterministic batched inputs
    x = jax.random.normal(kx, (BATCH, N, FEAT), jnp.float32)

    # adjacency: ring neighbors + self-loops + random symmetric edges per graph
    idx = jnp.arange(N)
    base = jnp.zeros((N, N), jnp.float32)
    base = base.at[idx, idx].set(1.0)
    base = base.at[idx, (idx + 1) % N].set(1.0)
    base = base.at[idx, (idx - 1) % N].set(1.0)
    rand_edges = (jax.random.uniform(kedge, (BATCH, N, N)) > 0.8).astype(jnp.float32)
    rand_edges = jnp.maximum(rand_edges, jnp.swapaxes(rand_edges, 1, 2))
    adj = jnp.minimum(base[None] + rand_edges, 1.0)

    labels = jax.random.randint(klab, (BATCH, N), 0, CLASSES)
    x_label = jax.nn.one_hot(labels, CLASSES, dtype=jnp.float32)
    known_label_mask = (jax.random.uniform(kmaskk, (BATCH, N)) > 0.5).astype(jnp.float32)

    # deterministic parameters (xavier uniform, as in the module __init__)
    weight = _xavier_uniform(kw, (EMBED, 2 * FEAT))
    att_weight = _xavier_uniform(ka, (FEAT, 1))
    eye_f = jnp.eye(FEAT, dtype=jnp.float32)

    ref_fn = jax.vmap(_reference_forward,
                      in_axes=(0, 0, 0, 0, None, None, None, None))

    # --- path 1: default identity fixed weights (matmul-free xt = 2x path) -----
    combined, label_prop = gs_block_forward(
        x, adj, x_label, known_label_mask, weight, att_weight)
    jax.block_until_ready((combined, label_prop))
    ref_c, ref_l = ref_fn(x, adj, x_label, known_label_mask,
                          weight, att_weight, eye_f, eye_f)
    assert combined.shape == (BATCH, N, EMBED)
    assert label_prop.shape == (BATCH, N, CLASSES)
    assert jnp.allclose(combined, ref_c, atol=1e-5, rtol=1e-5)
    assert jnp.allclose(label_prop, ref_l, atol=1e-5, rtol=1e-5)

    # --- path 2: explicit (non-identity) fixed weights + ragged batch (padding) -
    fw1 = _xavier_uniform(kfw1, (FEAT, FEAT))
    fw2 = _xavier_uniform(kfw2, (FEAT, FEAT))
    B2 = 10   # not a multiple of graphs_per_step -> exercises the zero-pad path
    combined2, label_prop2 = gs_block_forward(
        x[:B2], adj[:B2], x_label[:B2], known_label_mask[:B2],
        weight, att_weight, fw1, fw2)
    jax.block_until_ready((combined2, label_prop2))
    ref_c2, ref_l2 = ref_fn(x[:B2], adj[:B2], x_label[:B2], known_label_mask[:B2],
                            weight, att_weight, fw1, fw2)
    assert jnp.allclose(combined2, ref_c2, atol=1e-5, rtol=1e-5)
    assert jnp.allclose(label_prop2, ref_l2, atol=1e-5, rtol=1e-5)

    print("KERNEL_OK")
</pallas_src>

<mosaic_0001>
module attributes {stable_mosaic.version = 11 : i64} {
  func.func @_gs_block_kernel(%arg0: i32, %arg1: memref<8x16x57xf32, #tpu.memory_space<vmem>>, %arg2: memref<33x64xf32, #tpu.memory_space<vmem>>, %arg3: memref<8x16x40xf32, #tpu.memory_space<vmem>>) attributes {dimension_semantics = [#tpu.dimension_semantics<parallel>], iteration_bounds = array<i64: 8>, scalar_prefetch = 0 : i64, scratch_operands = 0 : i64, tpu.core_type = #tpu.core_type<tc>, window_params = [{transform_indices = @transform_0, window_bounds = array<i64: 8, 16, 57>}, {pipeline_mode = #tpu.pipeline_mode<synchronous>, transform_indices = @transform_1, window_bounds = array<i64: 33, 64>}, {transform_indices = @transform_2, window_bounds = array<i64: 8, 16, 40>}]} {
    %c0 = arith.constant 0 : index
    %c0_0 = arith.constant 0 : index
    %c0_1 = arith.constant 0 : index
    %0 = vector.load %arg1[%c0, %c0_0, %c0_1] : memref<8x16x57xf32, #tpu.memory_space<vmem>>, vector<8x16x57xf32>
    %1 = vector.extract_strided_slice %0 {offsets = [0, 0, 0], sizes = [8, 16, 32], strides = [1, 1, 1]} : vector<8x16x57xf32> to vector<8x16x32xf32>
    %2 = vector.extract_strided_slice %0 {offsets = [0, 0, 32], sizes = [8, 16, 16], strides = [1, 1, 1]} : vector<8x16x57xf32> to vector<8x16x16xf32>
    %3 = vector.extract_strided_slice %0 {offsets = [0, 0, 48], sizes = [8, 16, 8], strides = [1, 1, 1]} : vector<8x16x57xf32> to vector<8x16x8xf32>
    %4 = vector.extract_strided_slice %0 {offsets = [0, 0, 56], sizes = [8, 16, 1], strides = [1, 1, 1]} : vector<8x16x57xf32> to vector<8x16x1xf32>
    %c0_2 = arith.constant 0 : index
    %c0_3 = arith.constant 0 : index
    %5 = vector.load %arg2[%c0_2, %c0_3] : memref<33x64xf32, #tpu.memory_space<vmem>>, vector<33x64xf32>
    %6 = vector.extract_strided_slice %5 {offsets = [0, 0], sizes = [32, 32], strides = [1, 1]} : vector<33x64xf32> to vector<32x32xf32>
    %7 = vector.extract_strided_slice %5 {offsets = [0, 32], sizes = [32, 32], strides = [1, 1]} : vector<33x64xf32> to vector<32x32xf32>
    %8 = vector.extract_strided_slice %5 {offsets = [32, 0], sizes = [1, 32], strides = [1, 1]} : vector<33x64xf32> to vector<1x32xf32>
    %9 = vector.shape_cast %1 : vector<8x16x32xf32> to vector<128x32xf32>
    %10 = arith.addf %1, %1 : vector<8x16x32xf32>
    %cst = arith.constant dense<0.000000e+00> : vector<8x16xf32>
    %11 = vector.multi_reduction <add>, %2, %cst [2] : vector<8x16x16xf32> to vector<8x16xf32>
    %12 = vector.shape_cast %11 : vector<8x16xf32> to vector<8x16x1xf32>
    %cst_4 = arith.constant 1.000000e-10 : f32
    %13 = vector.broadcast %cst_4 : f32 to vector<8x16x1xf32>
    %14 = arith.maximumf %12, %13 : vector<8x16x1xf32>
    %15 = vector.broadcast %14 : vector<8x16x1xf32> to vector<8x16x16xf32>
    %16 = arith.divf %2, %15 : vector<8x16x16xf32>
    %17 = vector.broadcast %4 : vector<8x16x1xf32> to vector<8x16x8xf32>
    %18 = arith.mulf %17, %3 : vector<8x16x8xf32>
    %cst_5 = arith.constant 1.000000e+00 : f32
    %19 = vector.broadcast %cst_5 : f32 to vector<8x16x1xf32>
    %20 = arith.subf %19, %4 : vector<8x16x1xf32>
    %21 = vector.broadcast %20 : vector<8x16x1xf32> to vector<8x16x16xf32>
    %22 = arith.mulf %21, %16 : vector<8x16x16xf32>
    "tpu.trace_start"() <{level = 10 : i32, message = "gij,gjk->gik"}> : () -> ()
    %cst_6 = arith.constant dense<0.000000e+00> : vector<8x16x8xf32>
    %23 = tpu.matmul %22, %18, %cst_6 {dimension_numbers = #tpu.dot_dimension_numbers<[2], [1], [1], [2], [0, 0, 0, 1, 1, 2], [0], [0]>} : vector<8x16x16xf32>, vector<8x16x8xf32>, vector<8x16x8xf32> -> vector<8x16x8xf32>
    "tpu.trace_stop"() : () -> ()
    %24 = arith.addf %23, %18 : vector<8x16x8xf32>
    "tpu.trace_start"() <{level = 10 : i32, message = "gij,gjk->gik"}> : () -> ()
    %cst_7 = arith.constant dense<0.000000e+00> : vector<8x16x16xf32>
    %25 = tpu.matmul %22, %22, %cst_7 {dimension_numbers = #tpu.dot_dimension_numbers<[2], [1], [1], [2], [0, 0, 0, 1, 1, 2], [0], [0]>} : vector<8x16x16xf32>, vector<8x16x16xf32>, vector<8x16x16xf32> -> vector<8x16x16xf32>
    %cst_8 = arith.constant dense<0.000000e+00> : vector<8x16x8xf32>
    %26 = tpu.matmul %25, %24, %cst_8 {dimension_numbers = #tpu.dot_dimension_numbers<[2], [1], [1], [2], [0, 0, 0, 1, 1, 2], [0], [0]>} : vector<8x16x16xf32>, vector<8x16x8xf32>, vector<8x16x8xf32> -> vector<8x16x8xf32>
    "tpu.trace_stop"() : () -> ()
    %27 = arith.addf %26, %24 : vector<8x16x8xf32>
    "tpu.trace_start"() <{level = 10 : i32, message = "gij,gjk->gik"}> : () -> ()
    %cst_9 = arith.constant dense<0.000000e+00> : vector<8x16x16xf32>
    %28 = tpu.matmul %25, %25, %cst_9 {dimension_numbers = #tpu.dot_dimension_numbers<[2], [1], [1], [2], [0, 0, 0, 1, 1, 2], [0], [0]>} : vector<8x16x16xf32>, vector<8x16x16xf32>, vector<8x16x16xf32> -> vector<8x16x16xf32>
    %cst_10 = arith.constant dense<0.000000e+00> : vector<8x16x8xf32>
    %29 = tpu.matmul %28, %3, %cst_10 {dimension_numbers = #tpu.dot_dimension_numbers<[2], [1], [1], [2], [0, 0, 0, 1, 1, 2], [0], [0]>} : vector<8x16x16xf32>, vector<8x16x8xf32>, vector<8x16x8xf32> -> vector<8x16x8xf32>
    "tpu.trace_stop"() : () -> ()
    %30 = arith.addf %29, %27 : vector<8x16x8xf32>
    "tpu.trace_start"() <{level = 10 : i32, message = "gij,gjk->gik"}> : () -> ()
    %cst_11 = arith.constant dense<0.000000e+00> : vector<8x16x8xf32>
    %31 = tpu.matmul %28, %27, %cst_11 {dimension_numbers = #tpu.dot_dimension_numbers<[2], [1], [1], [2], [0, 0, 0, 1, 1, 2], [0], [0]>} : vector<8x16x16xf32>, vector<8x16x8xf32>, vector<8x16x8xf32> -> vector<8x16x8xf32>
    "tpu.trace_stop"() : () -> ()
    %32 = arith.addf %31, %27 : vector<8x16x8xf32>
    "tpu.trace_start"() <{level = 10 : i32, message = "gij,gjk->gik"}> : () -> ()
    %cst_12 = arith.constant dense<0.000000e+00> : vector<8x16x16xf32>
    %33 = tpu.matmul %28, %28, %cst_12 {dimension_numbers = #tpu.dot_dimension_numbers<[2], [1], [1], [2], [0, 0, 0, 1, 1, 2], [0], [0]>} : vector<8x16x16xf32>, vector<8x16x16xf32>, vector<8x16x16xf32> -> vector<8x16x16xf32>
    %cst_13 = arith.constant dense<0.000000e+00> : vector<8x16x8xf32>
    %34 = tpu.matmul %33, %32, %cst_13 {dimension_numbers = #tpu.dot_dimension_numbers<[2], [1], [1], [2], [0, 0, 0, 1, 1, 2], [0], [0]>} : vector<8x16x16xf32>, vector<8x16x8xf32>, vector<8x16x8xf32> -> vector<8x16x8xf32>
    "tpu.trace_stop"() : () -> ()
    %35 = arith.addf %34, %32 : vector<8x16x8xf32>
    "tpu.trace_start"() <{level = 10 : i32, message = "gij,gjk->gik"}> : () -> ()
    %cst_14 = arith.constant dense<0.000000e+00> : vector<8x16x16xf32>
    %36 = tpu.matmul %33, %33, %cst_14 {dimension_numbers = #tpu.dot_dimension_numbers<[2], [1], [1], [2], [0, 0, 0, 1, 1, 2], [0], [0]>} : vector<8x16x16xf32>, vector<8x16x16xf32>, vector<8x16x16xf32> -> vector<8x16x16xf32>
    %cst_15 = arith.constant dense<0.000000e+00> : vector<8x16x8xf32>
    %37 = tpu.matmul %36, %30, %cst_15 {dimension_numbers = #tpu.dot_dimension_numbers<[2], [1], [1], [2], [0, 0, 0, 1, 1, 2], [0], [0]>} : vector<8x16x16xf32>, vector<8x16x8xf32>, vector<8x16x8xf32> -> vector<8x16x8xf32>
    "tpu.trace_stop"() : () -> ()
    %38 = arith.addf %37, %35 : vector<8x16x8xf32>
    %39 = vector.shape_cast %8 : vector<1x32xf32> to vector<1x1x32xf32>
    %40 = vector.broadcast %39 : vector<1x1x32xf32> to vector<8x16x32xf32>
    %41 = arith.mulf %10, %40 : vector<8x16x32xf32>
    %cst_16 = arith.constant dense<0.000000e+00> : vector<8x16xf32>
    %42 = vector.multi_reduction <add>, %41, %cst_16 [2] : vector<8x16x32xf32> to vector<8x16xf32>
    %43 = vector.shape_cast %42 : vector<8x16xf32> to vector<8x16x1xf32>
    %cst_17 = arith.constant dense<0xFF800000> : vector<8x1xf32>
    %44 = vector.multi_reduction <maximumf>, %43, %cst_17 [1] : vector<8x16x1xf32> to vector<8x1xf32>
    %45 = vector.shape_cast %44 : vector<8x1xf32> to vector<8x1x1xf32>
    %46 = vector.broadcast %45 : vector<8x1x1xf32> to vector<8x16x1xf32>
    %47 = arith.subf %43, %46 : vector<8x16x1xf32>
    %48 = math.exp %47 : vector<8x16x1xf32>
    %cst_18 = arith.constant dense<0.000000e+00> : vector<8x1xf32>
    %49 = vector.multi_reduction <add>, %48, %cst_18 [1] : vector<8x16x1xf32> to vector<8x1xf32>
    %50 = vector.shape_cast %49 : vector<8x1xf32> to vector<8x1x1xf32>
    %51 = vector.broadcast %50 : vector<8x1x1xf32> to vector<8x16x1xf32>
    %52 = arith.divf %48, %51 : vector<8x16x1xf32>
    %cst_19 = arith.constant 1.000000e+00 : f32
    %53 = vector.broadcast %cst_19 : f32 to vector<8x16x1xf32>
    %54 = arith.subf %12, %53 : vector<8x16x1xf32>
    %55 = arith.divf %52, %54 : vector<8x16x1xf32>
    "tpu.trace_start"() <{level = 10 : i32, message = "gij,gjk->gik"}> : () -> ()
    %cst_20 = arith.constant dense<0.000000e+00> : vector<8x16x32xf32>
    %56 = tpu.matmul %2, %10, %cst_20 {dimension_numbers = #tpu.dot_dimension_numbers<[2], [1], [1], [2], [0, 0, 0, 1, 1, 2], [0], [0]>} : vector<8x16x16xf32>, vector<8x16x32xf32>, vector<8x16x32xf32> -> vector<8x16x32xf32>
    "tpu.trace_stop"() : () -> ()
    %57 = arith.subf %56, %10 : vector<8x16x32xf32>
    %58 = vector.broadcast %55 : vector<8x16x1xf32> to vector<8x16x32xf32>
    %59 = arith.mulf %58, %57 : vector<8x16x32xf32>
    %cst_21 = arith.constant dense<0.000000e+00> : vector<128x32xf32>
    %60 = tpu.matmul %9, %6, %cst_21 {dimension_numbers = #tpu.dot_dimension_numbers<[1], [0], [0], [1], [0, 0, 1, 1], [], []>} : vector<128x32xf32>, vector<32x32xf32>, vector<128x32xf32> -> vector<128x32xf32>
    %61 = vector.shape_cast %59 : vector<8x16x32xf32> to vector<128x32xf32>
    %cst_22 = arith.constant dense<0.000000e+00> : vector<128x32xf32>
    %62 = tpu.matmul %61, %7, %cst_22 {dimension_numbers = #tpu.dot_dimension_numbers<[1], [0], [0], [1], [0, 0, 1, 1], [], []>} : vector<128x32xf32>, vector<32x32xf32>, vector<128x32xf32> -> vector<128x32xf32>
    %63 = arith.addf %60, %62 : vector<128x32xf32>
    %cst_23 = arith.constant 0.000000e+00 : f32
    %64 = vector.broadcast %cst_23 : f32 to vector<128x32xf32>
    %65 = arith.maximumf %63, %64 : vector<128x32xf32>
    %66 = arith.mulf %65, %65 : vector<128x32xf32>
    %cst_24 = arith.constant dense<0.000000e+00> : vector<128xf32>
    %67 = vector.multi_reduction <add>, %66, %cst_24 [1] : vector<128x32xf32> to vector<128xf32>
    %68 = vector.shape_cast %67 : vector<128xf32> to vector<128x1xf32>
    %cst_25 = arith.constant 1.000000e-24 : f32
    %69 = vector.broadcast %cst_25 : f32 to vector<128x1xf32>
    %70 = arith.maximumf %68, %69 : vector<128x1xf32>
    %71 = math.rsqrt %70 : vector<128x1xf32>
    %72 = vector.broadcast %71 : vector<128x1xf32> to vector<128x32xf32>
    %73 = arith.mulf %65, %72 : vector<128x32xf32>
    %74 = vector.shape_cast %73 : vector<128x32xf32> to vector<8x16x32xf32>
    %c0_26 = arith.constant 0 : index
    %c0_27 = arith.constant 0 : index
    %c0_28 = arith.constant 0 : index
    %75 = vector.load %arg3[%c0_26, %c0_27, %c0_28] : memref<8x16x40xf32, #tpu.memory_space<vmem>>, vector<8x16x32xf32>
    tpu.vector_store %arg3[%c0_26, %c0_27, %c0_28], %74 {strides = array<i32>} : memref<8x16x40xf32, #tpu.memory_space<vmem>>, vector<8x16x32xf32>,
    %c0_29 = arith.constant 0 : index
    %c0_30 = arith.constant 0 : index
    %c32 = arith.constant 32 : index
    %76 = vector.load %arg3[%c0_29, %c0_30, %c32] : memref<8x16x40xf32, #tpu.memory_space<vmem>>, vector<8x16x8xf32>
    tpu.vector_store %arg3[%c0_29, %c0_30, %c32], %38 {strides = array<i32>} : memref<8x16x40xf32, #tpu.memory_space<vmem>>, vector<8x16x8xf32>,
    return
  }
  func.func @transform_0(%arg0: i32) -> (i32, i32, i32) {
    %c0_i32 = arith.constant 0 : i32
    %c0_i32_0 = arith.constant 0 : i32
    %c0_i32_1 = arith.constant 0 : i32
    return %arg0, %c0_i32, %c0_i32_0 : i32, i32, i32
  }
  func.func @transform_1(%arg0: i32) -> (i32, i32) {
    %c0_i32 = arith.constant 0 : i32
    %c0_i32_0 = arith.constant 0 : i32
    %c0_i32_1 = arith.constant 0 : i32
    return %c0_i32, %c0_i32_0 : i32, i32
  }
  func.func @transform_2(%arg0: i32) -> (i32, i32, i32) {
    %c0_i32 = arith.constant 0 : i32
    %c0_i32_0 = arith.constant 0 : i32
    %c0_i32_1 = arith.constant 0 : i32
    return %arg0, %c0_i32, %c0_i32_0 : i32, i32, i32
  }
}

</mosaic_0001>

<bundles_post_ra>
// kernel: tpu_custom_call.1
= control target key start
LH: loop header
LB: loop body
LE: loop exit
PB: predicated region body
PF: predicated region fallthrough
CT: control target
= control target key end

     0   :  { %s10089_s9 = smov 0   ;;  %s12078_s0 = inlined_call_operand.vmem [shape: f32[64,16,57], index: 0, kind: input, shape index: {}]   ;;  %s12079_s1 = inlined_call_operand.vmem [shape: f32[33,64], index: 1, kind: input, shape index: {}]   ;;  %s12080_s2 = inlined_call_operand.vmem [shape: f32[64,16,40], index: 2, kind: output, shape index: {}]  }
   0x1 LB: > { %s8576_s10 = sadd.s32 4294967295, %s10068_s9   ;;  %p8580_p0 = scmp.ge.s32.totalorder %s10068_s9, 1  ;;  %s10068_s9 = sphi %s10089_s9, %s12_s9  }
   0x2   : > { %p114_p1 = scmp.lt.s32.totalorder %s10068_s9, 9 }
   0x4   : > { %p115_p2 = pnand %p8580_p0, %p114_p1 }
   0x6   : > { %118 = sbr.rel (%p115_p2) target bundleno = 2016 (0x7e0), region = 28 }
   0xb   : > { %s8581_s11 = sshll.u32 %s8576_s10, 3  ;;  %v10070_v0 = vmov 56   ;;  %s10071_s16 = smov 96   ;;  %vm253_vm0 = vcmask 130048   ;;  %vm6962_vm1 = vcmask 261120   ;;  %vm8501_vm2 = vcmask 326912  }
   0xc   : > { %p139_p3 = scmp.lt.s32.totalorder %s8581_s11, 63  ;;  %9900 = vset.pattern.permute.xlu1 %v10070_v0  ;;  %9901 = vset.pattern.permute.xlu0 %v10070_v0  ;;  %s10072_s17 = smov 80  }
   0xd   : > { %s10073_s28 = smov 32  }
   0xe   : > { %s12291_s11 = smov (!%p139_p3, %s8581_s11), 63 }
   0xf   : > { %s8814_s12 = sshll.u32 %s12291_s11, 4 }
  0x10   : > { %s10105_s15 = scalar_lea.vmem %s12078_s0, %s8814_s12  ;;  %s11982_s3 = scalar_lea.vmem %s12080_s2, %s8814_s12 }
  0x11   : > { %v10108_v1 = vld [vmem:[%s10105_s15] sm:$0xff]  ;;  %v10111_v2 = vld [vmem:[%s10105_s15 + $0x10] sm:$0xff]  ;;  %v10118_v3 = vld [vmem:[%s10105_s15 + $0x8] sm:$0xff] }
  0x12   : > { %205 = vrot.lane.b32.xlu0 %v10108_v1, %s10071_s16  ;;  %209 = vrot.lane.b32.xlu1 %v10111_v2, %s10071_s16  ;;  %v10121_v4 = vld [vmem:[%s10105_s15 + $0x20] sm:$0xff]  ;;  %v10128_v5 = vld [vmem:[%s10105_s15 + $0x18] sm:$0xff]  ;;  %v430_v49 = vsub.f32 1.0, %v10108_v1  ;;  %v431_v50 = vsub.f32 1.0, %v10118_v3  ;;  %v432_v52 = vsub.f32 1.0, %v10111_v2 }
  0x13   : > { %v10131_v6 = vld [vmem:[%s10105_s15 + $0x28] sm:$0xff]  ;;  %v10138_v7 = vld [vmem:[%s10105_s15 + $0x30] sm:$0xff]  ;;  %v10141_v8 = vld [vmem:[%s10105_s15 + $0x40] sm:$0xff]  ;;  %v433_v51 = vsub.f32 1.0, %v10128_v5  ;;  %v434_v54 = vsub.f32 1.0, %v10121_v4 }
  0x14   : > { %v10148_v9 = vld [vmem:[%s10105_s15 + $0x38] sm:$0xff]  ;;  %v10151_v10 = vld [vmem:[%s10105_s15 + $0x48] sm:$0xff]  ;;  %v10158_v11 = vld [vmem:[%s10105_s15 + $0x50] sm:$0xff]  ;;  %v436_v53 = vsub.f32 1.0, %v10138_v7  ;;  %v435_v56 = vsub.f32 1.0, %v10131_v6  ;;  %v438_v58 = vsub.f32 1.0, %v10141_v8 }
  0x15   : > { %v10161_v12 = vld [vmem:[%s10105_s15 + $0x60] sm:$0xff]  ;;  %v10168_v13 = vld [vmem:[%s10105_s15 + $0x58] sm:$0xff]  ;;  %v10171_v14 = vld [vmem:[%s10105_s15 + $0x68] sm:$0xff]  ;;  %v437_v55 = vsub.f32 1.0, %v10148_v9  ;;  %v440_v57 = vsub.f32 1.0, %v10158_v11  ;;  %v439_v60 = vsub.f32 1.0, %v10151_v10 }
  0x16   : > { %207 = vrot.lane.b32.xlu0 %v10118_v3, %s10071_s16  ;;  %213 = vrot.lane.b32.xlu1 %v10121_v4, %s10071_s16  ;;  %v10178_v15 = vld [vmem:[%s10105_s15 + $0x70] sm:$0xff]  ;;  %v10181_v16 = vld [vmem:[%s10105_s15 + $0x78] sm:$0xff]  ;;  %v443_v59 = vsub.f32 1.0, %v10171_v14  ;;  %v442_v0 = vsub.f32 1.0, %v10161_v12 }
  0x17   : > { %v444_v61 = vsub.f32 1.0, %v10178_v15 }
  0x1a   : > { %211 = vrot.lane.b32.xlu0 %v10128_v5, %s10071_s16  ;;  %215 = vrot.lane.b32.xlu1 %v10131_v6, %s10071_s16 }
  0x1e   : > { %217 = vrot.lane.b32.xlu0 %v10138_v7, %s10071_s16  ;;  %221 = vrot.lane.b32.xlu1 %v10141_v8, %s10071_s16 }
  0x22   : > { %219 = vrot.lane.b32.xlu0 %v10148_v9, %s10071_s16  ;;  %223 = vrot.lane.b32.xlu1 %v10151_v10, %s10071_s16 }
  0x26   : > { %225 = vrot.lane.b32.xlu0 %v10158_v11, %s10071_s16  ;;  %229 = vrot.lane.b32.xlu1 %v10161_v12, %s10071_s16 }
  0x2a   : > { %227 = vrot.lane.b32.xlu0 %v10168_v13, %s10071_s16  ;;  %231 = vrot.lane.b32.xlu1 %v10171_v14, %s10071_s16 }
  0x2e   : > { %233 = vrot.lane.b32.xlu0 %v10178_v15, %s10071_s16  ;;  %235 = vrot.lane.b32.xlu1 %v10181_v16, %s10071_s16 }
  0x32   : > { %355 = vperm.xlu1 %9900, %v10118_v3  }
  0x84   : > { %v10188_v17 = vpop.permute.xlu0 %205  ;;  %v10190_v18 = vpop.permute.xlu1 %209 }
  0x85   : > { %12152 = vst [vmem:[#allocation2_spill] sm:$0xff] %v10188_v17  ;;  %12153 = vst [vmem:[#allocation3_spill] sm:$0xff] %v10190_v18  ;;  %v254_v19 = vsel %vm253_vm0, %v10188_v17, 0.0  ;;  %v260_v20 = vsel %vm253_vm0, %v10190_v18, 0.0 }
  0x86   : > { %255 = vadd.xlane.f32.xlu0 %v254_v19  ;;  %v441_v19 = vsub.f32 1.0, %v10168_v13 }
  0x88   : > { %v10196_v21 = vpop.permute.xlu0 %207  ;;  %v10198_v22 = vpop.permute.xlu1 %213 }
  0x89   : > { %12154 = vst [vmem:[#allocation4_spill] sm:$0xff] %v10196_v21  ;;  %12155 = vst [vmem:[#allocation5_spill] sm:$0xff] %v10198_v22  ;;  %v257_v23 = vsel %vm253_vm0, %v10196_v21, 0.0  ;;  %v266_v24 = vsel %vm253_vm0, %v10198_v22, 0.0 }
  0x8a   : > { %261 = vadd.xlane.f32.xlu0 %v260_v20  ;;  %258 = vadd.xlane.f32.xlu1 %v257_v23  ;;  %v445_v20 = vsub.f32 1.0, %v10181_v16 }
  0x8c   : > { %v10204_v25 = vpop.permute.xlu0 %211  ;;  %v10206_v26 = vpop.permute.xlu1 %215 }
  0x8d   : > { %12156 = vst [vmem:[#allocation6_spill] sm:$0xff] %v10204_v25  ;;  %12157 = vst [vmem:[#allocation7_spill] sm:$0xff] %v10206_v26  ;;  %v263_v27 = vsel %vm253_vm0, %v10204_v25, 0.0  ;;  %v269_v28 = vsel %vm253_vm0, %v10206_v26, 0.0 }
  0x8e   : > { %267 = vadd.xlane.f32.xlu0 %v266_v24  ;;  %264 = vadd.xlane.f32.xlu1 %v263_v27 }
  0x90   : > { %v10212_v29 = vpop.permute.xlu0 %217  ;;  %v10214_v30 = vpop.permute.xlu1 %221 }
  0x91   : > { %12158 = vst [vmem:[#allocation8_spill] sm:$0xff] %v10212_v29  ;;  %12159 = vst [vmem:[#allocation9_spill] sm:$0xff] %v10214_v30  ;;  %v272_v31 = vsel %vm253_vm0, %v10212_v29, 0.0  ;;  %v278_v32 = vsel %vm253_vm0, %v10214_v30, 0.0 }
  0x92   : > { %270 = vadd.xlane.f32.xlu0 %v269_v28  ;;  %273 = vadd.xlane.f32.xlu1 %v272_v31 }
  0x94   : > { %v10220_v33 = vpop.permute.xlu0 %219  ;;  %v10222_v34 = vpop.permute.xlu1 %223 }
  0x95   : > { %12160 = vst [vmem:[#allocation10_spill] sm:$0xff] %v10220_v33  ;;  %12161 = vst [vmem:[#allocation11_spill] sm:$0xff] %v10222_v34  ;;  %v275_v35 = vsel %vm253_vm0, %v10220_v33, 0.0  ;;  %v281_v36 = vsel %vm253_vm0, %v10222_v34, 0.0 }
  0x96   : > { %279 = vadd.xlane.f32.xlu0 %v278_v32  ;;  %276 = vadd.xlane.f32.xlu1 %v275_v35 }
  0x98   : > { %v10228_v37 = vpop.permute.xlu0 %225  ;;  %v10230_v38 = vpop.permute.xlu1 %229 }
  0x99   : > { %12162 = vst [vmem:[#allocation12_spill] sm:$0xff] %v10228_v37  ;;  %12163 = vst [vmem:[#allocation13_spill] sm:$0xff] %v10230_v38  ;;  %v284_v39 = vsel %vm253_vm0, %v10228_v37, 0.0  ;;  %v290_v40 = vsel %vm253_vm0, %v10230_v38, 0.0 }
  0x9a   : > { %282 = vadd.xlane.f32.xlu0 %v281_v36  ;;  %285 = vadd.xlane.f32.xlu1 %v284_v39 }
  0x9c   : > { %v10236_v41 = vpop.permute.xlu0 %227  ;;  %v10238_v42 = vpop.permute.xlu1 %231 }
  0x9d   : > { %12164 = vst [vmem:[#allocation14_spill] sm:$0xff] %v10236_v41  ;;  %12165 = vst [vmem:[#allocation15_spill] sm:$0xff] %v10238_v42  ;;  %v287_v43 = vsel %vm253_vm0, %v10236_v41, 0.0  ;;  %v293_v44 = vsel %vm253_vm0, %v10238_v42, 0.0 }
  0x9e   : > { %291 = vadd.xlane.f32.xlu0 %v290_v40  ;;  %288 = vadd.xlane.f32.xlu1 %v287_v43 }
  0xa0   : > { %v10244_v45 = vpop.permute.xlu0 %233  ;;  %v10246_v46 = vpop.permute.xlu1 %235 }
  0xa1   : > { %12166 = vst [vmem:[#allocation16_spill] sm:$0xff] %v10244_v45  ;;  %12167 = vst [vmem:[#allocation17_spill] sm:$0xff] %v10246_v46  ;;  %v296_v47 = vsel %vm253_vm0, %v10244_v45, 0.0  ;;  %v299_v48 = vsel %vm253_vm0, %v10246_v46, 0.0 }
  0xa2   : > { %294 = vadd.xlane.f32.xlu0 %v293_v44  ;;  %297 = vadd.xlane.f32.xlu1 %v296_v47 }
  0xa6   : > { %300 = vadd.xlane.f32.xlu0 %v299_v48 }
  0xad   : > { %v356_v62 = vpop.permute.xlu1 %355 }
  0xae   : > { %v415_v63 = vmul.f32 %v356_v62, %v10118_v3 }
  0xb3   : > { %448 = vperm.xlu1 %9900, %v430_v49  }
  0xb7   : > { %363 = vperm.xlu1 %9900, %v10128_v5  }
  0xbb   : > { %371 = vperm.xlu1 %9900, %v10131_v6  }
  0xbc   : > { %351 = vperm.xlu0 %9901, %v10108_v1  }
  0xbf   : > { %453 = vperm.xlu1 %9900, %v431_v50  }
  0xc0   : > { %379 = vperm.xlu0 %9901, %v10148_v9  }
  0xc3   : > { %359 = vperm.xlu1 %9900, %v10111_v2  }
  0xc4   : > { %463 = vperm.xlu0 %9901, %v433_v51  }
  0xc7   : > { %367 = vperm.xlu1 %9900, %v10121_v4  }
  0xc8   : > { %375 = vperm.xlu0 %9901, %v10138_v7  }
  0xcb   : > { %458 = vperm.xlu1 %9900, %v432_v52  }
  0xcc   : > { %478 = vperm.xlu0 %9901, %v436_v53  }
  0xcf   : > { %468 = vperm.xlu1 %9900, %v434_v54  }
  0xd0   : > { %395 = vperm.xlu0 %9901, %v10168_v13  }
  0xd3   : > { %387 = vperm.xlu1 %9900, %v10151_v10  }
  0xd4   : > { %483 = vperm.xlu0 %9901, %v437_v55  }
  0xd7   : > { %473 = vperm.xlu1 %9900, %v435_v56  }
  0xd8   : > { %391 = vperm.xlu0 %9901, %v10158_v11  }
  0xdb   : > { %383 = vperm.xlu1 %9900, %v10141_v8  }
  0xdc   : > { %498 = vperm.xlu0 %9901, %v440_v57  }
  0xdf   : > { %488 = vperm.xlu1 %9900, %v438_v58  }
  0xe0   : > { %411 = vperm.xlu0 %9901, %v10181_v16  }
  0xe3   : > { %403 = vperm.xlu1 %9900, %v10171_v14  }
  0xe4   : > { %513 = vperm.xlu0 %9901, %v443_v59  }
  0xe7   : > { %493 = vperm.xlu1 %9900, %v439_v60  }
  0xe8   : > { %518 = vperm.xlu0 %9901, %v444_v61  }
  0xeb   : > { %399 = vperm.xlu1 %9900, %v10161_v12  }
  0xec   : > { %552 = vrot.lane.b32.xlu0 %v415_v63, %s10072_s17 }
  0xef   : > { %508 = vperm.xlu1 %9900, %v442_v0  }
  0xf3   : > { %503 = vperm.xlu1 %9900, %v441_v19  }
  0xf7   : > { %407 = vperm.xlu1 %9900, %v10178_v15  }
  0xfb   : > { %523 = vperm.xlu1 %9900, %v445_v20  }
 0x10f   : > { %v10285_v23 = vpop.xlane.xlu0 %255 }
 0x110   : > { %12168 = vst [vmem:[#allocation18_spill] sm:$0xff] %v10285_v23 }
 0x113   : > { %v10287_v24 = vpop.xlane.xlu1 %258  ;;  %v10289_v27 = vpop.xlane.xlu0 %261 }
 0x114   : > { %12169 = vst [vmem:[#allocation19_spill] sm:$0xff] %v10287_v24  ;;  %12170 = vst [vmem:[#allocation20_spill] sm:$0xff] %v10289_v27  ;;  %v303_v46 = vmax.f32 %v10287_v24, 1e-10 }
 0x117   : > { %v10291_v28 = vpop.xlane.xlu1 %264  ;;  %v10293_v31 = vpop.xlane.xlu0 %267 }
 0x118   : > { %12171 = vst [vmem:[#allocation21_spill] sm:$0xff] %v10291_v28  ;;  %12172 = vst [vmem:[#allocation22_spill] sm:$0xff] %v10293_v31 }
 0x11b   : > { %v10295_v32 = vpop.xlane.xlu1 %273  ;;  %v10297_v35 = vpop.xlane.xlu0 %270 }
 0x11c   : > { %12173 = vst [vmem:[#allocation23_spill] sm:$0xff] %v10295_v32  ;;  %12174 = vst [vmem:[#allocation24_spill] sm:$0xff] %v10297_v35 }
 0x11f   : > { %v10299_v36 = vpop.xlane.xlu1 %276  ;;  %v10301_v39 = vpop.xlane.xlu0 %279 }
 0x120   : > { %12175 = vst [vmem:[#allocation25_spill] sm:$0xff] %v10299_v36  ;;  %12176 = vst [vmem:[#allocation26_spill] sm:$0xff] %v10301_v39 }
 0x123   : > { %v10303_v40 = vpop.xlane.xlu1 %285  ;;  %v10305_v43 = vpop.xlane.xlu0 %282 }
 0x124   : > { %12177 = vst [vmem:[#allocation27_spill] sm:$0xff] %v10303_v40  ;;  %12178 = vst [vmem:[#allocation28_spill] sm:$0xff] %v10305_v43 }
 0x127   : > { %v10307_v44 = vpop.xlane.xlu1 %288  ;;  %v10309_v47 = vpop.xlane.xlu0 %291 }
 0x128   : > { %12179 = vst [vmem:[#allocation29_spill] sm:$0xff] %v10307_v44  ;;  %12180 = vst [vmem:[#allocation30_spill] sm:$0xff] %v10309_v47 }
 0x12b   : > { %v10311_v48 = vpop.xlane.xlu1 %297  ;;  %v10313_v49 = vpop.xlane.xlu0 %294 }
 0x12c   : > { %12181 = vst [vmem:[#allocation31_spill] sm:$0xff] %v10311_v48  ;;  %12182 = vst [vmem:[#allocation32_spill] sm:$0xff] %v10313_v49 }
 0x12f   : > { %v10315_v50 = vpop.permute.xlu1 %448  ;;  %v10317_v51 = vpop.xlane.xlu0 %300 }
 0x130   : > { %12183 = vst [vmem:[#allocation33_spill] sm:$0xff] %v10317_v51 }
 0x133   : > { %v364_v52 = vpop.permute.xlu1 %363 }
 0x134   : > { %v417_v53 = vmul.f32 %v364_v52, %v10128_v5 }
 0x136   : > { %645 = vrot.lane.b32.xlu0 %v417_v53, %s10072_s17 }
 0x137   : > { %v352_v54 = vpop.permute.xlu0 %351  ;;  %v372_v55 = vpop.permute.xlu1 %371 }
 0x138   : > { %v414_v56 = vmul.f32 %v352_v54, %v10108_v1  ;;  %v419_v59 = vmul.f32 %v372_v55, %v10131_v6  ;;  %v302_v55 = vmax.f32 %v10285_v23, 1e-10 }
 0x13a   : > { %550 = vrot.lane.b32.xlu1 %v414_v56, %s10072_s17  ;;  %9902 = vrcp.f32 %v302_v55  ;;  %v308_v55 = vmax.f32 %v10295_v32, 1e-10 }
 0x13b   : > { %v380_v57 = vpop.permute.xlu0 %379  ;;  %v10323_v58 = vpop.permute.xlu1 %453 }
 0x13c   : > { %v421_v63 = vmul.f32 %v380_v57, %v10148_v9 }
 0x13e   : > { %738 = vrot.lane.b32.xlu1 %v419_v59, %s10072_s17 }
 0x13f   : > { %v10327_v60 = vpop.permute.xlu0 %463  ;;  %v360_v61 = vpop.permute.xlu1 %359 }
 0x140   : > { %v416_v62 = vmul.f32 %v360_v61, %v10111_v2  ;;  %v304_v61 = vmax.f32 %v10289_v27, 1e-10 }
 0x142   : > { %643 = vrot.lane.b32.xlu0 %v416_v62, %s10072_s17  ;;  %9904 = vrcp.f32 %v304_v61  ;;  %v309_v61 = vmax.f32 %v10299_v36, 1e-10 }
 0x143   : > { %v376_v0 = vpop.permute.xlu0 %375  ;;  %v368_v19 = vpop.permute.xlu1 %367 }
 0x144   : > { %v418_v20 = vmul.f32 %v368_v19, %v10121_v4  ;;  %v420_v52 = vmul.f32 %v376_v0, %v10138_v7  ;;  %v305_v19 = vmax.f32 %v10291_v28, 1e-10 }
 0x146   : > { %736 = vrot.lane.b32.xlu1 %v418_v20, %s10072_s17  ;;  %831 = vrot.lane.b32.xlu0 %v421_v63, %s10072_s17  ;;  %9906 = vrcp.f32 %v305_v19 }
 0x147   : > { %v10336_v53 = vpop.permute.xlu0 %478  ;;  %v459_v54 = vpop.permute.xlu1 %458  ;;  %9908 = vrcp.f32 %v308_v55 }
 0x148   : > { %9910 = vrcp.f32 %v309_v61 }
 0x14a   : > { %829 = vrot.lane.b32.xlu0 %v420_v52, %s10072_s17 }
 0x14b   : > { %v396_v56 = vpop.permute.xlu0 %395  ;;  %v10340_v57 = vpop.permute.xlu1 %468 }
 0x14c   : > { %v425_v59 = vmul.f32 %v396_v56, %v10168_v13 }
 0x14e   : > { %1017 = vrot.lane.b32.xlu0 %v425_v59, %s10072_s17 }
 0x14f   : > { %v10345_v62 = vpop.permute.xlu0 %483  ;;  %v388_v63 = vpop.permute.xlu1 %387 }
 0x150   : > { %v423_v0 = vmul.f32 %v388_v63, %v10151_v10 }
 0x152   : > { %924 = vrot.lane.b32.xlu1 %v423_v0, %s10072_s17  ;;  %v9903_v0 = vpop.eup %9902 }
 0x153   : > { %v392_v20 = vpop.permute.xlu0 %391  ;;  %v10350_v52 = vpop.permute.xlu1 %473 }
 0x154   : > { %v424_v56 = vmul.f32 %v392_v20, %v10158_v11  ;;  %v312_v20 = vmax.f32 %v10303_v40, 1e-10  ;;  %v9905_v32 = vpop.eup %9904 }
 0x155   : > { %v323_v61 = vmul.f32 %v9905_v32, %v10111_v2 }
 0x156   : > { %1015 = vrot.lane.b32.xlu0 %v424_v56, %s10072_s17  ;;  %v319_v56 = vmul.f32 %v9903_v0, %v10108_v1  ;;  %9912 = vrcp.f32 %v312_v20  ;;  %v9907_v0 = vpop.eup %9906 }
 0x157   : > { %v10355_v59 = vpop.permute.xlu0 %498  ;;  %v384_v27 = vpop.permute.xlu1 %383  ;;  %v528_v45 = vmul.f32 %v459_v54, %v323_v61  ;;  %9914 = vrcp.f32 %v303_v46  ;;  %v325_v20 = vmul.f32 %v9907_v0, %v10128_v5  ;;  %v307_v46 = vmax.f32 %v10297_v35, 1e-10 }
 0x158   : > { %v422_v63 = vmul.f32 %v384_v27, %v10141_v8  ;;  %v526_v36 = vmul.f32 %v10315_v50, %v319_v56  ;;  %v306_v50 = vmax.f32 %v10293_v31, 1e-10  ;;  %v316_v56 = vmax.f32 %v10311_v48, 1e-10  ;;  %v9909_v32 = vpop.eup %9908 }
 0x159   : > { %v331_v54 = vmul.f32 %v9909_v32, %v10138_v7  ;;  %v310_v61 = vmax.f32 %v10301_v39, 1e-10 }
 0x15a   : > { %922 = vrot.lane.b32.xlu1 %v422_v63, %s10072_s17 }
 0x15b   : > { %v412_v28 = vpop.permute.xlu0 %411  ;;  %v10360_v23 = vpop.permute.xlu1 %488 }
 0x15c   : > { %v429_v19 = vmul.f32 %v412_v28, %v10181_v16  ;;  %v313_v28 = vmax.f32 %v10307_v44, 1e-10 }
 0x15e   : > { %1203 = vrot.lane.b32.xlu0 %v429_v19, %s10072_s17  ;;  %9916 = vrcp.f32 %v313_v28 }
 0x15f   : > { %v10366_v27 = vpop.permute.xlu0 %513  ;;  %v404_v55 = vpop.permute.xlu1 %403  ;;  %9918 = vrcp.f32 %v306_v50 }
 0x160   : > { %v427_v63 = vmul.f32 %v404_v55, %v10171_v14  ;;  %9920 = vrcp.f32 %v316_v56 }
 0x161   : > { %9922 = vrcp.f32 %v307_v46 }
 0x162   : > { %544 = vrot.lane.b32.xlu0 %v526_v36, %s10071_s16  ;;  %1110 = vrot.lane.b32.xlu1 %v427_v63, %s10072_s17  ;;  %v529_v63 = vmul.f32 %v10327_v60, %v325_v20  ;;  %v532_v60 = vmul.f32 %v10336_v53, %v331_v54  ;;  %9924 = vrcp.f32 %v310_v61 }
 0x163   : > { %v519_v19 = vpop.permute.xlu0 %518  ;;  %v10375_v40 = vpop.permute.xlu1 %493 }
 0x166   : > { %637 = vrot.lane.b32.xlu0 %v528_v45, %s10071_s16  ;;  %v9911_v45 = vpop.eup %9910 }
 0x167   : > { %v10381_v55 = vpop.permute.xlu0 %552  ;;  %v400_v36 = vpop.permute.xlu1 %399  ;;  %v333_v0 = vmul.f32 %v9911_v45, %v10148_v9 }
 0x168   : > { %v426_v44 = vmul.f32 %v400_v36, %v10161_v12  ;;  %9208 = vmatprep.subr.mxu0 %v10381_v55  ;;  %v9913_v50 = vpop.eup %9912  ;;  %v311_v36 = vmax.f32 %v10305_v43, 1e-10 }
 0x169   : > { %9209 = vmatpush3.msra.mxu0 %v10381_v55  ;;  %v533_v56 = vmul.f32 %v10345_v62, %v333_v0  ;;  %v9915_v32 = vpop.eup %9914 }
 0x16a   : > { %639 = vrot.lane.b32.xlu0 %v529_v63, %s10071_s16  ;;  %1108 = vrot.lane.b32.xlu1 %v426_v44, %s10072_s17  ;;  %v339_v44 = vmul.f32 %v9913_v50, %v10158_v11  ;;  %9926 = vrcp.f32 %v311_v36  ;;  %v321_v62 = vmul.f32 %v9915_v32, %v10118_v3 }
 0x16b   : > { %v509_v28 = vpop.permute.xlu1 %508  ;;  %v9917_v53 = vpop.eup %9916 }
 0x16c   : > { %v536_v46 = vmul.f32 %v10355_v59, %v339_v44  ;;  %v9919_v45 = vpop.eup %9918  ;;  %v341_v61 = vmul.f32 %v9917_v53, %v10168_v13  ;;  %v527_v50 = vmul.f32 %v10323_v58, %v321_v62  ;;  %v315_v59 = vmax.f32 %v10313_v49, 1e-10 }
 0x16d   : > { %v9921_v0 = vpop.eup %9920  ;;  %v327_v44 = vmul.f32 %v9919_v45, %v10121_v4  ;;  %v10642_v49 = vadd.f32 %v10178_v15, %v10178_v15 }
 0x16e   : > { %823 = vrot.lane.b32.xlu0 %v532_v60, %s10071_s16  ;;  %v314_v60 = vmax.f32 %v10309_v47, 1e-10  ;;  %v347_v36 = vmul.f32 %v9921_v0, %v10178_v15  ;;  %v9923_v32 = vpop.eup %9922 }
 0x16f   : > { %v504_v20 = vpop.permute.xlu1 %503  ;;  %v530_v53 = vmul.f32 %v10340_v57, %v327_v44  ;;  %v329_v58 = vmul.f32 %v9923_v32, %v10131_v6  ;;  %12199 = vst [vmem:[#allocation49_spill] sm:$0xff] %v10642_v49 }
 0x170   : > { %9928 = vrcp.f32 %v314_v60 }
 0x171   : > { %9930 = vrcp.f32 %v315_v59 }
 0x172   : > { %825 = vrot.lane.b32.xlu0 %v533_v56, %s10071_s16  ;;  %v537_v56 = vmul.f32 %v504_v20, %v341_v61  ;;  %v9925_v20 = vpop.eup %9924 }
 0x173   : > { %v408_v63 = vpop.permute.xlu1 %407  ;;  %v335_v45 = vmul.f32 %v9925_v20, %v10141_v8 }
 0x174   : > { %v428_v54 = vmul.f32 %v408_v63, %v10178_v15  ;;  %v540_v63 = vmul.f32 %v519_v19, %v347_v36 }
 0x175   : > { %v534_v19 = vmul.f32 %v10360_v23, %v335_v45 }
 0x176   : > { %1009 = vrot.lane.b32.xlu0 %v536_v46, %s10071_s16  ;;  %1201 = vrot.lane.b32.xlu1 %v428_v54, %s10072_s17  ;;  %v317_v46 = vmax.f32 %v10317_v51, 1e-10  ;;  %v531_v54 = vmul.f32 %v10350_v52, %v329_v58  ;;  %v10626_v51 = vadd.f32 %v10161_v12, %v10161_v12 }
 0x177   : > { %v9927_v57 = vpop.eup %9926 }
 0x178   : > { %9932 = vrcp.f32 %v317_v46  ;;  %v337_v60 = vmul.f32 %v9927_v57, %v10151_v10  ;;  %v10502_v57 = vadd.f32 %v10128_v5, %v10128_v5  ;;  %12198 = vst [vmem:[#allocation48_spill] sm:$0xff] %v10626_v51 }
 0x17a   : > { %1011 = vrot.lane.b32.xlu0 %v537_v56, %s10071_s16  ;;  %546 = vrot.lane.b32.xlu1 %v527_v50, %s10071_s16  ;;  %v535_v52 = vmul.f32 %v10375_v40, %v337_v60  ;;  %v524_v40 = vpop.permute.xlu1 %523  ;;  %12186 = vst [vmem:[#allocation36_spill] sm:$0xff] %v10502_v57  ;;  %v10509_v60 = vadd.f32 %v10131_v6, %v10131_v6 }
 0x17c   : > { %12187 = vst [vmem:[#allocation37_spill] sm:$0xff] %v10509_v60 }
 0x17d   : > { %v9929_v62 = vpop.eup %9928 }
 0x17e   : > { %1195 = vrot.lane.b32.xlu0 %v540_v63, %s10071_s16  ;;  %730 = vrot.lane.b32.xlu1 %v530_v53, %s10071_s16  ;;  %v343_v61 = vmul.f32 %v9929_v62, %v10161_v12  ;;  %v9931_v0 = vpop.eup %9930  ;;  %v10475_v53 = vadd.f32 %v10108_v1, %v10108_v1  ;;  %v10480_v63 = vld [vmem:[%s12079_s1 + $0x20] ss:$0 sm:$0xff] }
 0x17f   : > { %v345_v23 = vmul.f32 %v9931_v0, %v10171_v14  ;;  %v6960_v43 = vmul.f32 %v10480_v63, %v10642_v49 }
 0x180   : > { %v538_v50 = vmul.f32 %v509_v28, %v343_v61  ;;  %12184 = vst [vmem:[#allocation34_spill] sm:$0xff] %v10475_v53  ;;  %v6946_v58 = vmul.f32 %v10480_v63, %v10475_v53  ;;  %v6951_v61 = vmul.f32 %v10480_v63, %v10509_v60 }
 0x181   : > { %v539_v59 = vmul.f32 %v10366_v27, %v345_v23  ;;  %v10527_v23 = vadd.f32 %v10151_v10, %v10151_v10 }
 0x182   : > { %3152 = vrot.lane.b32.xlu0 %v10118_v3, %s10072_s17  ;;  %732 = vrot.lane.b32.xlu1 %v531_v54, %s10071_s16  ;;  %v6963_v54 = vsel %vm6962_vm1, %v6946_v58, 0.0  ;;  %v10547_v58 = vadd.f32 %v10118_v3, %v10118_v3 }
 0x183   : > { %12189 = vst [vmem:[#allocation39_spill] sm:$0xff] %v10527_v23 }
 0x184   : > { %12192 = vst [vmem:[#allocation42_spill] sm:$0xff] %v10547_v58 }
 0x185   : > { %v9933_v56 = vpop.eup %9932 }
 0x186   : > { %3239 = vrot.lane.b32.xlu0 %v10128_v5, %s10072_s17  ;;  %916 = vrot.lane.b32.xlu1 %v534_v19, %s10071_s16  ;;  %v349_v44 = vmul.f32 %v9933_v56, %v10181_v16  ;;  %v10518_v5 = vadd.f32 %v10148_v9, %v10148_v9 }
 0x188   : > { %v541_v36 = vmul.f32 %v524_v40, %v349_v44  ;;  %12188 = vst [vmem:[#allocation38_spill] sm:$0xff] %v10518_v5 }
 0x18a   : > { %3237 = vrot.lane.b32.xlu0 %v10111_v2, %s10072_s17  ;;  %918 = vrot.lane.b32.xlu1 %v535_v52, %s10071_s16 }
 0x18e   : > { %3413 = vrot.lane.b32.xlu0 %v10148_v9, %s10072_s17  ;;  %1102 = vrot.lane.b32.xlu1 %v538_v50, %s10071_s16  ;;  %v6978_v50 = vsel %vm6962_vm1, %v6951_v61, 0.0  ;;  %v10534_v9 = vadd.f32 %v10168_v13, %v10168_v13 }
 0x190   : > { %12190 = vst [vmem:[#allocation40_spill] sm:$0xff] %v10534_v9 }
 0x192   : > { %3411 = vrot.lane.b32.xlu0 %v10138_v7, %s10072_s17  ;;  %1104 = vrot.lane.b32.xlu1 %v539_v59, %s10071_s16  ;;  %v6955_v59 = vmul.f32 %v10480_v63, %v10527_v23 }
 0x194   : > { %v6990_v44 = vsel %vm6962_vm1, %v6955_v59, 0.0 }
 0x196   : > { %3587 = vrot.lane.b32.xlu0 %v10168_v13, %s10072_s17  ;;  %1197 = vrot.lane.b32.xlu1 %v541_v36, %s10071_s16  ;;  %v6957_v36 = vmul.f32 %v10480_v63, %v10534_v9 }
 0x198   : > { %v6996_v13 = vsel %vm6962_vm1, %v6957_v36, 0.0 }
 0x19a   : > { %3585 = vrot.lane.b32.xlu0 %v10158_v11, %s10072_s17  ;;  %3150 = vrot.lane.b32.xlu1 %v10108_v1, %s10072_s17  ;;  %v10492_v1 = vadd.f32 %v10111_v2, %v10111_v2  ;;  %v6949_v2 = vmul.f32 %v10480_v63, %v10502_v57 }
 0x19c   : > { %12185 = vst [vmem:[#allocation35_spill] sm:$0xff] %v10492_v1  ;;  %v6948_v45 = vmul.f32 %v10480_v63, %v10492_v1  ;;  %v6972_v52 = vsel %vm6962_vm1, %v6949_v2, 0.0  ;;  %v10562_v2 = vadd.f32 %v10121_v4, %v10121_v4 }
 0x19e   : > { %3761 = vrot.lane.b32.xlu0 %v10181_v16, %s10072_s17  ;;  %3326 = vrot.lane.b32.xlu1 %v10131_v6, %s10072_s17  ;;  %v6969_v19 = vsel %vm6962_vm1, %v6948_v45, 0.0  ;;  %v6953_v6 = vmul.f32 %v10480_v63, %v10518_v5  ;;  %12194 = vst [vmem:[#allocation44_spill] sm:$0xff] %v10562_v2 }
 0x1a0   : > { %v6984_v56 = vsel %vm6962_vm1, %v6953_v6, 0.0  ;;  %v6950_v6 = vmul.f32 %v10480_v63, %v10562_v2 }
 0x1a2   : > { %3324 = vrot.lane.b32.xlu1 %v10121_v4, %s10072_s17  ;;  %v10578_v4 = vadd.f32 %v10138_v7, %v10138_v7  ;;  %v6975_v36 = vsel %vm6962_vm1, %v6950_v6, 0.0  ;;  %v10592_v7 = vadd.f32 %v10141_v8, %v10141_v8 }
 0x1a4   : > { %12195 = vst [vmem:[#allocation45_spill] sm:$0xff] %v10578_v4  ;;  %12196 = vst [vmem:[#allocation46_spill] sm:$0xff] %v10592_v7 }
 0x1a6   : > { %3500 = vrot.lane.b32.xlu1 %v10151_v10, %s10072_s17  ;;  %v10543_v10 = vadd.f32 %v10171_v14, %v10171_v14 }
 0x1a8   : > { %v10456_v27 = vpop.permute.xlu0 %645  ;;  %12191 = vst [vmem:[#allocation41_spill] sm:$0xff] %v10543_v10  ;;  %v6959_v45 = vmul.f32 %v10480_v63, %v10543_v10 }
 0x1a9   : > { %9215 = vmatprep.subr.mxu1 %v10456_v27 }
 0x1aa   : > { %9216 = vmatpush3.msra.mxu1 %v10456_v27  ;;  %3498 = vrot.lane.b32.xlu1 %v10141_v8, %s10072_s17  ;;  %v7002_v61 = vsel %vm6962_vm1, %v6959_v45, 0.0  ;;  %v10607_v8 = vadd.f32 %v10158_v11, %v10158_v11 }
 0x1ac   : > { %v10462_v28 = vpop.permute.xlu1 %550  ;;  %12197 = vst [vmem:[#allocation47_spill] sm:$0xff] %v10607_v8 }
 0x1ad   : > { %9210 = vmatprep.subr.mxu0 %v10462_v28 }
 0x1ae   : > { %3674 = vrot.lane.b32.xlu1 %v10171_v14, %s10072_s17  ;;  %9211 = vmatpush3.msra.mxu0 %v10462_v28  ;;  %v6947_v14 = vmul.f32 %v10480_v63, %v10547_v58 }
 0x1b0   : > { %v10468_v32 = vpop.permute.xlu1 %738 }
 0x1b1   : > { %9222 = vmatprep.subr.mxu0 %v10468_v32 }
 0x1b2   : > { %3672 = vrot.lane.b32.xlu1 %v10161_v12, %s10072_s17  ;;  %v6958_v12 = vmul.f32 %v10480_v63, %v10626_v51 }
 0x1b4   : > { %v10482_v46 = vpop.permute.xlu0 %643  ;;  %v6999_v47 = vsel %vm6962_vm1, %v6958_v12, 0.0 }
 0x1b5   : > { %9217 = vmatprep.subr.mxu1 %v10482_v46 }
 0x1b6   : > { %9218 = vmatpush3.msra.mxu1 %v10482_v46  ;;  %3759 = vrot.lane.b32.xlu1 %v10178_v15, %s10072_s17 }
 0x1b8   : > { %v10494_v20 = vpop.permute.xlu0 %831  ;;  %v10564_v3 = vpop.permute.xlu1 %736 }
 0x1b9   : > { %9229 = vmatprep.subr.mxu1 %v10494_v20 }
 0x1bc   : > { %v10511_v62 = vpop.permute.xlu0 %829 }
 0x1bd   : > { %6964 = vadd.xlane.f32.xlu0 %v6963_v54 }
 0x1c0   : > { %v10520_v0 = vpop.permute.xlu0 %1017 }
 0x1c1   : > { %6970 = vadd.xlane.f32.xlu0 %v6969_v19  ;;  %v10556_v19 = vadd.f32 %v10181_v16, %v10181_v16 }
 0x1c3   : > { %12193 = vst [vmem:[#allocation43_spill] sm:$0xff] %v10556_v19  ;;  %v6961_v16 = vmul.f32 %v10480_v63, %v10556_v19 }
 0x1c5   : > { %6973 = vadd.xlane.f32.xlu0 %v6972_v52 }
 0x1c8   : > { %v10536_v40 = vpop.permute.xlu0 %1015 }
 0x1c9   : > { %6979 = vadd.xlane.f32.xlu0 %v6978_v50  ;;  %v6966_v50 = vsel %vm6962_vm1, %v6947_v14, 0.0 }
 0x1cd   : > { %6985 = vadd.xlane.f32.xlu0 %v6984_v56  ;;  %v10580_v56 = vpop.permute.xlu1 %924 }
 0x1d0   : > { %v10549_v54 = vpop.permute.xlu0 %1203 }
 0x1d1   : > { %6991 = vadd.xlane.f32.xlu0 %v6990_v44  ;;  %v7008_v44 = vsel %vm6962_vm1, %v6961_v16, 0.0  ;;  %v10594_v45 = vpop.permute.xlu1 %922  ;;  %v6954_v16 = vmul.f32 %v10480_v63, %v10592_v7 }
 0x1d4   : > { %v10566_v52 = vpop.permute.xlu0 %544 }
 0x1d5   : > { %9212 = vmatprep.mubr.msk.f32.mxu0 %vm253_vm0, %v10566_v52  ;;  %6997 = vadd.xlane.f32.xlu0 %v6996_v13  ;;  %v6952_v13 = vmul.f32 %v10480_v63, %v10578_v4 }
 0x1d8   : > { %v10582_v59 = vpop.permute.xlu0 %637 }
 0x1d9   : > { %9219 = vmatprep.mubr.msk.f32.mxu1 %vm253_vm0, %v10582_v59  ;;  %7003 = vadd.xlane.f32.xlu0 %v7002_v61  ;;  %v6981_v61 = vsel %vm6962_vm1, %v6952_v13, 0.0 }
 0x1da   : > { %6967 = vadd.xlane.f32.xlu1 %v6966_v50  ;;  %v10609_v50 = vpop.permute.xlu1 %1110 }
 0x1dc   : > { %v10596_v14 = vpop.permute.xlu0 %639 }
 0x1dd   : > { %9220 = vmatmul.mubr.msk.f32.vlgmr.msra.gmra.mxu1 %vm253_vm0, %v10596_v14  ;;  %7009 = vadd.xlane.f32.xlu0 %v7008_v44  ;;  %v6987_v44 = vsel %vm6962_vm1, %v6954_v16, 0.0 }
 0x1de   : > { %9230 = vmatpush3.msra.mxu1 %v10494_v20  ;;  %6976 = vadd.xlane.f32.xlu1 %v6975_v36  ;;  %v6956_v36 = vmul.f32 %v10480_v63, %v10607_v8  ;;  %v10620_v13 = vpop.permute.xlu1 %1108  ;;  %v7005_v63 = vsel %vm6962_vm1, %v6960_v43, 0.0 }
 0x1df   : > { %9231 = vmatprep.subr.mxu1 %v10511_v62 }
 0x1e0   : > { %9232 = vmatpush3.msra.mxu1 %v10511_v62  ;;  %v10612_v6 = vpop.permute.xlu0 %823 }
 0x1e1   : > { %9243 = vmatprep.subr.mxu1 %v10520_v0  ;;  %9233 = vmatprep.mubr.msk.f32.mxu1 %vm253_vm0, %v10612_v6 }
 0x1e2   : > { %6982 = vadd.xlane.f32.xlu1 %v6981_v61  ;;  %v6993_v61 = vsel %vm6962_vm1, %v6956_v36, 0.0 }
 0x1e4   : > { %v10622_v11 = vpop.permute.xlu0 %825 }
 0x1e5   : > { %9234 = vmatmul.mubr.msk.f32.vlgmr.msra.gmra.mxu1 %vm253_vm0, %v10622_v11 }
 0x1e6   : > { %9244 = vmatpush3.msra.mxu1 %v10520_v0  ;;  %6988 = vadd.xlane.f32.xlu1 %v6987_v44 }
 0x1e7   : > { %9245 = vmatprep.subr.mxu1 %v10536_v40 }
 0x1e8   : > { %9246 = vmatpush3.msra.mxu1 %v10536_v40  ;;  %v10634_v16 = vpop.permute.xlu0 %1009  ;;  %v10636_v48 = vpop.permute.xlu1 %1201 }
 0x1e9   : > { %9257 = vmatprep.subr.mxu1 %v10549_v54  ;;  %9247 = vmatprep.mubr.msk.f32.mxu1 %vm253_vm0, %v10634_v16 }
 0x1ea   : > { %6994 = vadd.xlane.f32.xlu1 %v6993_v61 }
 0x1ec   : > { %v10647_v44 = vpop.permute.xlu0 %1011  ;;  %v547_v36 = vpop.permute.xlu1 %546 }
 0x1ed   : > { %9213 = vmatmul.mubr.msk.f32.vlgmr.msra.gmra.mxu0 %vm253_vm0, %v547_v36  ;;  %9248 = vmatmul.mubr.msk.f32.vlgmr.msra.gmra.mxu1 %vm253_vm0, %v10647_v44 }
 0x1ee   : > { %9223 = vmatpush3.msra.mxu0 %v10468_v32  ;;  %9258 = vmatpush3.msra.mxu1 %v10549_v54 }
 0x1ef   : > { %7000 = vadd.xlane.f32.xlu1 %v6999_v47  ;;  %9224 = vmatprep.subr.mxu0 %v10564_v3 }
 0x1f0   : > { %9259 = vmatprep.subr.mxu1 %v10636_v48  ;;  %9225 = vmatpush3.msra.mxu0 %v10564_v3  ;;  %v10660_v15 = vpop.permute.xlu0 %1195  ;;  %v731_v61 = vpop.permute.xlu1 %730 }
 0x1f1   : > { %9260 = vmatpush3.msra.mxu1 %v10636_v48  ;;  %9236 = vmatprep.subr.mxu0 %v10580_v56 }
 0x1f2   : > { %9271 = vmatprep.subr.mxu1 %v10596_v14  ;;  %9226 = vmatprep.mubr.msk.f32.mxu0 %vm253_vm0, %v731_v61 }
 0x1f3   : > { %9261 = vmatprep.mubr.msk.f32.mxu1 %vm253_vm0, %v10660_v15  ;;  %7006 = vadd.xlane.f32.xlu1 %v7005_v63 }
 0x1f4   : > { %v733_v47 = vpop.permute.xlu1 %732 }
 0x1f5   : > { %9227 = vmatmul.mubr.msk.f32.vlgmr.msra.gmra.mxu0 %vm253_vm0, %v733_v47 }
 0x1f6   : > { %9237 = vmatpush3.msra.mxu0 %v10580_v56 }
 0x1f7   : > { %9238 = vmatprep.subr.mxu0 %v10594_v45 }
 0x1f8   : > { %9239 = vmatpush3.msra.mxu0 %v10594_v45  ;;  %v917_v43 = vpop.permute.xlu1 %916 }
 0x1f9   : > { %9250 = vmatprep.subr.mxu0 %v10609_v50  ;;  %9240 = vmatprep.mubr.msk.f32.mxu0 %vm253_vm0, %v917_v43 }
 0x1fc   : > { %v919_v12 = vpop.permute.xlu1 %918 }
 0x1fd   : > { %9241 = vmatmul.mubr.msk.f32.vlgmr.msra.gmra.mxu0 %vm253_vm0, %v919_v12 }
 0x1fe   : > { %9251 = vmatpush3.msra.mxu0 %v10609_v50 }
 0x1ff   : > { %9252 = vmatprep.subr.mxu0 %v10620_v13 }
 0x200   : > { %9253 = vmatpush3.msra.mxu0 %v10620_v13  ;;  %v1103_v63 = vpop.permute.xlu1 %1102 }
 0x201   : > { %9264 = vmatprep.subr.mxu0 %v547_v36  ;;  %9254 = vmatprep.mubr.msk.f32.mxu0 %vm253_vm0, %v1103_v63 }
 0x204   : > { %v1105_v39 = vpop.permute.xlu1 %1104 }
 0x205   : > { %9255 = vmatmul.mubr.msk.f32.vlgmr.msra.gmra.mxu0 %vm253_vm0, %v1105_v39 }
 0x206   : > { %9265 = vmatpush3.msra.mxu0 %v547_v36  ;;  %9268 = vmatprep.mubr.msk.f32.mxu0 %vm253_vm0, %v10566_v52 }
 0x207   : > { %9266 = vmatprep.subr.mxu0 %v10566_v52 }
 0x208   : > { %9267 = vmatpush3.msra.mxu0 %v10566_v52  ;;  %v1198_v35 = vpop.permute.xlu1 %1197  ;;  %v10708_v52 = vpop.permute.xlu0 %3152 }
 0x209   : > { %9278 = vmatprep.subr.mxu0 %v733_v47  ;;  %9262 = vmatmul.mubr.msk.f32.vlgmr.msra.gmra.mxu1 %vm253_vm0, %v1198_v35 }
 0x20a   : > { %9269 = vmatmul.mubr.msk.f32.vlgmr.msra.gmra.mxu0 %vm253_vm0, %v547_v36  ;;  %9272 = vmatpush3.msra.mxu1 %v10596_v14 }
 0x20b   : > { %9279 = vmatpush3.msra.mxu0 %v733_v47  ;;  %9273 = vmatprep.subr.mxu1 %v10582_v59 }
 0x20c   : > { %9275 = vmatprep.mubr.msk.f32.mxu1 %vm253_vm0, %v10582_v59  ;;  %9280 = vmatprep.subr.mxu0 %v731_v61 }
 0x20d   : > { %9282 = vmatprep.mubr.msk.f32.mxu0 %vm253_vm0, %v731_v61  ;;  %9274 = vmatpush3.msra.mxu1 %v10582_v59  ;;  %v10720_v59 = vpop.permute.xlu0 %3239 }
 0x20e   : > { %9281 = vmatpush3.msra.mxu0 %v731_v61  ;;  %9285 = vmatprep.subr.mxu1 %v10622_v11 }
 0x20f   : > { %9292 = vmatprep.subr.mxu0 %v919_v12  ;;  %9276 = vmatmul.mubr.msk.f32.vlgmr.msra.gmra.mxu1 %vm253_vm0, %v10596_v14 }
 0x210   : > { %9283 = vmatmul.mubr.msk.f32.vlgmr.msra.gmra.mxu0 %vm253_vm0, %v733_v47  ;;  %9286 = vmatpush3.msra.mxu1 %v10622_v11 }
 0x211   : > { %9293 = vmatpush3.msra.mxu0 %v919_v12  ;;  %9287 = vmatprep.subr.mxu1 %v10612_v6  ;;  %v10725_v14 = vpop.permute.xlu0 %3237 }
 0x212   : > { %9289 = vmatprep.mubr.msk.f32.mxu1 %vm253_vm0, %v10612_v6  ;;  %9294 = vmatprep.subr.mxu0 %v917_v43 }
 0x213   : > { %9296 = vmatprep.mubr.msk.f32.mxu0 %vm253_vm0, %v917_v43  ;;  %9288 = vmatpush3.msra.mxu1 %v10612_v6 }
 0x214   : > { %9295 = vmatpush3.msra.mxu0 %v917_v43  ;;  %9299 = vmatprep.subr.mxu1 %v10647_v44 }
 0x215   : > { %9306 = vmatprep.subr.mxu0 %v1105_v39  ;;  %9290 = vmatmul.mubr.msk.f32.vlgmr.msra.gmra.mxu1 %vm253_vm0, %v10622_v11  ;;  %v10727_v6 = vpop.permute.xlu0 %3413 }
 0x216   : > { %9297 = vmatmul.mubr.msk.f32.vlgmr.msra.gmra.mxu0 %vm253_vm0, %v919_v12  ;;  %9300 = vmatpush3.msra.mxu1 %v10647_v44 }
 0x217   : > { %9307 = vmatpush3.msra.mxu0 %v1105_v39  ;;  %9301 = vmatprep.subr.mxu1 %v10634_v16 }
 0x218   : > { %9303 = vmatprep.mubr.msk.f32.mxu1 %vm253_vm0, %v10634_v16  ;;  %9308 = vmatprep.subr.mxu0 %v1103_v63 }
 0x219   : > { %9310 = vmatprep.mubr.msk.f32.mxu0 %vm253_vm0, %v1103_v63  ;;  %9302 = vmatpush3.msra.mxu1 %v10634_v16  ;;  %v10729_v11 = vpop.permute.xlu0 %3411  ;;  %v10731_v16 = vpop.permute.xlu1 %3150 }
 0x21a   : > { %9309 = vmatpush3.msra.mxu0 %v1103_v63  ;;  %9313 = vmatprep.subr.mxu1 %v1198_v35 }
 0x21b   : > { %9304 = vmatmul.mubr.msk.f32.vlgmr.msra.gmra.mxu1 %vm253_vm0, %v10647_v44  ;;  %9311 = vmatmul.mubr.msk.f32.vlgmr.msra.gmra.mxu0 %vm253_vm0, %v1105_v39 }
 0x21c   : > { %9314 = vmatpush3.msra.mxu1 %v1198_v35  ;;  %9317 = vmatprep.mubr.msk.f32.mxu1 %vm253_vm0, %v10660_v15 }
 0x21d   : > { %9315 = vmatprep.subr.mxu1 %v10660_v15  ;;  %v10733_v39 = vpop.permute.xlu0 %3587  ;;  %v10735_v44 = vpop.permute.xlu1 %3326 }
 0x21e   : > { %9316 = vmatpush3.msra.mxu1 %v10660_v15 }
 0x21f   : > { %9318 = vmatmul.mubr.msk.f32.vlgmr.msra.gmra.mxu1 %vm253_vm0, %v1198_v35 }
 0x221   : > { %v10737_v36 = vpop.permute.xlu0 %3585  ;;  %v10739_v61 = vpop.permute.xlu1 %3324 }
 0x222   : > { %12200 = vst [vmem:[#allocation50_spill] sm:$0xff] %v10737_v36 }
 0x225   : > { %v10741_v47 = vpop.permute.xlu0 %3761  ;;  %v10743_v15 = vpop.permute.xlu1 %3500 }
 0x226   : > { %12201 = vst [vmem:[#allocation51_spill] sm:$0xff] %v10741_v47 }
 0x229   : > { %v10745_v12 = vpop.permute.xlu1 %3498 }
 0x22d   : > { %v10747_v49 = vpop.permute.xlu1 %3674 }
 0x22e   : > { %12202 = vst [vmem:[#allocation52_spill] sm:$0xff] %v10747_v49 }
 0x231   : > { %v10749_v51 = vpop.permute.xlu1 %3672 }
 0x232   : > { %12203 = vst [vmem:[#allocation53_spill] sm:$0xff] %v10749_v51 }
 0x235   : > { %v10751_v9 = vpop.permute.xlu1 %3759 }
 0x236   : > { %12204 = vst [vmem:[#allocation54_spill] sm:$0xff] %v10751_v9 }
 0x246   : > { %v6965_v35 = vpop.xlane.xlu0 %6964 }
 0x24a   : > { %v6971_v43 = vpop.xlane.xlu0 %6970 }
 0x24e   : > { %v6974_v63 = vpop.xlane.xlu0 %6973 }
 0x24f   : > { %v7018_v31 = vmax.f32 %v6971_v43, %v6974_v63 }
 0x251   : > { %v7019_v24 = vrot.slane %v7018_v31, 4 }
 0x252   : > { %v6980_v34 = vpop.xlane.xlu0 %6979 }
 0x253   : > { %v7020_v19 = vmax.f32 %v7018_v31, %v7019_v24 }
 0x255   : > { %v7021_v42 = vrot.slane %v7020_v19, 2 }
 0x256   : > { %v10753_v29 = vpop.xlane.xlu0 %6985 }
 0x257   : > { %v7022_v41 = vmax.f32 %v7020_v19, %v7021_v42 }
 0x259   : > { %v7023_v8 = vrot.slane %v7022_v41, 1 }
 0x25b   : > { %v7024_v38 = vmax.f32 %v7022_v41, %v7023_v8  ;;  %v10755_v41 = vpop.xlane.xlu0 %6991 }
 0x25d   : > { %v7069_v37 = vsub.f32 %v6971_v43, %v7024_v38  ;;  %v7070_v10 = vsub.f32 %v6974_v63, %v7024_v38 }
 0x25f   : > { %v7087_v33 = vmul.f32 1.442695, %v7069_v37  ;;  %v7089_v7 = vmul.f32 1.442695, %v7070_v10  ;;  %v10764_v22 = vpop.xlane.xlu0 %6997 }
 0x261   : > { %9934 = vpow2.f32 %v7087_v33 }
 0x262   : > { %9936 = vpow2.f32 %v7089_v7 }
 0x263   : > { %v6968_v4 = vpop.xlane.xlu1 %6967 }
 0x264   : > { %v7011_v30 = vmax.f32 %v6965_v35, %v6968_v4 }
 0x266   : > { %v7012_v24 = vrot.slane %v7011_v30, 4 }
 0x267   : > { %v6977_v31 = vpop.xlane.xlu1 %6976 }
 0x268   : > { %v7013_v42 = vmax.f32 %v7011_v30, %v7012_v24  ;;  %v7025_v19 = vmax.f32 %v6977_v31, %v6980_v34 }
 0x26a   : > { %v7014_v23 = vrot.slane %v7013_v42, 2  ;;  %v7026_v5 = vrot.slane %v7025_v19, 4 }
 0x26b   : > { %v6983_v38 = vpop.xlane.xlu1 %6982 }
 0x26c   : > { %v7015_v8 = vmax.f32 %v7013_v42, %v7014_v23  ;;  %v7027_v43 = vmax.f32 %v7025_v19, %v7026_v5  ;;  %v7032_v37 = vmax.f32 %v6983_v38, %v10753_v29 }
 0x26e   : > { %v10758_v10 = vpop.eup %9934  ;;  %v7016_v33 = vrot.slane %v7015_v8, 1  ;;  %v7028_v7 = vrot.slane %v7027_v43, 2  ;;  %v7033_v63 = vrot.slane %v7032_v37, 4 }
 0x26f   : > { %v10760_v26 = vpop.eup %9936  ;;  %v6989_v25 = vpop.xlane.xlu1 %6988 }
 0x270   : > { %v7122_v30 = vadd.f32 %v10760_v26, %v10758_v10  ;;  %v7017_v24 = vmax.f32 %v7015_v8, %v7016_v33  ;;  %v7029_v2 = vmax.f32 %v7027_v43, %v7028_v7  ;;  %v7034_v1 = vmax.f32 %v7032_v37, %v7033_v63  ;;  %v7004_v7 = vpop.xlane.xlu0 %7003 }
 0x271   : > { %v7039_v5 = vmax.f32 %v6989_v25, %v10755_v41 }
 0x272   : > { %v7123_v23 = vrot.slane %v7122_v30, 4  ;;  %v7067_v42 = vsub.f32 %v6965_v35, %v7017_v24  ;;  %v7068_v19 = vsub.f32 %v6968_v4, %v7017_v24  ;;  %v7030_v18 = vrot.slane %v7029_v2, 1 }
 0x273   : > { %v7035_v60 = vrot.slane %v7034_v1, 2  ;;  %v7040_v57 = vrot.slane %v7039_v5, 4  ;;  %v6995_v21 = vpop.xlane.xlu1 %6994 }
 0x274   : > { %v7124_v17 = vadd.f32 %v7123_v23, %v7122_v30  ;;  %v7083_v53 = vmul.f32 1.442695, %v7067_v42  ;;  %v7085_v58 = vmul.f32 1.442695, %v7068_v19  ;;  %v7031_v9 = vmax.f32 %v7029_v2, %v7030_v18 }
 0x275   : > { %v7036_v47 = vmax.f32 %v7034_v1, %v7035_v60  ;;  %v7041_v51 = vmax.f32 %v7039_v5, %v7040_v57  ;;  %v7046_v8 = vmax.f32 %v6995_v21, %v10764_v22 }
 0x276   : > { %v7125_v43 = vrot.slane %v7124_v17, 2  ;;  %9938 = vpow2.f32 %v7083_v53  ;;  %v7071_v37 = vsub.f32 %v6977_v31, %v7031_v9  ;;  %v7072_v33 = vsub.f32 %v6980_v34, %v7031_v9 }
 0x277   : > { %9940 = vpow2.f32 %v7085_v58  ;;  %v7037_v35 = vrot.slane %v7036_v47, 1  ;;  %v7042_v4 = vrot.slane %v7041_v51, 2  ;;  %v7047_v63 = vrot.slane %v7046_v8, 4 }
 0x278   : > { %v7126_v24 = vadd.f32 %v7125_v43, %v7124_v17  ;;  %v7091_v36 = vmul.f32 1.442695, %v7071_v37  ;;  %v7093_v49 = vmul.f32 1.442695, %v7072_v33  ;;  %v7001_v30 = vpop.xlane.xlu1 %7000 }
 0x279   : > { %v7038_v23 = vmax.f32 %v7036_v47, %v7037_v35  ;;  %v7043_v42 = vmax.f32 %v7041_v51, %v7042_v4  ;;  %v7048_v18 = vmax.f32 %v7046_v8, %v7047_v63  ;;  %v7053_v1 = vmax.f32 %v7001_v30, %v7004_v7 }
 0x27a   : > { %v7127_v57 = vrot.slane %v7126_v24, 1  ;;  %9942 = vpow2.f32 %v7091_v36 }
 0x27b   : > { %9944 = vpow2.f32 %v7093_v49  ;;  %v7073_v60 = vsub.f32 %v6983_v38, %v7038_v23  ;;  %v7074_v53 = vsub.f32 %v10753_v29, %v7038_v23  ;;  %v7044_v34 = vrot.slane %v7043_v42, 1 }
 0x27c   : > { %v7049_v9 = vrot.slane %v7048_v18, 2  ;;  %v7054_v58 = vrot.slane %v7053_v1, 4  ;;  %v7128_v2 = vadd.f32 %v7127_v57, %v7126_v24 }
 0x27d   : > { %v7095_v31 = vmul.f32 1.442695, %v7073_v60  ;;  %v7097_v5 = vmul.f32 1.442695, %v7074_v53  ;;  %v7045_v17 = vmax.f32 %v7043_v42, %v7044_v34 }
 0x27e   : > { %v7050_v19 = vmax.f32 %v7048_v18, %v7049_v9  ;;  %v7055_v43 = vmax.f32 %v7053_v1, %v7054_v58  ;;  %9946 = vrcp.f32 %v7128_v2 }
 0x27f   : > { %9948 = vpow2.f32 %v7095_v31  ;;  %v7075_v51 = vsub.f32 %v6989_v25, %v7045_v17  ;;  %v7076_v47 = vsub.f32 %v10755_v41, %v7045_v17 }
 0x280   : > { %9950 = vpow2.f32 %v7097_v5  ;;  %v7051_v36 = vrot.slane %v7050_v19, 1  ;;  %v7056_v49 = vrot.slane %v7055_v43, 2 }
 0x281   : > { %v7099_v38 = vmul.f32 1.442695, %v7075_v51  ;;  %v7101_v8 = vmul.f32 1.442695, %v7076_v47 }
 0x282   : > { %v7052_v29 = vmax.f32 %v7050_v19, %v7051_v36  ;;  %v7057_v37 = vmax.f32 %v7055_v43, %v7056_v49 }
 0x283   : > { %v10770_v33 = vpop.eup %9938  ;;  %9952 = vpow2.f32 %v7099_v38 }
 0x284   : > { %v10772_v35 = vpop.eup %9940  ;;  %9954 = vpow2.f32 %v7101_v8  ;;  %v7077_v4 = vsub.f32 %v6995_v21, %v7052_v29  ;;  %v7078_v63 = vsub.f32 %v10764_v22, %v7052_v29  ;;  %v7058_v24 = vrot.slane %v7057_v37, 1 }
 0x285   : > { %v7115_v25 = vadd.f32 %v10772_v35, %v10770_v33 }
 0x286   : > { %v7103_v41 = vmul.f32 1.442695, %v7077_v4  ;;  %v7105_v23 = vmul.f32 1.442695, %v7078_v63  ;;  %v7059_v42 = vmax.f32 %v7057_v37, %v7058_v24 }
 0x287   : > { %v10777_v18 = vpop.eup %9942  ;;  %v7116_v1 = vrot.slane %v7115_v25, 4 }
 0x288   : > { %v10779_v57 = vpop.eup %9944  ;;  %9956 = vpow2.f32 %v7103_v41  ;;  %v7079_v60 = vsub.f32 %v7001_v30, %v7059_v42  ;;  %v7080_v53 = vsub.f32 %v7004_v7, %v7059_v42 }
 0x289   : > { %v7117_v34 = vadd.f32 %v7116_v1, %v7115_v25  ;;  %v7129_v21 = vadd.f32 %v10779_v57, %v10777_v18  ;;  %9958 = vpow2.f32 %v7105_v23 }
 0x28a   : > { %v7107_v22 = vmul.f32 1.442695, %v7079_v60  ;;  %v7109_v9 = vmul.f32 1.442695, %v7080_v53 }
 0x28b   : > { %v9947_v58 = vpop.eup %9946  ;;  %v7118_v2 = vrot.slane %v7117_v34, 2  ;;  %v7130_v31 = vrot.slane %v7129_v21, 4 }
 0x28c   : > { %v10783_v5 = vpop.eup %9948  ;;  %9960 = vpow2.f32 %v7107_v22  ;;  %v10786_v17 = vmul.f32 %v9947_v58, %v10760_v26  ;;  %v10789_v19 = vmul.f32 %v9947_v58, %v10758_v10 }
 0x28d   : > { %v10791_v7 = vpop.eup %9950  ;;  %v7119_v30 = vadd.f32 %v7118_v2, %v7117_v34  ;;  %v7131_v43 = vadd.f32 %v7130_v31, %v7129_v21  ;;  %9962 = vpow2.f32 %v7109_v9 }
 0x28e   : > { %12205 = vst [vmem:[#allocation55_spill] sm:$0xff] %v10786_v17  ;;  %12206 = vst [vmem:[#allocation56_spill] sm:$0xff] %v10789_v19  ;;  %v7136_v51 = vadd.f32 %v10791_v7, %v10783_v5 }
 0x28f   : > { %v7120_v47 = vrot.slane %v7119_v30, 1  ;;  %v7132_v36 = vrot.slane %v7131_v43, 2 }
 0x290   : > { %v10795_v49 = vpop.eup %9952  ;;  %v7137_v38 = vrot.slane %v7136_v51, 4 }
 0x291   : > { %v10797_v8 = vpop.eup %9954  ;;  %v7133_v26 = vadd.f32 %v7132_v36, %v7131_v43  ;;  %v7121_v29 = vadd.f32 %v7120_v47, %v7119_v30 }
 0x292   : > { %v7138_v37 = vadd.f32 %v7137_v38, %v7136_v51  ;;  %v7143_v10 = vadd.f32 %v10797_v8, %v10795_v49 }
 0x293   : > { %v7134_v4 = vrot.slane %v7133_v26, 1  ;;  %9964 = vrcp.f32 %v7121_v29 }
 0x294   : > { %v7139_v63 = vrot.slane %v7138_v37, 2  ;;  %v7144_v24 = vrot.slane %v7143_v10, 4 }
 0x295   : > { %v10801_v25 = vpop.eup %9956  ;;  %v7135_v41 = vadd.f32 %v7134_v4, %v7133_v26 }
 0x296   : > { %v9959_v23 = vpop.eup %9958  ;;  %v7140_v42 = vadd.f32 %v7139_v63, %v7138_v37  ;;  %v7145_v1 = vadd.f32 %v7144_v24, %v7143_v10 }
 0x297   : > { %v7150_v60 = vadd.f32 %v9959_v23, %v10801_v25  ;;  %9966 = vrcp.f32 %v7135_v41 }
 0x298   : > { %v7141_v53 = vrot.slane %v7140_v42, 1  ;;  %v7146_v34 = vrot.slane %v7145_v1, 2 }
 0x299   : > { %v9961_v21 = vpop.eup %9960  ;;  %v7151_v22 = vrot.slane %v7150_v60, 4 }
 0x29a   : > { %v9963_v9 = vpop.eup %9962  ;;  %v7147_v58 = vadd.f32 %v7146_v34, %v7145_v1  ;;  %v7142_v2 = vadd.f32 %v7141_v53, %v7140_v42 }
 0x29b   : > { %v7152_v31 = vadd.f32 %v7151_v22, %v7150_v60  ;;  %v7157_v30 = vadd.f32 %v9963_v9, %v9961_v21 }
 0x29c   : > { %v7148_v43 = vrot.slane %v7147_v58, 1  ;;  %9968 = vrcp.f32 %v7142_v2 }
 0x29d   : > { %v7153_v51 = vrot.slane %v7152_v31, 2  ;;  %v7158_v47 = vrot.slane %v7157_v30, 4  ;;  %v9221_v36 = vpop.f32.mrf.mxu1 }
 0x29e   : > { %v10805_v38 = vadd.f32 %v9221_v36, %v10456_v27  ;;  %v7149_v26 = vadd.f32 %v7148_v43, %v7147_v58 }
 0x29f   : > { %v7154_v29 = vadd.f32 %v7153_v51, %v7152_v31  ;;  %v7159_v37 = vadd.f32 %v7158_v47, %v7157_v30  ;;  %v719_v10 = vpop.f32.mrf.mxu1 }
 0x2a0   : > { %v9965_v4 = vpop.eup %9964  ;;  %v10808_v63 = vadd.f32 %v719_v10, %v10482_v46  ;;  %9327 = vmatprep.subr.mxu1 %v10805_v38  ;;  %9970 = vrcp.f32 %v7149_v26 }
 0x2a1   : > { %v7155_v24 = vrot.slane %v7154_v29, 1  ;;  %v7160_v41 = vrot.slane %v7159_v37, 2  ;;  %9328 = vmatpush3.msra.mxu1 %v10805_v38  ;;  %v10813_v42 = vmul.f32 %v9965_v4, %v10772_v35  ;;  %v10816_v27 = vmul.f32 %v9965_v4, %v10770_v33 }
 0x2a2   : > { %9329 = vmatprep.subr.mxu1 %v10808_v63 }
 0x2a3   : > { %12207 = vst [vmem:[#allocation57_spill] sm:$0xff] %v10813_v42  ;;  %v7161_v1 = vadd.f32 %v7160_v41, %v7159_v37  ;;  %9330 = vmatpush3.msra.mxu1 %v10808_v63  ;;  %v7156_v46 = vadd.f32 %v7155_v24, %v7154_v29 }
 0x2a4   : > { %v9967_v60 = vpop.eup %9966 }
 0x2a5   : > { %v7162_v53 = vrot.slane %v7161_v1, 1  ;;  %v9235_v34 = vpop.f32.mrf.mxu1  ;;  %v10821_v22 = vmul.f32 %v9967_v60, %v10779_v57  ;;  %v10824_v58 = vmul.f32 %v9967_v60, %v10777_v18  ;;  %9972 = vrcp.f32 %v7156_v46 }
 0x2a6   : > { %v10827_v35 = vadd.f32 %v9235_v34, %v10494_v20 }
 0x2a7   : > { %12208 = vst [vmem:[#allocation58_spill] sm:$0xff] %v10821_v22  ;;  %12209 = vst [vmem:[#allocation59_spill] sm:$0xff] %v10824_v58  ;;  %v7163_v33 = vadd.f32 %v7162_v53, %v7161_v1  ;;  %v905_v4 = vpop.f32.mrf.mxu1 }
 0x2a8   : > { %9341 = vmatprep.subr.mxu1 %v10827_v35 }
 0x2a9   : > { %v9969_v2 = vpop.eup %9968  ;;  %9974 = vrcp.f32 %v7163_v33 }
 0x2aa   : > { %v10831_v31 = vmul.f32 %v9969_v2, %v10791_v7  ;;  %v10834_v30 = vmul.f32 %v9969_v2, %v10783_v5 }
 0x2ac   : > { %12210 = vst [vmem:[#allocation60_spill] sm:$0xff] %v10831_v31  ;;  %12211 = vst [vmem:[#allocation61_spill] sm:$0xff] %v10834_v30 }
 0x2ad   : > { %v9971_v57 = vpop.eup %9970  ;;  %v9214_v43 = vpop.f32.mrf.mxu0 }
 0x2ae   : > { %v10837_v18 = vadd.f32 %v9214_v43, %v10381_v55  ;;  %v10840_v51 = vmul.f32 %v9971_v57, %v10797_v8  ;;  %v10843_v20 = vmul.f32 %v9971_v57, %v10795_v49  ;;  %v9249_v24 = vpop.f32.mrf.mxu1  ;;  %v10894_v57 = vadd.f32 %v905_v4, %v10511_v62 }
 0x2af   : > { %v626_v47 = vpop.f32.mrf.mxu0  ;;  %v10907_v43 = vadd.f32 %v9249_v24, %v10520_v0 }
 0x2b0   : > { %12212 = vst [vmem:[#allocation62_spill] sm:$0xff] %v10840_v51  ;;  %12213 = vst [vmem:[#allocation63_spill] sm:$0xff] %v10843_v20  ;;  %v10846_v36 = vadd.f32 %v626_v47, %v10462_v28  ;;  %9320 = vmatprep.subr.mxu0 %v10837_v18  ;;  %v1091_v1 = vpop.f32.mrf.mxu1 }
 0x2b1   : > { %9321 = vmatpush3.msra.mxu0 %v10837_v18 }
 0x2b2   : > { %v9973_v5 = vpop.eup %9972  ;;  %9322 = vmatprep.subr.mxu0 %v10846_v36 }
 0x2b3   : > { %9323 = vmatpush3.msra.mxu0 %v10846_v36  ;;  %v10852_v55 = vmul.f32 %v9973_v5, %v9959_v23  ;;  %v10855_v7 = vmul.f32 %v9973_v5, %v10801_v25 }
 0x2b5   : > { %12214 = vst [vmem:[#allocation64_spill] sm:$0xff] %v10852_v55  ;;  %12215 = vst [vmem:[#allocation65_spill] sm:$0xff] %v10855_v7  ;;  %v9228_v49 = vpop.f32.mrf.mxu0 }
 0x2b6   : > { %v9975_v8 = vpop.eup %9974  ;;  %v10858_v26 = vadd.f32 %v9228_v49, %v10468_v32  ;;  %v10925_v49 = vadd.f32 %v1091_v1, %v10536_v40 }
 0x2b7   : > { %v10860_v28 = vmul.f32 %v9975_v8, %v9963_v9  ;;  %v10862_v29 = vmul.f32 %v9975_v8, %v9961_v21  ;;  %v812_v37 = vpop.f32.mrf.mxu0 }
 0x2b8   : > { %9334 = vmatprep.subr.mxu0 %v10858_v26  ;;  %v10872_v21 = vadd.f32 %v812_v37, %v10564_v3 }
 0x2b9   : > { %12216 = vst [vmem:[#allocation66_spill] sm:$0xff] %v10860_v28  ;;  %12217 = vst [vmem:[#allocation67_spill] sm:$0xff] %v10862_v29 }
 0x2bd   : > { %v9242_v10 = vpop.f32.mrf.mxu0 }
 0x2be   : > { %v10880_v34 = vadd.f32 %v9242_v10, %v10580_v56 }
 0x2bf   : > { %v998_v23 = vpop.f32.mrf.mxu0 }
 0x2c0   : > { %v10901_v56 = vadd.f32 %v998_v23, %v10594_v45 }
 0x2c5   : > { %v9256_v41 = vpop.f32.mrf.mxu0 }
 0x2c6   : > { %v10914_v62 = vadd.f32 %v9256_v41, %v10609_v50 }
 0x2c7   : > { %v1184_v25 = vpop.f32.mrf.mxu0 }
 0x2c8   : > { %v10931_v50 = vadd.f32 %v1184_v25, %v10620_v13 }
 0x2c9   : > { %v9263_v46 = vpop.f32.mrf.mxu1 }
 0x2ca   : > { %v10865_v60 = vpop.f32.mrf.mxu0  ;;  %v10937_v8 = vadd.f32 %v9263_v46, %v10549_v54 }
 0x2cb   : > { %v1277_v53 = vpop.f32.mrf.mxu1 }
 0x2cc   : > { %v10867_v32 = vpop.f32.mrf.mxu0  ;;  %v10952_v54 = vadd.f32 %v1277_v53, %v10636_v48 }
 0x2cd   : > { %9324 = vmatprep.mubr.msk.f32.mxu0 %vm253_vm0, %v10867_v32 }
 0x2ce   : > { %9325 = vmatmul.mubr.msk.f32.vlgmr.msra.gmra.mxu0 %vm253_vm0, %v10865_v60 }
 0x2cf   : > { %v10876_v9 = vpop.f32.mrf.mxu1  ;;  %9335 = vmatpush3.msra.mxu0 %v10858_v26 }
 0x2d0   : > { %v10882_v33 = vpop.f32.mrf.mxu0  ;;  %9336 = vmatprep.subr.mxu0 %v10872_v21 }
 0x2d1   : > { %v10885_v2 = vpop.f32.mrf.mxu1  ;;  %9337 = vmatpush3.msra.mxu0 %v10872_v21 }
 0x2d2   : > { %v10888_v3 = vpop.f32.mrf.mxu0  ;;  %9331 = vmatprep.mubr.msk.f32.mxu1 %vm253_vm0, %v10885_v2  ;;  %9348 = vmatprep.subr.mxu0 %v10880_v34 }
 0x2d3   : > { %9338 = vmatprep.mubr.msk.f32.mxu0 %vm253_vm0, %v10888_v3  ;;  %9332 = vmatmul.mubr.msk.f32.vlgmr.msra.gmra.mxu1 %vm253_vm0, %v10876_v9 }
 0x2d4   : > { %9339 = vmatmul.mubr.msk.f32.vlgmr.msra.gmra.mxu0 %vm253_vm0, %v10882_v33  ;;  %9342 = vmatpush3.msra.mxu1 %v10827_v35 }
 0x2d5   : > { %v10909_v47 = vpop.f32.mrf.mxu1  ;;  %9349 = vmatpush3.msra.mxu0 %v10880_v34  ;;  %9343 = vmatprep.subr.mxu1 %v10894_v57 }
 0x2d6   : > { %v10916_v5 = vpop.f32.mrf.mxu0  ;;  %9350 = vmatprep.subr.mxu0 %v10901_v56  ;;  %9344 = vmatpush3.msra.mxu1 %v10894_v57 }
 0x2d7   : > { %v1585_v45 = vpop.f32.mrf.mxu1  ;;  %9351 = vmatpush3.msra.mxu0 %v10901_v56  ;;  %9355 = vmatprep.subr.mxu1 %v10907_v43 }
 0x2d8   : > { %v1662_v0 = vpop.f32.mrf.mxu0  ;;  %9345 = vmatprep.mubr.msk.f32.mxu1 %vm253_vm0, %v1585_v45  ;;  %9362 = vmatprep.subr.mxu0 %v10914_v62 }
 0x2d9   : > { %9352 = vmatprep.mubr.msk.f32.mxu0 %vm253_vm0, %v1662_v0  ;;  %9346 = vmatmul.mubr.msk.f32.vlgmr.msra.gmra.mxu1 %vm253_vm0, %v10909_v47 }
 0x2da   : > { %9353 = vmatmul.mubr.msk.f32.vlgmr.msra.gmra.mxu0 %vm253_vm0, %v10916_v5  ;;  %9356 = vmatpush3.msra.mxu1 %v10907_v43 }
 0x2db   : > { %v10939_v37 = vpop.f32.mrf.mxu1  ;;  %v10941_v40 = vpop.f32.mrf.mxu0  ;;  %9363 = vmatpush3.msra.mxu0 %v10914_v62  ;;  %9357 = vmatprep.subr.mxu1 %v10925_v49 }
 0x2dc   : > { %9364 = vmatprep.subr.mxu0 %v10931_v50  ;;  %9358 = vmatpush3.msra.mxu1 %v10925_v49 }
 0x2dd   : > { %v1739_v13 = vpop.f32.mrf.mxu1  ;;  %v1816_v10 = vpop.f32.mrf.mxu0  ;;  %9365 = vmatpush3.msra.mxu0 %v10931_v50  ;;  %9369 = vmatprep.subr.mxu1 %v10937_v8 }
 0x2de   : > { %9359 = vmatprep.mubr.msk.f32.mxu1 %vm253_vm0, %v1739_v13  ;;  %9366 = vmatprep.mubr.msk.f32.mxu0 %vm253_vm0, %v1816_v10 }
 0x2df   : > { %9376 = vmatprep.subr.mxu0 %v10865_v60  ;;  %v9319_v4 = vpop.f32.mrf.mxu1  ;;  %9360 = vmatmul.mubr.msk.f32.vlgmr.msra.gmra.mxu1 %vm253_vm0, %v10939_v37 }
 0x2e0   : > { %9367 = vmatmul.mubr.msk.f32.vlgmr.msra.gmra.mxu0 %vm253_vm0, %v10941_v40  ;;  %9370 = vmatpush3.msra.mxu1 %v10937_v8 }
 0x2e1   : > { %9377 = vmatpush3.msra.mxu0 %v10865_v60  ;;  %9371 = vmatprep.subr.mxu1 %v10952_v54  ;;  %v1893_v24 = vpop.f32.mrf.mxu1 }
 0x2e2   : > { %9378 = vmatprep.subr.mxu0 %v10867_v32  ;;  %9380 = vmatprep.mubr.msk.f32.mxu0 %vm253_vm0, %v10867_v32 }
 0x2e3   : > { %9372 = vmatpush3.msra.mxu1 %v10952_v54  ;;  %9379 = vmatpush3.msra.mxu0 %v10867_v32 }
 0x2e4   : > { %9373 = vmatprep.mubr.msk.f32.mxu1 %vm253_vm0, %v1893_v24  ;;  %9383 = vmatprep.subr.mxu1 %v10876_v9 }
 0x2e5   : > { %9390 = vmatprep.subr.mxu0 %v10882_v33  ;;  %9374 = vmatmul.mubr.msk.f32.vlgmr.msra.gmra.mxu1 %vm253_vm0, %v9319_v4 }
 0x2e6   : > { %9381 = vmatmul.mubr.msk.f32.vlgmr.msra.gmra.mxu0 %vm253_vm0, %v10865_v60  ;;  %9384 = vmatpush3.msra.mxu1 %v10876_v9 }
 0x2e7   : > { %9391 = vmatpush3.msra.mxu0 %v10882_v33  ;;  %9385 = vmatprep.subr.mxu1 %v10885_v2 }
 0x2e8   : > { %9387 = vmatprep.mubr.msk.f32.mxu1 %vm253_vm0, %v10885_v2  ;;  %9392 = vmatprep.subr.mxu0 %v10888_v3 }
 0x2e9   : > { %9394 = vmatprep.mubr.msk.f32.mxu0 %vm253_vm0, %v10888_v3  ;;  %9386 = vmatpush3.msra.mxu1 %v10885_v2 }
 0x2ea   : > { %9393 = vmatpush3.msra.mxu0 %v10888_v3  ;;  %9397 = vmatprep.subr.mxu1 %v10909_v47 }
 0x2eb   : > { %9404 = vmatprep.subr.mxu0 %v10916_v5  ;;  %9388 = vmatmul.mubr.msk.f32.vlgmr.msra.gmra.mxu1 %vm253_vm0, %v10876_v9 }
 0x2ec   : > { %9395 = vmatmul.mubr.msk.f32.vlgmr.msra.gmra.mxu0 %vm253_vm0, %v10882_v33  ;;  %9398 = vmatpush3.msra.mxu1 %v10909_v47 }
 0x2ed   : > { %9405 = vmatpush3.msra.mxu0 %v10916_v5  ;;  %9399 = vmatprep.subr.mxu1 %v1585_v45 }
 0x2ee   : > { %9401 = vmatprep.mubr.msk.f32.mxu1 %vm253_vm0, %v1585_v45  ;;  %9406 = vmatprep.subr.mxu0 %v1662_v0 }
 0x2ef   : > { %9408 = vmatprep.mubr.msk.f32.mxu0 %vm253_vm0, %v1662_v0  ;;  %9400 = vmatpush3.msra.mxu1 %v1585_v45 }
 0x2f0   : > { %9407 = vmatpush3.msra.mxu0 %v1662_v0  ;;  %9411 = vmatprep.subr.mxu1 %v10939_v37 }
 0x2f1   : > { %9418 = vmatprep.subr.mxu0 %v10941_v40  ;;  %9402 = vmatmul.mubr.msk.f32.vlgmr.msra.gmra.mxu1 %vm253_vm0, %v10909_v47 }
 0x2f2   : > { %9409 = vmatmul.mubr.msk.f32.vlgmr.msra.gmra.mxu0 %vm253_vm0, %v10916_v5  ;;  %9412 = vmatpush3.msra.mxu1 %v10939_v37 }
 0x2f3   : > { %9419 = vmatpush3.msra.mxu0 %v10941_v40  ;;  %9413 = vmatprep.subr.mxu1 %v1739_v13 }
 0x2f4   : > { %9415 = vmatprep.mubr.msk.f32.mxu1 %vm253_vm0, %v1739_v13  ;;  %9420 = vmatprep.subr.mxu0 %v1816_v10 }
 0x2f5   : > { %9422 = vmatprep.mubr.msk.f32.mxu0 %vm253_vm0, %v1816_v10  ;;  %9414 = vmatpush3.msra.mxu1 %v1739_v13 }
 0x2f6   : > { %9421 = vmatpush3.msra.mxu0 %v1816_v10  ;;  %9425 = vmatprep.subr.mxu1 %v9319_v4  ;;  %v12220_v10 = vld [vmem:[#allocation53_spill] sm:$0xff] }
 0x2f7   : > { %9416 = vmatmul.mubr.msk.f32.vlgmr.msra.gmra.mxu1 %vm253_vm0, %v10939_v37  ;;  %9423 = vmatmul.mubr.msk.f32.vlgmr.msra.gmra.mxu0 %vm253_vm0, %v10941_v40 }
 0x2f8   : > { %9426 = vmatpush3.msra.mxu1 %v9319_v4  ;;  %9429 = vmatprep.mubr.msk.f32.mxu1 %vm253_vm0, %v1893_v24 }
 0x2f9   : > { %9427 = vmatprep.subr.mxu1 %v1893_v24  ;;  %9432 = vmatprep.subr.mxu0 %v10708_v52 }
 0x2fa   : > { %9428 = vmatpush3.msra.mxu1 %v1893_v24  ;;  %9433 = vmatpush3.msra.mxu0 %v10708_v52 }
 0x2fb   : > { %9430 = vmatmul.mubr.msk.f32.vlgmr.msra.gmra.mxu1 %vm253_vm0, %v9319_v4  ;;  %9434 = vmatprep.subr.mxu0 %v10731_v16 }
 0x2fc   : > { %9435 = vmatpush3.msra.mxu0 %v10731_v16  ;;  %9439 = vmatprep.subr.mxu1 %v10720_v59 }
 0x2fd   : > { %9440 = vmatpush3.msra.mxu1 %v10720_v59  ;;  %9446 = vmatprep.subr.mxu0 %v10735_v44 }
 0x2fe   : > { %9441 = vmatprep.subr.mxu1 %v10725_v14 }
 0x2ff   : > { %9442 = vmatpush3.msra.mxu1 %v10725_v14 }
 0x300   : > { %9453 = vmatprep.subr.mxu1 %v10727_v6 }
 0x38e   : > { %v9326_v48 = vpop.f32.mrf.mxu0 }
 0x38f   : > { %v11111_v4 = vadd.f32 %v9326_v48, %v10837_v18  ;;  %v12222_v48 = vld [vmem:[#allocation54_spill] sm:$0xff] }
 0x390   : > { %v11019_v52 = vpop.f32.mrf.mxu0 }
 0x391   : > { %v11130_v18 = vadd.f32 %v11019_v52, %v10846_v36 }
 0x393   : > { %v11021_v23 = vpop.f32.mrf.mxu1 }
 0x394   : > { %v11023_v41 = vpop.f32.mrf.mxu0 }
 0x395   : > { %v11025_v16 = vpop.f32.mrf.mxu1  ;;  %v11148_v36 = vadd.f32 %v11023_v41, %v10858_v26 }
 0x396   : > { %v11027_v1 = vpop.f32.mrf.mxu0 }
 0x397   : > { %v11164_v26 = vadd.f32 %v11027_v1, %v10872_v21 }
 0x399   : > { %v11029_v59 = vpop.f32.mrf.mxu1 }
 0x39a   : > { %v11031_v25 = vpop.f32.mrf.mxu0 }
 0x39b   : > { %v11033_v46 = vpop.f32.mrf.mxu1  ;;  %v11180_v21 = vadd.f32 %v11031_v25, %v10880_v34 }
 0x39c   : > { %v11035_v14 = vpop.f32.mrf.mxu0 }
 0x39d   : > { %v11196_v34 = vadd.f32 %v11035_v14, %v10901_v56 }
 0x39f   : > { %v11037_v60 = vpop.f32.mrf.mxu1 }
 0x3a0   : > { %v11039_v53 = vpop.f32.mrf.mxu0 }
 0x3a1   : > { %v11041_v32 = vpop.f32.mrf.mxu1  ;;  %v11212_v56 = vadd.f32 %v11039_v53, %v10914_v62 }
 0x3a2   : > { %v11043_v9 = vpop.f32.mrf.mxu0 }
 0x3a3   : > { %v11228_v62 = vadd.f32 %v11043_v9, %v10931_v50 }
 0x3a5   : > { %v11045_v33 = vpop.f32.mrf.mxu1 }
 0x3a6   : > { %v11047_v2 = vpop.f32.mrf.mxu0 }
 0x3a7   : > { %v11049_v3 = vpop.f32.mrf.mxu1 }
 0x3a8   : > { %v11051_v47 = vpop.f32.mrf.mxu0  ;;  %v11249_v50 = vadd.f32 %v11049_v3, %v10952_v54 }
 0x3a9   : > { %9436 = vmatprep.mubr.msk.f32.mxu0 %vm253_vm0, %v11051_v47 }
 0x3aa   : > { %9437 = vmatmul.mubr.msk.f32.vlgmr.msra.gmra.mxu0 %vm253_vm0, %v11047_v2 }
 0x3ab   : > { %v11057_v5 = vpop.f32.mrf.mxu1  ;;  %9447 = vmatpush3.msra.mxu0 %v10735_v44 }
 0x3ac   : > { %v11060_v45 = vpop.f32.mrf.mxu0  ;;  %9448 = vmatprep.subr.mxu0 %v10739_v61 }
 0x3ad   : > { %v11063_v0 = vpop.f32.mrf.mxu1  ;;  %9449 = vmatpush3.msra.mxu0 %v10739_v61 }
 0x3ae   : > { %v11066_v37 = vpop.f32.mrf.mxu0  ;;  %9443 = vmatprep.mubr.msk.f32.mxu1 %vm253_vm0, %v11063_v0  ;;  %9460 = vmatprep.subr.mxu0 %v10743_v15 }
 0x3af   : > { %9450 = vmatprep.mubr.msk.f32.mxu0 %vm253_vm0, %v11066_v37  ;;  %9444 = vmatmul.mubr.msk.f32.vlgmr.msra.gmra.mxu1 %vm253_vm0, %v11057_v5 }
 0x3b0   : > { %9451 = vmatmul.mubr.msk.f32.vlgmr.msra.gmra.mxu0 %vm253_vm0, %v11060_v45  ;;  %9454 = vmatpush3.msra.mxu1 %v10727_v6  ;;  %v12218_v6 = vld [vmem:[#allocation52_spill] sm:$0xff] }
 0x3b1   : > { %v11078_v44 = vpop.f32.mrf.mxu1  ;;  %9461 = vmatpush3.msra.mxu0 %v10743_v15  ;;  %9455 = vmatprep.subr.mxu1 %v10729_v11 }
 0x3b2   : > { %v11082_v61 = vpop.f32.mrf.mxu0  ;;  %9462 = vmatprep.subr.mxu0 %v10745_v12  ;;  %9456 = vmatpush3.msra.mxu1 %v10729_v11 }
 0x3b3   : > { %v11086_v40 = vpop.f32.mrf.mxu1  ;;  %9463 = vmatpush3.msra.mxu0 %v10745_v12  ;;  %9467 = vmatprep.subr.mxu1 %v10733_v39  ;;  %v12219_v12 = vld [vmem:[#allocation50_spill] sm:$0xff] }
 0x3b4   : > { %v11090_v13 = vpop.f32.mrf.mxu0  ;;  %9457 = vmatprep.mubr.msk.f32.mxu1 %vm253_vm0, %v11086_v40  ;;  %9474 = vmatprep.subr.mxu0 %v12218_v6 }
 0x3b5   : > { %9464 = vmatprep.mubr.msk.f32.mxu0 %vm253_vm0, %v11090_v13  ;;  %9458 = vmatmul.mubr.msk.f32.vlgmr.msra.gmra.mxu1 %vm253_vm0, %v11078_v44 }
 0x3b6   : > { %9465 = vmatmul.mubr.msk.f32.vlgmr.msra.gmra.mxu0 %vm253_vm0, %v11082_v61  ;;  %9468 = vmatpush3.msra.mxu1 %v10733_v39  ;;  %v12221_v39 = vld [vmem:[#allocation51_spill] sm:$0xff] }
 0x3b7   : > { %v11102_v11 = vpop.f32.mrf.mxu1  ;;  %v11104_v15 = vpop.f32.mrf.mxu0  ;;  %9475 = vmatpush3.msra.mxu0 %v12218_v6  ;;  %9469 = vmatprep.subr.mxu1 %v12219_v12 }
 0x3b8   : > { %9476 = vmatprep.subr.mxu0 %v12220_v10  ;;  %9470 = vmatpush3.msra.mxu1 %v12219_v12 }
 0x3b9   : > { %v11113_v24 = vpop.f32.mrf.mxu1  ;;  %v11115_v28 = vpop.f32.mrf.mxu0  ;;  %9477 = vmatpush3.msra.mxu0 %v12220_v10  ;;  %9481 = vmatprep.subr.mxu1 %v12221_v39  ;;  %v11141_v10 = vadd.f32 %v11021_v23, %v10805_v38  ;;  %v11157_v38 = vadd.f32 %v11025_v16, %v10808_v63  ;;  %v11173_v63 = vadd.f32 %v11029_v59, %v10827_v35 }
 0x3ba   : > { %9471 = vmatprep.mubr.msk.f32.mxu1 %vm253_vm0, %v11113_v24  ;;  %9478 = vmatprep.mubr.msk.f32.mxu0 %vm253_vm0, %v11115_v28  ;;  %v11189_v35 = vadd.f32 %v11033_v46, %v10894_v57  ;;  %v11205_v57 = vadd.f32 %v11037_v60, %v10907_v43  ;;  %v11221_v43 = vadd.f32 %v11041_v32, %v10925_v49 }
 0x3bb   : > { %9488 = vmatprep.subr.mxu0 %v11111_v4  ;;  %v11124_v6 = vpop.f32.mrf.mxu1  ;;  %9472 = vmatmul.mubr.msk.f32.vlgmr.msra.gmra.mxu1 %vm253_vm0, %v11102_v11  ;;  %v11237_v49 = vadd.f32 %v11045_v33, %v10937_v8 }
 0x3bc   : > { %9479 = vmatmul.mubr.msk.f32.vlgmr.msra.gmra.mxu0 %vm253_vm0, %v11104_v15  ;;  %9482 = vmatpush3.msra.mxu1 %v12221_v39 }
 0x3bd   : > { %9489 = vmatpush3.msra.mxu0 %v11111_v4  ;;  %9483 = vmatprep.subr.mxu1 %v12222_v48  ;;  %v11137_v12 = vpop.f32.mrf.mxu1 }
 0x3be   : > { %9490 = vmatprep.subr.mxu0 %v11130_v18  ;;  %9492 = vmatprep.mubr.msk.f32.mxu0 %vm253_vm0, %v11051_v47 }
 0x3bf   : > { %9484 = vmatpush3.msra.mxu1 %v12222_v48  ;;  %9491 = vmatpush3.msra.mxu0 %v11130_v18 }
 0x3c0   : > { %9485 = vmatprep.mubr.msk.f32.mxu1 %vm253_vm0, %v11137_v12  ;;  %9495 = vmatprep.subr.mxu1 %v11141_v10 }
 0x3c1   : > { %9502 = vmatprep.subr.mxu0 %v11148_v36  ;;  %9486 = vmatmul.mubr.msk.f32.vlgmr.msra.gmra.mxu1 %vm253_vm0, %v11124_v6 }
 0x3c2   : > { %9493 = vmatmul.mubr.msk.f32.vlgmr.msra.gmra.mxu0 %vm253_vm0, %v11047_v2  ;;  %9496 = vmatpush3.msra.mxu1 %v11141_v10 }
 0x3c3   : > { %9503 = vmatpush3.msra.mxu0 %v11148_v36  ;;  %9497 = vmatprep.subr.mxu1 %v11157_v38 }
 0x3c4   : > { %9499 = vmatprep.mubr.msk.f32.mxu1 %vm253_vm0, %v11063_v0  ;;  %9504 = vmatprep.subr.mxu0 %v11164_v26 }
 0x3c5   : > { %9506 = vmatprep.mubr.msk.f32.mxu0 %vm253_vm0, %v11066_v37  ;;  %9498 = vmatpush3.msra.mxu1 %v11157_v38 }
 0x3c6   : > { %9505 = vmatpush3.msra.mxu0 %v11164_v26  ;;  %9509 = vmatprep.subr.mxu1 %v11173_v63 }
 0x3c7   : > { %9516 = vmatprep.subr.mxu0 %v11180_v21  ;;  %9500 = vmatmul.mubr.msk.f32.vlgmr.msra.gmra.mxu1 %vm253_vm0, %v11057_v5 }
 0x3c8   : > { %9507 = vmatmul.mubr.msk.f32.vlgmr.msra.gmra.mxu0 %vm253_vm0, %v11060_v45  ;;  %9510 = vmatpush3.msra.mxu1 %v11173_v63 }
 0x3c9   : > { %9517 = vmatpush3.msra.mxu0 %v11180_v21  ;;  %9511 = vmatprep.subr.mxu1 %v11189_v35 }
 0x3ca   : > { %9513 = vmatprep.mubr.msk.f32.mxu1 %vm253_vm0, %v11086_v40  ;;  %9518 = vmatprep.subr.mxu0 %v11196_v34 }
 0x3cb   : > { %9520 = vmatprep.mubr.msk.f32.mxu0 %vm253_vm0, %v11090_v13  ;;  %9512 = vmatpush3.msra.mxu1 %v11189_v35 }
 0x3cc   : > { %9519 = vmatpush3.msra.mxu0 %v11196_v34  ;;  %9523 = vmatprep.subr.mxu1 %v11205_v57 }
 0x3cd   : > { %9530 = vmatprep.subr.mxu0 %v11212_v56  ;;  %9514 = vmatmul.mubr.msk.f32.vlgmr.msra.gmra.mxu1 %vm253_vm0, %v11078_v44 }
 0x3ce   : > { %9521 = vmatmul.mubr.msk.f32.vlgmr.msra.gmra.mxu0 %vm253_vm0, %v11082_v61  ;;  %9524 = vmatpush3.msra.mxu1 %v11205_v57 }
 0x3cf   : > { %9531 = vmatpush3.msra.mxu0 %v11212_v56  ;;  %9525 = vmatprep.subr.mxu1 %v11221_v43 }
 0x3d0   : > { %9527 = vmatprep.mubr.msk.f32.mxu1 %vm253_vm0, %v11113_v24  ;;  %9532 = vmatprep.subr.mxu0 %v11228_v62 }
 0x3d1   : > { %9534 = vmatprep.mubr.msk.f32.mxu0 %vm253_vm0, %v11115_v28  ;;  %9526 = vmatpush3.msra.mxu1 %v11221_v43 }
 0x3d2   : > { %9533 = vmatpush3.msra.mxu0 %v11228_v62  ;;  %9537 = vmatprep.subr.mxu1 %v11237_v49 }
 0x3d3   : > { %9544 = vmatprep.subr.mxu0 %v11047_v2  ;;  %9528 = vmatmul.mubr.msk.f32.vlgmr.msra.gmra.mxu1 %vm253_vm0, %v11102_v11 }
 0x3d4   : > { %9535 = vmatmul.mubr.msk.f32.vlgmr.msra.gmra.mxu0 %vm253_vm0, %v11104_v15  ;;  %9538 = vmatpush3.msra.mxu1 %v11237_v49 }
 0x3d5   : > { %9545 = vmatpush3.msra.mxu0 %v11047_v2  ;;  %9539 = vmatprep.subr.mxu1 %v11249_v50 }
 0x3d6   : > { %9541 = vmatprep.mubr.msk.f32.mxu1 %vm253_vm0, %v11137_v12  ;;  %9546 = vmatprep.subr.mxu0 %v11051_v47 }
 0x3d7   : > { %9548 = vmatprep.mubr.msk.f32.mxu0 %vm253_vm0, %v11051_v47  ;;  %9540 = vmatpush3.msra.mxu1 %v11249_v50 }
 0x3d8   : > { %9547 = vmatpush3.msra.mxu0 %v11051_v47  ;;  %9551 = vmatprep.subr.mxu1 %v11057_v5 }
 0x3d9   : > { %9558 = vmatprep.subr.mxu0 %v11060_v45  ;;  %9542 = vmatmul.mubr.msk.f32.vlgmr.msra.gmra.mxu1 %vm253_vm0, %v11124_v6 }
 0x3da   : > { %9549 = vmatmul.mubr.msk.f32.vlgmr.msra.gmra.mxu0 %vm253_vm0, %v11047_v2  ;;  %9552 = vmatpush3.msra.mxu1 %v11057_v5 }
 0x3db   : > { %9559 = vmatpush3.msra.mxu0 %v11060_v45  ;;  %9553 = vmatprep.subr.mxu1 %v11063_v0 }
 0x3dc   : > { %9555 = vmatprep.mubr.msk.f32.mxu1 %vm253_vm0, %v11063_v0  ;;  %9560 = vmatprep.subr.mxu0 %v11066_v37 }
 0x3dd   : > { %9562 = vmatprep.mubr.msk.f32.mxu0 %vm253_vm0, %v11066_v37  ;;  %9554 = vmatpush3.msra.mxu1 %v11063_v0 }
 0x3de   : > { %9561 = vmatpush3.msra.mxu0 %v11066_v37  ;;  %9565 = vmatprep.subr.mxu1 %v11078_v44 }
 0x3df   : > { %9572 = vmatprep.subr.mxu0 %v11082_v61  ;;  %9556 = vmatmul.mubr.msk.f32.vlgmr.msra.gmra.mxu1 %vm253_vm0, %v11057_v5 }
 0x3e0   : > { %9563 = vmatmul.mubr.msk.f32.vlgmr.msra.gmra.mxu0 %vm253_vm0, %v11060_v45  ;;  %9566 = vmatpush3.msra.mxu1 %v11078_v44 }
 0x3e1   : > { %9573 = vmatpush3.msra.mxu0 %v11082_v61  ;;  %9567 = vmatprep.subr.mxu1 %v11086_v40 }
 0x3e2   : > { %9569 = vmatprep.mubr.msk.f32.mxu1 %vm253_vm0, %v11086_v40  ;;  %9574 = vmatprep.subr.mxu0 %v11090_v13 }
 0x3e3   : > { %9576 = vmatprep.mubr.msk.f32.mxu0 %vm253_vm0, %v11090_v13  ;;  %9568 = vmatpush3.msra.mxu1 %v11086_v40 }
 0x3e4   : > { %9575 = vmatpush3.msra.mxu0 %v11090_v13  ;;  %9579 = vmatprep.subr.mxu1 %v11102_v11 }
 0x3e5   : > { %9586 = vmatprep.subr.mxu0 %v11104_v15  ;;  %9570 = vmatmul.mubr.msk.f32.vlgmr.msra.gmra.mxu1 %vm253_vm0, %v11078_v44 }
 0x3e6   : > { %9577 = vmatmul.mubr.msk.f32.vlgmr.msra.gmra.mxu0 %vm253_vm0, %v11082_v61  ;;  %9580 = vmatpush3.msra.mxu1 %v11102_v11 }
 0x3e7   : > { %9587 = vmatpush3.msra.mxu0 %v11104_v15  ;;  %9581 = vmatprep.subr.mxu1 %v11113_v24 }
 0x3e8   : > { %9583 = vmatprep.mubr.msk.f32.mxu1 %vm253_vm0, %v11113_v24  ;;  %9588 = vmatprep.subr.mxu0 %v11115_v28 }
 0x3e9   : > { %9590 = vmatprep.mubr.msk.f32.mxu0 %vm253_vm0, %v11115_v28  ;;  %9582 = vmatpush3.msra.mxu1 %v11113_v24 }
 0x3ea   : > { %9589 = vmatpush3.msra.mxu0 %v11115_v28  ;;  %9593 = vmatprep.subr.mxu1 %v11124_v6 }
 0x3eb   : > { %9584 = vmatmul.mubr.msk.f32.vlgmr.msra.gmra.mxu1 %vm253_vm0, %v11102_v11  ;;  %9591 = vmatmul.mubr.msk.f32.vlgmr.msra.gmra.mxu0 %vm253_vm0, %v11104_v15 }
 0x3ec   : > { %9594 = vmatpush3.msra.mxu1 %v11124_v6  ;;  %9597 = vmatprep.mubr.msk.f32.mxu1 %vm253_vm0, %v11137_v12 }
 0x3ed   : > { %9595 = vmatprep.subr.mxu1 %v11137_v12 }
 0x3ee   : > { %9596 = vmatpush3.msra.mxu1 %v11137_v12 }
 0x3ef   : > { %9598 = vmatmul.mubr.msk.f32.vlgmr.msra.gmra.mxu1 %vm253_vm0, %v11124_v6 }
 0x46a   : > { %v11326_v28 = vpop.f32.mrf.mxu0 }
 0x46c   : > { %v11328_v8 = vpop.f32.mrf.mxu0 }
 0x46f   : > { %v11330_v54 = vpop.f32.mrf.mxu1 }
 0x470   : > { %v11332_v52 = vpop.f32.mrf.mxu0 }
 0x471   : > { %v11334_v23 = vpop.f32.mrf.mxu1 }
 0x472   : > { %v11336_v41 = vpop.f32.mrf.mxu0 }
 0x475   : > { %v11338_v16 = vpop.f32.mrf.mxu1 }
 0x476   : > { %v11340_v1 = vpop.f32.mrf.mxu0 }
 0x477   : > { %v11342_v59 = vpop.f32.mrf.mxu1 }
 0x478   : > { %v11344_v25 = vpop.f32.mrf.mxu0 }
 0x47b   : > { %v11346_v46 = vpop.f32.mrf.mxu1 }
 0x47c   : > { %v11348_v14 = vpop.f32.mrf.mxu0 }
 0x47d   : > { %v11350_v60 = vpop.f32.mrf.mxu1 }
 0x47e   : > { %v11352_v53 = vpop.f32.mrf.mxu0 }
 0x481   : > { %v11354_v32 = vpop.f32.mrf.mxu1 }
 0x482   : > { %v9494_v9 = vpop.f32.mrf.mxu0 }
 0x483   : > { %v11357_v33 = vadd.f32 %v9494_v9, %v11111_v4  ;;  %v11359_v2 = vpop.f32.mrf.mxu1 }
 0x484   : > { %v3912_v3 = vpop.f32.mrf.mxu0 }
 0x485   : > { %v11362_v47 = vadd.f32 %v3912_v3, %v11130_v18  ;;  %9600 = vmatprep.subr.mxu0 %v11357_v33 }
 0x486   : > { %9601 = vmatpush3.msra.mxu0 %v11357_v33 }
 0x487   : > { %v9501_v5 = vpop.f32.mrf.mxu1  ;;  %9602 = vmatprep.subr.mxu0 %v11362_v47 }
 0x488   : > { %v11368_v45 = vadd.f32 %v9501_v5, %v11141_v10  ;;  %v9508_v0 = vpop.f32.mrf.mxu0  ;;  %9603 = vmatpush3.msra.mxu0 %v11362_v47 }
 0x489   : > { %v11372_v37 = vadd.f32 %v9508_v0, %v11148_v36  ;;  %v3987_v44 = vpop.f32.mrf.mxu1 }
 0x48a   : > { %v11375_v61 = vadd.f32 %v3987_v44, %v11157_v38  ;;  %v4062_v40 = vpop.f32.mrf.mxu0  ;;  %9607 = vmatprep.subr.mxu1 %v11368_v45 }
 0x48b   : > { %9614 = vmatprep.subr.mxu0 %v11372_v37  ;;  %9608 = vmatpush3.msra.mxu1 %v11368_v45 }
 0x48c   : > { %9609 = vmatprep.subr.mxu1 %v11375_v61 }
 0x48d   : > { %v9515_v13 = vpop.f32.mrf.mxu1  ;;  %9610 = vmatpush3.msra.mxu1 %v11375_v61 }
 0x48e   : > { %v11383_v11 = vadd.f32 %v9515_v13, %v11173_v63  ;;  %v9522_v15 = vpop.f32.mrf.mxu0  ;;  %v11393_v13 = vadd.f32 %v4062_v40, %v11164_v26 }
 0x48f   : > { %v4137_v24 = vpop.f32.mrf.mxu1  ;;  %v11401_v55 = vadd.f32 %v9522_v15, %v11180_v21 }
 0x490   : > { %v4212_v39 = vpop.f32.mrf.mxu0  ;;  %9621 = vmatprep.subr.mxu1 %v11383_v11  ;;  %v11415_v20 = vadd.f32 %v4137_v24, %v11189_v35 }
 0x491   : > { %v11422_v15 = vadd.f32 %v4212_v39, %v11196_v34 }
 0x493   : > { %v9529_v6 = vpop.f32.mrf.mxu1 }
 0x494   : > { %v9536_v48 = vpop.f32.mrf.mxu0  ;;  %v11428_v31 = vadd.f32 %v9529_v6, %v11205_v57 }
 0x495   : > { %v4287_v12 = vpop.f32.mrf.mxu1  ;;  %v11435_v24 = vadd.f32 %v9536_v48, %v11212_v56 }
 0x496   : > { %v4362_v9 = vpop.f32.mrf.mxu0  ;;  %12223 = vst [vmem:[#allocation52_spill] sm:$0xff] %v11428_v31  ;;  %v11446_v58 = vadd.f32 %v4287_v12, %v11221_v43 }
 0x497   : > { %12224 = vst [vmem:[#allocation50_spill] sm:$0xff] %v11435_v24  ;;  %v11452_v48 = vadd.f32 %v4362_v9, %v11228_v62 }
 0x499   : > { %v9543_v3 = vpop.f32.mrf.mxu1 }
 0x49a   : > { %v11386_v5 = vpop.f32.mrf.mxu0  ;;  %v11458_v17 = vadd.f32 %v9543_v3, %v11237_v49 }
 0x49b   : > { %v4437_v0 = vpop.f32.mrf.mxu1 }
 0x49c   : > { %v11388_v44 = vpop.f32.mrf.mxu0  ;;  %v11473_v3 = vadd.f32 %v4437_v0, %v11249_v50 }
 0x49d   : > { %9604 = vmatprep.mubr.msk.f32.mxu0 %vm253_vm0, %v11388_v44 }
 0x49e   : > { %9605 = vmatmul.mubr.msk.f32.vlgmr.msra.gmra.mxu0 %vm253_vm0, %v11386_v5 }
 0x49f   : > { %v11397_v29 = vpop.f32.mrf.mxu1  ;;  %9615 = vmatpush3.msra.mxu0 %v11372_v37 }
 0x4a0   : > { %v11403_v7 = vpop.f32.mrf.mxu0  ;;  %9616 = vmatprep.subr.mxu0 %v11393_v13 }
 0x4a1   : > { %v11406_v51 = vpop.f32.mrf.mxu1  ;;  %9617 = vmatpush3.msra.mxu0 %v11393_v13 }
 0x4a2   : > { %v11409_v40 = vpop.f32.mrf.mxu0  ;;  %9611 = vmatprep.mubr.msk.f32.mxu1 %vm253_vm0, %v11406_v51  ;;  %9628 = vmatprep.subr.mxu0 %v11401_v55 }
 0x4a3   : > { %9618 = vmatprep.mubr.msk.f32.mxu0 %vm253_vm0, %v11409_v40  ;;  %9612 = vmatmul.mubr.msk.f32.vlgmr.msra.gmra.mxu1 %vm253_vm0, %v11397_v29 }
 0x4a4   : > { %9619 = vmatmul.mubr.msk.f32.vlgmr.msra.gmra.mxu0 %vm253_vm0, %v11403_v7  ;;  %9622 = vmatpush3.msra.mxu1 %v11383_v11 }
 0x4a5   : > { %v11430_v30 = vpop.f32.mrf.mxu1  ;;  %9629 = vmatpush3.msra.mxu0 %v11401_v55  ;;  %9623 = vmatprep.subr.mxu1 %v11415_v20 }
 0x4a6   : > { %v11437_v22 = vpop.f32.mrf.mxu0  ;;  %9630 = vmatprep.subr.mxu0 %v11422_v15  ;;  %9624 = vmatpush3.msra.mxu1 %v11415_v20 }
 0x4a7   : > { %v4737_v39 = vpop.f32.mrf.mxu1  ;;  %9631 = vmatpush3.msra.mxu0 %v11422_v15  ;;  %9635 = vmatprep.subr.mxu1 %v11428_v31 }
 0x4a8   : > { %v4812_v6 = vpop.f32.mrf.mxu0  ;;  %9625 = vmatprep.mubr.msk.f32.mxu1 %vm253_vm0, %v4737_v39  ;;  %9642 = vmatprep.subr.mxu0 %v11435_v24 }
 0x4a9   : > { %9632 = vmatprep.mubr.msk.f32.mxu0 %vm253_vm0, %v4812_v6  ;;  %9626 = vmatmul.mubr.msk.f32.vlgmr.msra.gmra.mxu1 %vm253_vm0, %v11430_v30 }
 0x4aa   : > { %9633 = vmatmul.mubr.msk.f32.vlgmr.msra.gmra.mxu0 %vm253_vm0, %v11437_v22  ;;  %9636 = vmatpush3.msra.mxu1 %v11428_v31 }
 0x4ab   : > { %v11460_v19 = vpop.f32.mrf.mxu1  ;;  %v11462_v12 = vpop.f32.mrf.mxu0  ;;  %9643 = vmatpush3.msra.mxu0 %v11435_v24  ;;  %9637 = vmatprep.subr.mxu1 %v11446_v58 }
 0x4ac   : > { %9644 = vmatprep.subr.mxu0 %v11452_v48  ;;  %9638 = vmatpush3.msra.mxu1 %v11446_v58 }
 0x4ad   : > { %v4887_v9 = vpop.f32.mrf.mxu1  ;;  %v4962_v42 = vpop.f32.mrf.mxu0  ;;  %9645 = vmatpush3.msra.mxu0 %v11452_v48  ;;  %9649 = vmatprep.subr.mxu1 %v11458_v17 }
 0x4ae   : > { %9639 = vmatprep.mubr.msk.f32.mxu1 %vm253_vm0, %v4887_v9  ;;  %9646 = vmatprep.mubr.msk.f32.mxu0 %vm253_vm0, %v4962_v42 }
 0x4af   : > { %9656 = vmatprep.subr.mxu0 %v11386_v5  ;;  %v11476_v24 = vpop.f32.mrf.mxu1  ;;  %9640 = vmatmul.mubr.msk.f32.vlgmr.msra.gmra.mxu1 %vm253_vm0, %v11460_v19 }
 0x4b0   : > { %9647 = vmatmul.mubr.msk.f32.vlgmr.msra.gmra.mxu0 %vm253_vm0, %v11462_v12  ;;  %9650 = vmatpush3.msra.mxu1 %v11458_v17 }
 0x4b1   : > { %9657 = vmatpush3.msra.mxu0 %v11386_v5  ;;  %9651 = vmatprep.subr.mxu1 %v11473_v3  ;;  %v5037_v31 = vpop.f32.mrf.mxu1 }
 0x4b2   : > { %9658 = vmatprep.subr.mxu0 %v11388_v44  ;;  %9660 = vmatprep.mubr.msk.f32.mxu0 %vm253_vm0, %v11388_v44 }
 0x4b3   : > { %9652 = vmatpush3.msra.mxu1 %v11473_v3  ;;  %9659 = vmatpush3.msra.mxu0 %v11388_v44 }
 0x4b4   : > { %9653 = vmatprep.mubr.msk.f32.mxu1 %vm253_vm0, %v5037_v31  ;;  %9663 = vmatprep.subr.mxu1 %v11397_v29 }
 0x4b5   : > { %9670 = vmatprep.subr.mxu0 %v11403_v7  ;;  %9654 = vmatmul.mubr.msk.f32.vlgmr.msra.gmra.mxu1 %vm253_vm0, %v11476_v24 }
 0x4b6   : > { %9661 = vmatmul.mubr.msk.f32.vlgmr.msra.gmra.mxu0 %vm253_vm0, %v11386_v5  ;;  %9664 = vmatpush3.msra.mxu1 %v11397_v29 }
 0x4b7   : > { %9671 = vmatpush3.msra.mxu0 %v11403_v7  ;;  %9665 = vmatprep.subr.mxu1 %v11406_v51 }
 0x4b8   : > { %9667 = vmatprep.mubr.msk.f32.mxu1 %vm253_vm0, %v11406_v51  ;;  %9672 = vmatprep.subr.mxu0 %v11409_v40 }
 0x4b9   : > { %9674 = vmatprep.mubr.msk.f32.mxu0 %vm253_vm0, %v11409_v40  ;;  %9666 = vmatpush3.msra.mxu1 %v11406_v51  ;;  %v3234_v51 = vadd.f32 %v11326_v28, %v11111_v4  ;;  %v11565_v4 = vld [vmem:[%s12079_s1 + $0x8] sm:$0xff] }
 0x4ba   : > { %9673 = vmatpush3.msra.mxu0 %v11409_v40  ;;  %9677 = vmatprep.subr.mxu1 %v11430_v30 }
 0x4bb   : > { %9684 = vmatprep.subr.mxu0 %v11437_v22  ;;  %9668 = vmatmul.mubr.msk.f32.vlgmr.msra.gmra.mxu1 %vm253_vm0, %v11397_v29  ;;  %v11556_v29 = vld [vmem:[%s12079_s1 + $0x10] sm:$0xff] }
 0x4bc   : > { %9675 = vmatmul.mubr.msk.f32.vlgmr.msra.gmra.mxu0 %vm253_vm0, %v11403_v7  ;;  %9678 = vmatpush3.msra.mxu1 %v11430_v30  ;;  %v3495_v7 = vadd.f32 %v11338_v16, %v11173_v63 }
 0x4bd   : > { %9685 = vmatpush3.msra.mxu0 %v11437_v22  ;;  %9679 = vmatprep.subr.mxu1 %v4737_v39 }
 0x4be   : > { %9681 = vmatprep.mubr.msk.f32.mxu1 %vm253_vm0, %v4737_v39  ;;  %9686 = vmatprep.subr.mxu0 %v4812_v6 }
 0x4bf   : > { %9688 = vmatprep.mubr.msk.f32.mxu0 %vm253_vm0, %v4812_v6  ;;  %9680 = vmatpush3.msra.mxu1 %v4737_v39 }
 0x4c0   : > { %9687 = vmatpush3.msra.mxu0 %v4812_v6  ;;  %9691 = vmatprep.subr.mxu1 %v11460_v19 }
 0x4c1   : > { %9698 = vmatprep.subr.mxu0 %v11462_v12  ;;  %9682 = vmatmul.mubr.msk.f32.vlgmr.msra.gmra.mxu1 %vm253_vm0, %v11430_v30  ;;  %v3321_v30 = vadd.f32 %v11330_v54, %v11141_v10 }
 0x4c2   : > { %9689 = vmatmul.mubr.msk.f32.vlgmr.msra.gmra.mxu0 %vm253_vm0, %v11437_v22  ;;  %9692 = vmatpush3.msra.mxu1 %v11460_v19  ;;  %v3229_v22 = vadd.f32 %v11328_v8, %v11130_v18  ;;  %v11572_v18 = vld [vmem:[%s12079_s1] sm:$0xff] }
 0x4c3   : > { %9699 = vmatpush3.msra.mxu0 %v11462_v12  ;;  %9693 = vmatprep.subr.mxu1 %v4887_v9 }
 0x4c4   : > { %9695 = vmatprep.mubr.msk.f32.mxu1 %vm253_vm0, %v4887_v9  ;;  %9700 = vmatprep.subr.mxu0 %v4962_v42 }
 0x4c5   : > { %9702 = vmatprep.mubr.msk.f32.mxu0 %vm253_vm0, %v4962_v42  ;;  %9694 = vmatpush3.msra.mxu1 %v4887_v9  ;;  %v3403_v9 = vadd.f32 %v11336_v41, %v11164_v26  ;;  %v3577_v26 = vadd.f32 %v11344_v25, %v11196_v34  ;;  %v3664_v34 = vadd.f32 %v11350_v60, %v11221_v43  ;;  %v12226_v60 = vld [vmem:[#allocation42_spill] sm:$0xff] }
 0x4c6   : > { %9701 = vmatpush3.msra.mxu0 %v4962_v42  ;;  %9705 = vmatprep.subr.mxu1 %v11476_v24  ;;  %v3408_v42 = vadd.f32 %v11332_v52, %v11148_v36 }
 0x4c7   : > { %9712 = vmatprep.subr.mxu0 %v3234_v51  ;;  %9696 = vmatmul.mubr.msk.f32.vlgmr.msra.gmra.mxu1 %vm253_vm0, %v11460_v19  ;;  %v3316_v19 = vadd.f32 %v11334_v23, %v11157_v38 }
 0x4c8   : > { %9703 = vmatmul.mubr.msk.f32.vlgmr.msra.gmra.mxu0 %vm253_vm0, %v11462_v12  ;;  %9706 = vmatpush3.msra.mxu1 %v11476_v24 }
 0x4c9   : > { %9713 = vmatpush3.msra.mxu0 %v3234_v51  ;;  %9707 = vmatprep.subr.mxu1 %v5037_v31 }
 0x4ca   : > { %9709 = vmatprep.mubr.msk.f32.mxu1 %vm253_vm0, %v5037_v31  ;;  %9714 = vmatprep.subr.mxu0 %v3229_v22 }
 0x4cb   : > { %9708 = vmatpush3.msra.mxu1 %v5037_v31  ;;  %9715 = vmatpush3.msra.mxu0 %v3229_v22  ;;  %v11551_v31 = vld [vmem:[%s12079_s1 + $0x18] sm:$0xff]  ;;  %v3582_v22 = vadd.f32 %v11340_v1, %v11180_v21  ;;  %v3669_v21 = vadd.f32 %v11346_v46, %v11205_v57  ;;  %v3756_v1 = vadd.f32 %v11348_v14, %v11212_v56 }
 0x4cc   : > { %9719 = vmatprep.subr.mxu1 %v3321_v30  ;;  %9726 = vmatprep.subr.mxu0 %v3408_v42  ;;  %v3751_v57 = vadd.f32 %v11352_v53, %v11228_v62  ;;  %v3843_v56 = vadd.f32 %v11354_v32, %v11237_v49  ;;  %v3838_v62 = vadd.f32 %v11359_v2, %v11249_v50  ;;  %v12227_v53 = vld [vmem:[#allocation34_spill] sm:$0xff]  ;;  %v12229_v50 = vld [vmem:[#allocation4_spill] sm:$0xff] }
 0x4cd   : > { %9710 = vmatmul.mubr.msk.f32.vlgmr.msra.gmra.mxu1 %vm253_vm0, %v11476_v24  ;;  %7917 = vrot.lane.b32.xlu1 %v11551_v31, %s10071_s16  ;;  %v12228_v32 = vld [vmem:[#allocation2_spill] sm:$0xff]  ;;  %v12230_v2 = vld [vmem:[#allocation36_spill] sm:$0xff] }
 0x4ce   : > { %9720 = vmatpush3.msra.mxu1 %v3321_v30  ;;  %7915 = vrot.lane.b32.xlu0 %v11556_v29, %s10071_s16 }
 0x4cf   : > { %9721 = vmatprep.subr.mxu1 %v3316_v19 }
 0x4d0   : > { %9722 = vmatpush3.msra.mxu1 %v3316_v19 }
 0x4d1   : > { %9733 = vmatprep.subr.mxu1 %v3495_v7  ;;  %7913 = vrot.lane.b32.xlu1 %v11565_v4, %s10071_s16 }
 0x4d5   : > { %7911 = vrot.lane.b32.xlu1 %v11572_v18, %s10071_s16 }
 0x55e   : > { %v11576_v10 = vpop.f32.mrf.mxu0 }
 0x560   : > { %v11578_v36 = vpop.f32.mrf.mxu0 }
 0x563   : > { %v11580_v38 = vpop.f32.mrf.mxu1 }
 0x564   : > { %v11582_v63 = vpop.f32.mrf.mxu0 }
 0x565   : > { %v11584_v28 = vpop.f32.mrf.mxu1 }
 0x566   : > { %v11586_v8 = vpop.f32.mrf.mxu0 }
 0x569   : > { %v11588_v54 = vpop.f32.mrf.mxu1 }
 0x56a   : > { %v11590_v52 = vpop.f32.mrf.mxu0 }
 0x56b   : > { %v11592_v23 = vpop.f32.mrf.mxu1 }
 0x56c   : > { %v11594_v16 = vpop.f32.mrf.mxu0 }
 0x56f   : > { %v11596_v5 = vpop.f32.mrf.mxu1 }
 0x570   : > { %v11598_v0 = vpop.f32.mrf.mxu0 }
 0x571   : > { %12225 = vst [vmem:[#allocation53_spill] sm:$0xff] %v11598_v0  ;;  %v11600_v44 = vpop.f32.mrf.mxu1 }
 0x572   : > { %v11602_v40 = vpop.f32.mrf.mxu0 }
 0x575   : > { %v11604_v24 = vpop.f32.mrf.mxu1 }
 0x576   : > { %v9662_v39 = vpop.f32.mrf.mxu0 }
 0x577   : > { %v11606_v6 = vpop.f32.mrf.mxu1 }
 0x578   : > { %v5760_v12 = vpop.f32.mrf.mxu0 }
 0x579   : > { %9716 = vmatprep.mubr.msk.f32.mxu0 %vm253_vm0, %v5760_v12  ;;  %v3490_v12 = vadd.f32 %v11342_v59, %v11189_v35 }
 0x57a   : > { %9717 = vmatmul.mubr.msk.f32.vlgmr.msra.gmra.mxu0 %vm253_vm0, %v9662_v39  ;;  %v12232_v39 = vld [vmem:[#allocation3_spill] sm:$0xff] }
 0x57b   : > { %v9669_v51 = vpop.f32.mrf.mxu1  ;;  %9727 = vmatpush3.msra.mxu0 %v3408_v42 }
 0x57c   : > { %v9676_v30 = vpop.f32.mrf.mxu0  ;;  %9728 = vmatprep.subr.mxu0 %v3403_v9 }
 0x57d   : > { %v5835_v19 = vpop.f32.mrf.mxu1  ;;  %9729 = vmatpush3.msra.mxu0 %v3403_v9  ;;  %v12233_v9 = vld [vmem:[#allocation5_spill] sm:$0xff] }
 0x57e   : > { %v5910_v0 = vpop.f32.mrf.mxu0  ;;  %9723 = vmatprep.mubr.msk.f32.mxu1 %vm253_vm0, %v5835_v19  ;;  %9740 = vmatprep.subr.mxu0 %v3582_v22  ;;  %v12237_v19 = vld [vmem:[#allocation7_spill] sm:$0xff] }
 0x57f   : > { %9730 = vmatprep.mubr.msk.f32.mxu0 %vm253_vm0, %v5910_v0  ;;  %9724 = vmatmul.mubr.msk.f32.vlgmr.msra.gmra.mxu1 %vm253_vm0, %v9669_v51  ;;  %v12231_v0 = vld [vmem:[#allocation37_spill] sm:$0xff]  ;;  %v12234_v51 = vld [vmem:[#allocation35_spill] sm:$0xff] }
 0x580   : > { %9731 = vmatmul.mubr.msk.f32.vlgmr.msra.gmra.mxu0 %vm253_vm0, %v9676_v30  ;;  %9734 = vmatpush3.msra.mxu1 %v3495_v7  ;;  %v12236_v30 = vld [vmem:[#allocation6_spill] sm:$0xff] }
 0x581   : > { %v9683_v41 = vpop.f32.mrf.mxu1  ;;  %9741 = vmatpush3.msra.mxu0 %v3582_v22  ;;  %9735 = vmatprep.subr.mxu1 %v3490_v12  ;;  %v12235_v22 = vld [vmem:[#allocation44_spill] sm:$0xff] }
 0x582   : > { %v9690_v35 = vpop.f32.mrf.mxu0  ;;  %9742 = vmatprep.subr.mxu0 %v3577_v26  ;;  %9736 = vmatpush3.msra.mxu1 %v3490_v12  ;;  %v12238_v12 = vld [vmem:[#allocation38_spill] sm:$0xff] }
 0x583   : > { %v5985_v59 = vpop.f32.mrf.mxu1  ;;  %9743 = vmatpush3.msra.mxu0 %v3577_v26  ;;  %9747 = vmatprep.subr.mxu1 %v3669_v21  ;;  %v12239_v26 = vld [vmem:[#allocation39_spill] sm:$0xff] }
 0x584   : > { %v6060_v42 = vpop.f32.mrf.mxu0  ;;  %9737 = vmatprep.mubr.msk.f32.mxu1 %vm253_vm0, %v5985_v59  ;;  %9754 = vmatprep.subr.mxu0 %v3756_v1  ;;  %v12244_v59 = vld [vmem:[#allocation10_spill] sm:$0xff] }
 0x585   : > { %9744 = vmatprep.mubr.msk.f32.mxu0 %vm253_vm0, %v6060_v42  ;;  %9738 = vmatmul.mubr.msk.f32.vlgmr.msra.gmra.mxu1 %vm253_vm0, %v9683_v41  ;;  %v12241_v41 = vld [vmem:[#allocation9_spill] sm:$0xff]  ;;  %v12245_v42 = vld [vmem:[#allocation11_spill] sm:$0xff] }
 0x586   : > { %9745 = vmatmul.mubr.msk.f32.vlgmr.msra.gmra.mxu0 %vm253_vm0, %v9690_v35  ;;  %9748 = vmatpush3.msra.mxu1 %v3669_v21  ;;  %v12240_v21 = vld [vmem:[#allocation8_spill] sm:$0xff]  ;;  %v12243_v35 = vld [vmem:[#allocation46_spill] sm:$0xff] }
 0x587   : > { %v9697_v25 = vpop.f32.mrf.mxu1  ;;  %9755 = vmatpush3.msra.mxu0 %v3756_v1  ;;  %9749 = vmatprep.subr.mxu1 %v3664_v34  ;;  %v12242_v1 = vld [vmem:[#allocation45_spill] sm:$0xff] }
 0x588   : > { %v9704_v46 = vpop.f32.mrf.mxu0  ;;  %9756 = vmatprep.subr.mxu0 %v3751_v57  ;;  %9750 = vmatpush3.msra.mxu1 %v3664_v34  ;;  %v12246_v34 = vld [vmem:[#allocation40_spill] sm:$0xff] }
 0x589   : > { %v6135_v43 = vpop.f32.mrf.mxu1  ;;  %9757 = vmatpush3.msra.mxu0 %v3751_v57  ;;  %9761 = vmatprep.subr.mxu1 %v3843_v56  ;;  %v12247_v57 = vld [vmem:[#allocation41_spill] sm:$0xff] }
 0x58a   : > { %v6210_v14 = vpop.f32.mrf.mxu0  ;;  %9751 = vmatprep.mubr.msk.f32.mxu1 %vm253_vm0, %v6135_v43  ;;  %9768 = vmatprep.subr.mxu0 %v12226_v60  ;;  %v12251_v43 = vld [vmem:[#allocation48_spill] sm:$0xff] }
 0x58b   : > { %9758 = vmatprep.mubr.msk.f32.mxu0 %vm253_vm0, %v6210_v14  ;;  %9752 = vmatmul.mubr.msk.f32.vlgmr.msra.gmra.mxu1 %vm253_vm0, %v9697_v25  ;;  %v12249_v25 = vld [vmem:[#allocation13_spill] sm:$0xff]  ;;  %v12252_v14 = vld [vmem:[#allocation14_spill] sm:$0xff] }
 0x58c   : > { %9759 = vmatmul.mubr.msk.f32.vlgmr.msra.gmra.mxu0 %vm253_vm0, %v9704_v46  ;;  %9762 = vmatpush3.msra.mxu1 %v3843_v56  ;;  %v12248_v56 = vld [vmem:[#allocation12_spill] sm:$0xff]  ;;  %v12250_v46 = vld [vmem:[#allocation47_spill] sm:$0xff] }
 0x58d   : > { %v9711_v49 = vpop.f32.mrf.mxu1  ;;  %9769 = vmatpush3.msra.mxu0 %v12226_v60  ;;  %9763 = vmatprep.subr.mxu1 %v3838_v62 }
 0x58e   : > { %9770 = vmatprep.subr.mxu0 %v12227_v53  ;;  %9772 = vmatprep.mubr.msk.f32.mxu0 %vm253_vm0, %v12228_v32  ;;  %v12255_v32 = vld [vmem:[#allocation16_spill] sm:$0xff] }
 0x58f   : > { %v6285_v7 = vpop.f32.mrf.mxu1  ;;  %9764 = vmatpush3.msra.mxu1 %v3838_v62  ;;  %9771 = vmatpush3.msra.mxu0 %v12227_v53  ;;  %v12253_v62 = vld [vmem:[#allocation15_spill] sm:$0xff] }
 0x590   : > { %9765 = vmatprep.mubr.msk.f32.mxu1 %vm253_vm0, %v6285_v7  ;;  %9773 = vmatmul.mubr.msk.f32.vlgmr.msra.gmra.mxu0 %vm253_vm0, %v12229_v50  ;;  %v12256_v7 = vld [vmem:[#allocation49_spill] sm:$0xff] }
 0x591   : > { %9766 = vmatmul.mubr.msk.f32.vlgmr.msra.gmra.mxu1 %vm253_vm0, %v9711_v49  ;;  %9775 = vmatprep.subr.mxu1 %v12230_v2  ;;  %v12254_v49 = vld [vmem:[#allocation43_spill] sm:$0xff]  ;;  %v12257_v50 = vld [vmem:[#allocation17_spill] sm:$0xff] }
 0x592   : > { %9782 = vmatprep.subr.mxu0 %v12231_v0  ;;  %9776 = vmatpush3.msra.mxu1 %v12230_v2 }
 0x593   : > { %9779 = vmatprep.mubr.msk.f32.mxu1 %vm253_vm0, %v12232_v39  ;;  %9783 = vmatpush3.msra.mxu0 %v12231_v0  ;;  %v10046_v39 = vld [vmem:[%s10105_s15] sm:$0xff] }
 0x594   : > { %9786 = vmatprep.mubr.msk.f32.mxu0 %vm253_vm0, %v12233_v9  ;;  %9777 = vmatprep.subr.mxu1 %v12234_v51  ;;  %v10048_v9 = vld [vmem:[%s10105_s15 + $0x10] sm:$0xff] }
 0x595   : > { %9784 = vmatprep.subr.mxu0 %v12235_v22  ;;  %9778 = vmatpush3.msra.mxu1 %v12234_v51 }
 0x596   : > { %9785 = vmatpush3.msra.mxu0 %v12235_v22  ;;  %9780 = vmatmul.mubr.msk.f32.vlgmr.msra.gmra.mxu1 %vm253_vm0, %v12236_v30  ;;  %v10049_v30 = vld [vmem:[%s10105_s15 + $0x18] sm:$0xff] }
 0x597   : > { %9787 = vmatmul.mubr.msk.f32.vlgmr.msra.gmra.mxu0 %vm253_vm0, %v12237_v19  ;;  %9789 = vmatprep.subr.mxu1 %v12238_v12  ;;  %v10053_v19 = vld [vmem:[%s10105_s15 + $0x38] sm:$0xff] }
 0x598   : > { %9796 = vmatprep.subr.mxu0 %v12239_v26  ;;  %9790 = vmatpush3.msra.mxu1 %v12238_v12 }
 0x599   : > { %9793 = vmatprep.mubr.msk.f32.mxu1 %vm253_vm0, %v12240_v21  ;;  %9797 = vmatpush3.msra.mxu0 %v12239_v26  ;;  %v10054_v21 = vld [vmem:[%s10105_s15 + $0x40] sm:$0xff] }
 0x59a   : > { %9800 = vmatprep.mubr.msk.f32.mxu0 %vm253_vm0, %v12241_v41  ;;  %9791 = vmatprep.subr.mxu1 %v12242_v1  ;;  %v10055_v41 = vld [vmem:[%s10105_s15 + $0x48] sm:$0xff] }
 0x59b   : > { %9798 = vmatprep.subr.mxu0 %v12243_v35  ;;  %9792 = vmatpush3.msra.mxu1 %v12242_v1 }
 0x59c   : > { %9799 = vmatpush3.msra.mxu0 %v12243_v35  ;;  %9794 = vmatmul.mubr.msk.f32.vlgmr.msra.gmra.mxu1 %vm253_vm0, %v12244_v59  ;;  %v10056_v59 = vld [vmem:[%s10105_s15 + $0x50] sm:$0xff] }
 0x59d   : > { %9801 = vmatmul.mubr.msk.f32.vlgmr.msra.gmra.mxu0 %vm253_vm0, %v12245_v42  ;;  %9803 = vmatprep.subr.mxu1 %v12246_v34  ;;  %v10057_v42 = vld [vmem:[%s10105_s15 + $0x58] sm:$0xff] }
 0x59e   : > { %9810 = vmatprep.subr.mxu0 %v12247_v57  ;;  %9804 = vmatpush3.msra.mxu1 %v12246_v34 }
 0x59f   : > { %9807 = vmatprep.mubr.msk.f32.mxu1 %vm253_vm0, %v12248_v56  ;;  %9811 = vmatpush3.msra.mxu0 %v12247_v57  ;;  %v10058_v56 = vld [vmem:[%s10105_s15 + $0x60] sm:$0xff] }
 0x5a0   : > { %9814 = vmatprep.mubr.msk.f32.mxu0 %vm253_vm0, %v12249_v25  ;;  %9805 = vmatprep.subr.mxu1 %v12250_v46  ;;  %v10059_v25 = vld [vmem:[%s10105_s15 + $0x68] sm:$0xff] }
 0x5a1   : > { %9812 = vmatprep.subr.mxu0 %v12251_v43  ;;  %9806 = vmatpush3.msra.mxu1 %v12250_v46 }
 0x5a2   : > { %9813 = vmatpush3.msra.mxu0 %v12251_v43  ;;  %9808 = vmatmul.mubr.msk.f32.vlgmr.msra.gmra.mxu1 %vm253_vm0, %v12252_v14  ;;  %v10060_v14 = vld [vmem:[%s10105_s15 + $0x70] sm:$0xff] }
 0x5a3   : > { %9815 = vmatmul.mubr.msk.f32.vlgmr.msra.gmra.mxu0 %vm253_vm0, %v12253_v62  ;;  %9817 = vmatprep.subr.mxu1 %v12254_v49  ;;  %v7007_v62 = vpop.xlane.xlu1 %7006 }
 0x5a4   : > { %9818 = vmatpush3.msra.mxu1 %v12254_v49  ;;  %9821 = vmatprep.mubr.msk.f32.mxu1 %vm253_vm0, %v12255_v32  ;;  %v7010_v32 = vpop.xlane.xlu0 %7009 }
 0x5a5   : > { %9819 = vmatprep.subr.mxu1 %v12256_v7 }
 0x5a6   : > { %9820 = vmatpush3.msra.mxu1 %v12256_v7 }
 0x5a7   : > { %9822 = vmatmul.mubr.msk.f32.vlgmr.msra.gmra.mxu1 %vm253_vm0, %v12257_v50  ;;  %9856 = vmatprep.subr.mxu1 %v11551_v31  ;;  %v10061_v50 = vld [vmem:[%s10105_s15 + $0x78] sm:$0xff] }
 0x5a8   : > { %9857 = vmatpush3.msra.mxu1 %v11551_v31  ;;  %9864 = vmatprep.mubr.msk.f32.mxu1 %vm6962_vm1, %v10046_v39  ;;  %v10047_v31 = vld [vmem:[%s10105_s15 + $0x8] sm:$0xff]  ;;  %v7918_v39 = vpop.permute.xlu1 %7917 }
 0x5a9   : > { %9858 = vmatprep.subr.mxu1 %v11556_v29  ;;  %9824 = vmatprep.subr.mxu0 %v7918_v39 }
 0x5aa   : > { %9859 = vmatpush3.msra.mxu1 %v11556_v29  ;;  %v10050_v29 = vld [vmem:[%s10105_s15 + $0x20] sm:$0xff]  ;;  %9825 = vmatpush3.msra.mxu0 %v7918_v39 }
 0x5ab   : > { %9860 = vmatprep.subr.mxu1 %v11565_v4 }
 0x5ac   : > { %9861 = vmatpush3.msra.mxu1 %v11565_v4  ;;  %v10051_v4 = vld [vmem:[%s10105_s15 + $0x28] sm:$0xff] }
 0x5ad   : > { %9862 = vmatprep.subr.mxu1 %v11572_v18 }
 0x5ae   : > { %9863 = vmatpush3.msra.mxu1 %v11572_v18  ;;  %v10052_v18 = vld [vmem:[%s10105_s15 + $0x30] sm:$0xff] }
 0x5af   : > { %9865 = vmatmul.mubr.msk.f32.vlgmr.msra.gmra.mxu1 %vm6962_vm1, %v10047_v31  ;;  %v7916_v31 = vpop.permute.xlu0 %7915 }
 0x5b0   : > { %9867 = vmatprep.mubr.msk.f32.mxu1 %vm6962_vm1, %v10048_v9  ;;  %9826 = vmatprep.subr.mxu0 %v7916_v31  ;;  %v7914_v9 = vpop.permute.xlu1 %7913 }
 0x5b1   : > { %9827 = vmatpush3.msra.mxu0 %v7916_v31 }
 0x5b2   : > { %9828 = vmatprep.subr.mxu0 %v7914_v9 }
 0x5b3   : > { %9868 = vmatmul.mubr.msk.f32.gmra.mxu1 %vm6962_vm1, %v10049_v30  ;;  %9829 = vmatpush3.msra.mxu0 %v7914_v9 }
 0x5b4   : > { %9870 = vmatprep.mubr.msk.f32.mxu1 %vm6962_vm1, %v10050_v29  ;;  %v7912_v30 = vpop.permute.xlu1 %7911  ;;  %v7060_v29 = vmax.f32 %v7007_v62, %v7010_v32 }
 0x5b5   : > { %9830 = vmatprep.subr.mxu0 %v7912_v30 }
 0x5b6   : > { %9831 = vmatpush3.msra.mxu0 %v7912_v30 }
 0x5b7   : > { %9871 = vmatmul.mubr.msk.f32.gmra.mxu1 %vm6962_vm1, %v10051_v4  ;;  %v7061_v4 = vrot.slane %v7060_v29, 4 }
 0x5b8   : > { %9873 = vmatprep.mubr.msk.f32.mxu1 %vm6962_vm1, %v10052_v18 }
 0x5b9   : > { %v7062_v18 = vmax.f32 %v7060_v29, %v7061_v4 }
 0x5bb   : > { %9874 = vmatmul.mubr.msk.f32.gmra.mxu1 %vm6962_vm1, %v10053_v19  ;;  %v7063_v19 = vrot.slane %v7062_v18, 2 }
 0x5bc   : > { %9876 = vmatprep.mubr.msk.f32.mxu1 %vm6962_vm1, %v10054_v21 }
 0x5bd   : > { %v7064_v21 = vmax.f32 %v7062_v18, %v7063_v19 }
 0x5bf   : > { %9877 = vmatmul.mubr.msk.f32.gmra.mxu1 %vm6962_vm1, %v10055_v41  ;;  %v7065_v41 = vrot.slane %v7064_v21, 1 }
 0x5c0   : > { %9879 = vmatprep.mubr.msk.f32.mxu1 %vm6962_vm1, %v10056_v59 }
 0x5c1   : > { %v7066_v59 = vmax.f32 %v7064_v21, %v7065_v41  ;;  %v5281_v21 = vadd.f32 %v11586_v8, %v11393_v13  ;;  %v5200_v13 = vadd.f32 %v11584_v28, %v11375_v61  ;;  %v5362_v8 = vadd.f32 %v11592_v23, %v11415_v20 }
 0x5c2   : > { %v5286_v61 = vadd.f32 %v11582_v63, %v11372_v37  ;;  %v5443_v20 = vadd.f32 %v11594_v16, %v11422_v15  ;;  %v12265_v63 = vld [vmem:[#allocation25_spill] sm:$0xff]  ;;  %v5367_v16 = vadd.f32 %v11588_v54, %v11383_v11  ;;  %v5448_v11 = vadd.f32 %v11590_v52, %v11401_v55  ;;  %v12267_v55 = vld [vmem:[#allocation28_spill] sm:$0xff] }
 0x5c3   : > { %9880 = vmatmul.mubr.msk.f32.gmra.mxu1 %vm6962_vm1, %v10057_v42  ;;  %v7081_v42 = vsub.f32 %v7007_v62, %v7066_v59  ;;  %v5205_v62 = vadd.f32 %v11580_v38, %v11368_v45  ;;  %v8755_v15 = vadd.f32 -1.0, %v12265_v63  ;;  %v8757_v52 = vadd.f32 -1.0, %v12267_v55 }
 0x5c4   : > { %9882 = vmatprep.mubr.msk.f32.mxu1 %vm6962_vm1, %v10058_v56  ;;  %v7082_v56 = vsub.f32 %v7010_v32, %v7066_v59  ;;  %v12259_v59 = vld [vmem:[#allocation19_spill] sm:$0xff] }
 0x5c7   : > { %9883 = vmatmul.mubr.msk.f32.gmra.mxu1 %vm6962_vm1, %v10059_v25  ;;  %v7111_v25 = vmul.f32 1.442695, %v7081_v42  ;;  %v8749_v42 = vadd.f32 -1.0, %v12259_v59 }
 0x5c8   : > { %9885 = vmatprep.mubr.msk.f32.mxu1 %vm6962_vm1, %v10060_v14  ;;  %v7113_v14 = vmul.f32 1.442695, %v7082_v56  ;;  %v5119_v56 = vadd.f32 %v11578_v36, %v11362_v47  ;;  %v12260_v47 = vld [vmem:[#allocation20_spill] sm:$0xff] }
 0x5c9   : > { %9976 = vpow2.f32 %v7111_v25  ;;  %v8750_v36 = vadd.f32 -1.0, %v12260_v47 }
 0x5ca   : > { %9978 = vpow2.f32 %v7113_v14 }
 0x5cb   : > { %9886 = vmatmul.mubr.msk.f32.gmra.mxu1 %vm6962_vm1, %v10061_v50  ;;  %v5124_v50 = vadd.f32 %v11576_v10, %v11357_v33  ;;  %v12258_v33 = vld [vmem:[#allocation18_spill] sm:$0xff] }
 0x5cc   : > { %v8748_v10 = vadd.f32 -1.0, %v12258_v33 }
 0x5ce   : > { %9980 = vrcp.f32 %v8748_v10 }
 0x5cf   : > { %9982 = vrcp.f32 %v8749_v42 }
 0x5d0   : > { %9984 = vrcp.f32 %v8750_v36 }
 0x5d6   : > { %v11750_v31 = vpop.eup %9976 }
 0x5d7   : > { %v11752_v30 = vpop.eup %9978 }
 0x5d8   : > { %v7164_v32 = vadd.f32 %v11752_v30, %v11750_v31 }
 0x5da   : > { %v7165_v45 = vrot.slane %v7164_v32, 4 }
 0x63a   : > { %v9718_v39 = vpop.f32.mrf.mxu0 }
 0x63b   : > { %v6372_v9 = vadd.f32 %v9718_v39, %v5124_v50 }
 0x63c   : > { %v6366_v29 = vpop.f32.mrf.mxu0 }
 0x63d   : > { %8455 = vrot.lane.b32.xlu0 %v6372_v9, %s10073_s28  ;;  %v6367_v14 = vadd.f32 %v6366_v29, %v5119_v56  ;;  %v7166_v9 = vadd.f32 %v7165_v45, %v7164_v32  ;;  %v12263_v32 = vld [vmem:[#allocation24_spill] sm:$0xff]  ;;  %v12264_v45 = vld [vmem:[#allocation23_spill] sm:$0xff] }
 0x63f   : > { %v9725_v4 = vpop.f32.mrf.mxu1  ;;  %v7167_v28 = vrot.slane %v7166_v9, 2 }
 0x640   : > { %v6453_v18 = vadd.f32 %v9725_v4, %v5205_v62  ;;  %v9732_v19 = vpop.f32.mrf.mxu0  ;;  %v12261_v4 = vld [vmem:[#allocation21_spill] sm:$0xff] }
 0x641   : > { %v6447_v41 = vpop.f32.mrf.mxu1  ;;  %v8751_v29 = vadd.f32 -1.0, %v12261_v4  ;;  %v6534_v42 = vadd.f32 %v9732_v19, %v5286_v61  ;;  %v7168_v19 = vadd.f32 %v7167_v28, %v7166_v9  ;;  %v12266_v4 = vld [vmem:[#allocation26_spill] sm:$0xff]  ;;  %v5686_v9 = vadd.f32 %v11606_v6, %v11473_v3  ;;  %v12268_v6 = vld [vmem:[#allocation57_spill] sm:$0xff] }
 0x642   : > { %v6528_v25 = vpop.f32.mrf.mxu0  ;;  %8459 = vrot.lane.b32.xlu1 %v6453_v18, %s10073_s28  ;;  %v6448_v18 = vadd.f32 %v6447_v41, %v5200_v13  ;;  %v8753_v41 = vadd.f32 -1.0, %v12263_v32  ;;  %v12270_v32 = vld [vmem:[#allocation29_spill] sm:$0xff] }
 0x643   : > { %v6529_v38 = vadd.f32 %v6528_v25, %v5281_v21  ;;  %v12262_v21 = vld [vmem:[#allocation22_spill] sm:$0xff]  ;;  %9986 = vrcp.f32 %v8751_v29  ;;  %v8756_v29 = vadd.f32 -1.0, %v12266_v4  ;;  %v12275_v4 = vld [vmem:[#allocation53_spill] sm:$0xff] }
 0x644   : > { %v8752_v59 = vadd.f32 -1.0, %v12262_v21 }
 0x645   : > { %v9739_v50 = vpop.f32.mrf.mxu1  ;;  %8461 = vrot.lane.b32.xlu0 %v6529_v38, %s10073_s28  ;;  %v8754_v38 = vadd.f32 -1.0, %v12264_v45 }
 0x646   : > { %v9746_v39 = vpop.f32.mrf.mxu0  ;;  %8453 = vrot.lane.b32.xlu1 %v6367_v14, %s10073_s28  ;;  %9988 = vrcp.f32 %v8752_v59  ;;  %v5524_v14 = vadd.f32 %v11600_v44, %v11446_v58  ;;  %v6615_v47 = vadd.f32 %v9739_v50, %v5367_v16  ;;  %v5605_v58 = vadd.f32 %v11602_v40, %v11452_v48  ;;  %v9981_v44 = vpop.eup %9980 }
 0x647   : > { %v6609_v62 = vpop.f32.mrf.mxu1  ;;  %9990 = vrcp.f32 %v8753_v41  ;;  %v9983_v50 = vpop.eup %9982  ;;  %v7212_v40 = vmul.f32 %v9981_v44, %v10816_v27  ;;  %v6696_v21 = vadd.f32 %v9746_v39, %v5448_v11  ;;  %v8759_v41 = vadd.f32 -1.0, %v12270_v32 }
 0x648   : > { %v6610_v33 = vadd.f32 %v6609_v62, %v5362_v8  ;;  %v6690_v10 = vpop.f32.mrf.mxu0  ;;  %v5691_v8 = vadd.f32 %v11604_v24, %v11458_v17  ;;  %9992 = vrcp.f32 %v8754_v38  ;;  %v7214_v59 = vmul.f32 %v9983_v50, %v12268_v6  ;;  %v9985_v39 = vpop.eup %9984 }
 0x649   : > { %v6691_v56 = vadd.f32 %v6690_v10, %v5443_v20  ;;  %9994 = vrcp.f32 %v8755_v15 }
 0x64a   : > { %8465 = vrot.lane.b32.xlu0 %v6610_v33, %s10073_s28  ;;  %8457 = vrot.lane.b32.xlu1 %v6448_v18, %s10073_s28  ;;  %v7169_v33 = vrot.slane %v7168_v19, 1  ;;  %9996 = vrcp.f32 %v8756_v29 }
 0x64b   : > { %v9753_v23 = vpop.f32.mrf.mxu1  ;;  %9998 = vrcp.f32 %v8757_v52 }
 0x64c   : > { %v11782_v25 = vpop.f32.mrf.mxu0 }
 0x64d   : > { %v6771_v37 = vpop.f32.mrf.mxu1 }
 0x64e   : > { %v6852_v13 = vpop.f32.mrf.mxu0  ;;  %8469 = vrot.lane.b32.xlu0 %v6691_v56, %s10073_s28  ;;  %8463 = vrot.lane.b32.xlu1 %v6534_v42, %s10073_s28  ;;  %v6772_v36 = vadd.f32 %v6771_v37, %v5524_v14  ;;  %v12271_v42 = vld [vmem:[#allocation52_spill] sm:$0xff] }
 0x64f   : > { %v6853_v3 = vadd.f32 %v6852_v13, %v5605_v58  ;;  %v5529_v56 = vadd.f32 %v11596_v5, %v12271_v42  ;;  %v12272_v5 = vld [vmem:[#allocation30_spill] sm:$0xff]  ;;  %v12273_v13 = vld [vmem:[#allocation56_spill] sm:$0xff] }
 0x650   : > { %v9774_v62 = vpop.f32.mrf.mxu0  ;;  %v9987_v16 = vpop.eup %9986  ;;  %v8760_v14 = vadd.f32 -1.0, %v12272_v5 }
 0x651   : > { %v9767_v54 = vpop.f32.mrf.mxu1  ;;  %v7876_v17 = vsub.f32 %v9774_v62, %v12226_v60  ;;  %v12269_v60 = vld [vmem:[#allocation27_spill] sm:$0xff]  ;;  %v6777_v37 = vadd.f32 %v9753_v23, %v5529_v56 }
 0x652   : > { %v11801_v18 = vadd.f32 %v9767_v54, %v5691_v8  ;;  %v7313_v24 = vpop.f32.mrf.mxu0  ;;  %8473 = vrot.lane.b32.xlu0 %v6772_v36, %s10073_s28  ;;  %8467 = vrot.lane.b32.xlu1 %v6615_v47, %s10073_s28  ;;  %v8758_v20 = vadd.f32 -1.0, %v12269_v60  ;;  %v7216_v8 = vmul.f32 %v9985_v39, %v12273_v13  ;;  %v12276_v23 = vld [vmem:[#allocation55_spill] sm:$0xff] }
 0x653   : > { %v6933_v48 = vpop.f32.mrf.mxu1  ;;  %v7875_v10 = vsub.f32 %v7313_v24, %v12227_v53  ;;  %v7892_v45 = vmul.f32 %v7876_v17, %v7214_v59  ;;  %v7170_v53 = vadd.f32 %v7169_v33, %v7168_v19  ;;  %v9989_v62 = vpop.eup %9988  ;;  %v12274_v19 = vld [vmem:[#allocation50_spill] sm:$0xff]  ;;  %v7218_v11 = vmul.f32 %v9987_v16, %v12276_v23  ;;  %v12277_v54 = vld [vmem:[#allocation59_spill] sm:$0xff]  ;;  %v12281_v59 = vld [vmem:[#allocation61_spill] sm:$0xff] }
 0x654   : > { %v11810_v61 = vadd.f32 %v6933_v48, %v5686_v9  ;;  %10000 = vrcp.f32 %v8758_v20  ;;  %v5610_v29 = vadd.f32 %v12275_v4, %v12274_v19  ;;  %v7220_v44 = vmul.f32 %v9989_v62, %v12277_v54  ;;  %v12278_v9 = vld [vmem:[#allocation32_spill] sm:$0xff]  ;;  %v9991_v52 = vpop.eup %9990  ;;  %v12279_v33 = vld [vmem:[#allocation31_spill] sm:$0xff]  ;;  %v12286_v19 = vld [vmem:[#allocation65_spill] sm:$0xff] }
 0x655   : > { %v7891_v28 = vmul.f32 %v7875_v10, %v7212_v40  ;;  %10002 = vrcp.f32 %v8759_v41  ;;  %v8761_v17 = vadd.f32 -1.0, %v12278_v9  ;;  %v8762_v48 = vadd.f32 -1.0, %v12279_v33  ;;  %v9993_v10 = vpop.eup %9992  ;;  %v12287_v54 = vld [vmem:[#allocation64_spill] sm:$0xff] }
 0x656   : > { %v9781_v38 = vpop.f32.mrf.mxu1  ;;  %8477 = vrot.lane.b32.xlu0 %v6853_v3, %s10073_s28  ;;  %8471 = vrot.lane.b32.xlu1 %v6696_v21, %s10073_s28  ;;  %10004 = vrcp.f32 %v7170_v53  ;;  %v12280_v21 = vld [vmem:[#allocation58_spill] sm:$0xff] }
 0x657   : > { %v9788_v27 = vpop.f32.mrf.mxu0  ;;  %9832 = vmatprep.mubr.msk.f32.mxu0 %vm6962_vm1, %v7891_v28  ;;  %v7878_v63 = vsub.f32 %v9781_v38, %v12230_v2  ;;  %10006 = vrcp.f32 %v8760_v14  ;;  %v7222_v3 = vmul.f32 %v9991_v52, %v12280_v21  ;;  %v12282_v28 = vld [vmem:[#allocation33_spill] sm:$0xff] }
 0x658   : > { %v7392_v15 = vpop.f32.mrf.mxu1  ;;  %9833 = vmatmul.mubr.msk.f32.vlgmr.msra.gmra.mxu0 %vm6962_vm1, %v7892_v45  ;;  %v7880_v50 = vsub.f32 %v9788_v27, %v12231_v0  ;;  %v7224_v0 = vmul.f32 %v9993_v10, %v12281_v59  ;;  %10008 = vrcp.f32 %v8761_v17  ;;  %v8763_v32 = vadd.f32 -1.0, %v12282_v28  ;;  %v12283_v27 = vld [vmem:[#allocation60_spill] sm:$0xff]  ;;  %v12288_v17 = vld [vmem:[#allocation67_spill] sm:$0xff] }
 0x659   : > { %v7877_v47 = vsub.f32 %v7392_v15, %v12234_v51  ;;  %v7471_v36 = vpop.f32.mrf.mxu0  ;;  %v6858_v51 = vadd.f32 %v11782_v25, %v5610_v29  ;;  %v7894_v24 = vmul.f32 %v7878_v63, %v7218_v11  ;;  %v9995_v25 = vpop.eup %9994  ;;  %10010 = vrcp.f32 %v8762_v48  ;;  %v12289_v48 = vld [vmem:[#allocation66_spill] sm:$0xff] }
 0x65a   : > { %v7879_v2 = vsub.f32 %v7471_v36, %v12235_v22  ;;  %8475 = vrot.lane.b32.xlu1 %v6777_v37, %s10073_s28  ;;  %v7896_v41 = vmul.f32 %v7880_v50, %v7222_v3  ;;  %v9997_v38 = vpop.eup %9996  ;;  %v7226_v53 = vmul.f32 %v9995_v25, %v12283_v27  ;;  %10012 = vrcp.f32 %v8763_v32 }
 0x65b   : > { %v7893_v58 = vmul.f32 %v7877_v47, %v7216_v8  ;;  %v9999_v5 = vpop.eup %9998  ;;  %v12285_v8 = vld [vmem:[#allocation62_spill] sm:$0xff] }
 0x65c   : > { %v9795_v55 = vpop.f32.mrf.mxu1  ;;  %v7895_v40 = vmul.f32 %v7879_v2, %v7220_v44  ;;  %v7230_v47 = vmul.f32 %v9999_v5, %v12285_v8 }
 0x65d   : > { %v9802_v22 = vpop.f32.mrf.mxu0  ;;  %9835 = vmatprep.mubr.msk.f32.mxu0 %vm6962_vm1, %v7893_v58  ;;  %v7882_v42 = vsub.f32 %v9795_v55, %v12238_v12 }
 0x65e   : > { %v7550_v6 = vpop.f32.mrf.mxu1  ;;  %9836 = vmatmul.mubr.msk.f32.gmra.mxu0 %vm6962_vm1, %v7894_v24  ;;  %8479 = vrot.lane.b32.xlu1 %v6858_v51, %s10073_s28  ;;  %v7884_v16 = vsub.f32 %v9802_v22, %v12239_v26 }
 0x65f   : > { %v7881_v60 = vsub.f32 %v7550_v6, %v12242_v1  ;;  %v7629_v20 = vpop.f32.mrf.mxu0  ;;  %9838 = vmatprep.mubr.msk.f32.mxu0 %vm6962_vm1, %v7895_v40  ;;  %v12284_v1 = vld [vmem:[#allocation63_spill] sm:$0xff]  ;;  %v7898_v15 = vmul.f32 %v7882_v42, %v7226_v53 }
 0x660   : > { %v7883_v45 = vsub.f32 %v7629_v20, %v12243_v35  ;;  %v7228_v37 = vmul.f32 %v9997_v38, %v12284_v1  ;;  %v7900_v11 = vmul.f32 %v7884_v16, %v7230_v47 }
 0x661   : > { %v7897_v56 = vmul.f32 %v7881_v60, %v7224_v0  ;;  %v10001_v13 = vpop.eup %10000 }
 0x662   : > { %v9809_v39 = vpop.f32.mrf.mxu1  ;;  %9839 = vmatmul.mubr.msk.f32.gmra.mxu0 %vm6962_vm1, %v7896_v41  ;;  %v7899_v14 = vmul.f32 %v7883_v45, %v7228_v37  ;;  %v10003_v62 = vpop.eup %10002  ;;  %v7232_v4 = vmul.f32 %v10001_v13, %v12286_v19 }
 0x663   : > { %v9816_v63 = vpop.f32.mrf.mxu0  ;;  %9841 = vmatprep.mubr.msk.f32.mxu0 %vm6962_vm1, %v7897_v56  ;;  %v10005_v23 = vpop.eup %10004  ;;  %v7886_v26 = vsub.f32 %v9809_v39, %v12246_v34  ;;  %v7234_v44 = vmul.f32 %v10003_v62, %v12287_v54 }
 0x664   : > { %v7708_v12 = vpop.f32.mrf.mxu1  ;;  %v7193_v24 = vmul.f32 %v10005_v23, %v11750_v31  ;;  %v7888_v55 = vsub.f32 %v9816_v63, %v12247_v57  ;;  %v7194_v22 = vmul.f32 %v10005_v23, %v11752_v30 }
 0x665   : > { %v7885_v35 = vsub.f32 %v7708_v12, %v12250_v46  ;;  %v7787_v36 = vpop.f32.mrf.mxu0  ;;  %v10007_v46 = vpop.eup %10006  ;;  %v7902_v50 = vmul.f32 %v7886_v26, %v7234_v44 }
 0x666   : > { %9842 = vmatmul.mubr.msk.f32.gmra.mxu0 %vm6962_vm1, %v7898_v15  ;;  %v7887_v58 = vsub.f32 %v7787_v36, %v12251_v43  ;;  %v7236_v51 = vmul.f32 %v10007_v46, %v12288_v17  ;;  %v10009_v52 = vpop.eup %10008 }
 0x667   : > { %v9823_v29 = vpop.f32.mrf.mxu1  ;;  %9844 = vmatprep.mubr.msk.f32.mxu0 %vm6962_vm1, %v7899_v14  ;;  %v7901_v2 = vmul.f32 %v7885_v35, %v7232_v4  ;;  %v10011_v43 = vpop.eup %10010  ;;  %v7238_v40 = vmul.f32 %v10009_v52, %v12289_v48 }
 0x668   : > { %v7903_v34 = vmul.f32 %v7887_v58, %v7236_v51  ;;  %v7240_v10 = vmul.f32 %v10011_v43, %v7193_v24  ;;  %v7890_v21 = vsub.f32 %v9823_v29, %v12254_v49  ;;  %v10013_v3 = vpop.eup %10012 }
 0x669   : > { %v7866_v9 = vpop.f32.mrf.mxu1  ;;  %v7904_v31 = vmul.f32 %v7888_v55, %v7238_v40  ;;  %v7242_v57 = vmul.f32 %v10013_v3, %v7194_v22 }
 0x66a   : > { %9845 = vmatmul.mubr.msk.f32.gmra.mxu0 %vm6962_vm1, %v7900_v11  ;;  %v7889_v33 = vsub.f32 %v7866_v9, %v12256_v7 }
 0x66b   : > { %9847 = vmatprep.mubr.msk.f32.mxu0 %vm6962_vm1, %v7901_v2  ;;  %v7906_v7 = vmul.f32 %v7890_v21, %v7242_v57 }
 0x66c   : > { %v7905_v6 = vmul.f32 %v7889_v33, %v7240_v10 }
 0x66e   : > { %9848 = vmatmul.mubr.msk.f32.gmra.mxu0 %vm6962_vm1, %v7902_v50 }
 0x66f   : > { %9850 = vmatprep.mubr.msk.f32.mxu0 %vm6962_vm1, %v7903_v34  ;;  %v9866_v25 = vpop.f32.mrf.mxu1 }
 0x671   : > { %v8214_v30 = vpop.f32.mrf.mxu1 }
 0x672   : > { %9851 = vmatmul.mubr.msk.f32.gmra.mxu0 %vm6962_vm1, %v7904_v31 }
 0x673   : > { %9853 = vmatprep.mubr.msk.f32.mxu0 %vm6962_vm1, %v7905_v6  ;;  %v9869_v59 = vpop.f32.mrf.mxu1 }
 0x675   : > { %v8224_v0 = vpop.f32.mrf.mxu1 }
 0x676   : > { %9854 = vmatmul.mubr.msk.f32.gmra.mxu0 %vm6962_vm1, %v7906_v7 }
 0x677   : > { %v9872_v60 = vpop.f32.mrf.mxu1 }
 0x679   : > { %v8234_v20 = vpop.f32.mrf.mxu1 }
 0x67b   : > { %v9875_v28 = vpop.f32.mrf.mxu1 }
 0x67d   : > { %v8244_v32 = vpop.f32.mrf.mxu1 }
 0x67f   : > { %v9878_v56 = vpop.f32.mrf.mxu1 }
 0x681   : > { %v8254_v1 = vpop.f32.mrf.mxu1 }
 0x683   : > { %v9881_v13 = vpop.f32.mrf.mxu1 }
 0x685   : > { %v8264_v26 = vpop.f32.mrf.mxu1 }
 0x687   : > { %v9884_v50 = vpop.f32.mrf.mxu1 }
 0x689   : > { %v8274_v21 = vpop.f32.mrf.mxu1 }
 0x718   : > { %v9834_v41 = vpop.f32.mrf.mxu0 }
 0x719   : > { %v8220_v49 = vadd.f32 %v9866_v25, %v9834_v41 }
 0x71a   : > { %v8037_v42 = vpop.f32.mrf.mxu0 }
 0x71b   : > { %v11871_v45 = vmax.f32 %v8220_v49, 0.0  ;;  %v8215_v38 = vadd.f32 %v8214_v30, %v8037_v42 }
 0x71d   : > { %v8310_v27 = vmul.f32 %v11871_v45, %v11871_v45  ;;  %v11875_v53 = vmax.f32 %v8215_v38, 0.0 }
 0x71e   : > { %v9837_v39 = vpop.f32.mrf.mxu0 }
 0x71f   : > { %v8309_v37 = vmul.f32 %v11875_v53, %v11875_v53  ;;  %v8230_v63 = vadd.f32 %v9869_v59, %v9837_v39  ;;  %v8328_v15 = vsel %vm6962_vm1, %v8310_v27, 0.0 }
 0x720   : > { %v8047_v16 = vpop.f32.mrf.mxu0  ;;  %8329 = vadd.xlane.f32.xlu1 %v8328_v15 }
 0x721   : > { %v11880_v12 = vmax.f32 %v8230_v63, 0.0  ;;  %v8225_v5 = vadd.f32 %v8224_v0, %v8047_v16  ;;  %v8325_v14 = vsel %vm6962_vm1, %v8309_v37, 0.0 }
 0x722   : > { %v9840_v35 = vpop.f32.mrf.mxu0  ;;  %8326 = vadd.xlane.f32.xlu0 %v8325_v14 }
 0x723   : > { %v8312_v8 = vmul.f32 %v11880_v12, %v11880_v12  ;;  %v11885_v47 = vmax.f32 %v8225_v5, 0.0  ;;  %v8240_v36 = vadd.f32 %v9872_v60, %v9840_v35 }
 0x724   : > { %v8057_v62 = vpop.f32.mrf.mxu0 }
 0x725   : > { %v8311_v19 = vmul.f32 %v11885_v47, %v11885_v47  ;;  %v11889_v4 = vmax.f32 %v8240_v36, 0.0  ;;  %v8235_v29 = vadd.f32 %v8234_v20, %v8057_v62  ;;  %v8334_v23 = vsel %vm6962_vm1, %v8312_v8, 0.0 }
 0x726   : > { %v9843_v11 = vpop.f32.mrf.mxu0  ;;  %8335 = vadd.xlane.f32.xlu0 %v8334_v23 }
 0x727   : > { %v11892_v2 = vmax.f32 %v8235_v29, 0.0  ;;  %v8250_v58 = vadd.f32 %v9875_v28, %v9843_v11  ;;  %v8314_v46 = vmul.f32 %v11889_v4, %v11889_v4  ;;  %v8331_v51 = vsel %vm6962_vm1, %v8311_v19, 0.0  ;;  %v9887_v28 = vpop.f32.mrf.mxu1 }
 0x728   : > { %v8067_v54 = vpop.f32.mrf.mxu0 }
 0x729   : > { %v8313_v44 = vmul.f32 %v11892_v2, %v11892_v2  ;;  %v11898_v9 = vmax.f32 %v8250_v58, 0.0  ;;  %v8245_v17 = vadd.f32 %v8244_v32, %v8067_v54  ;;  %v8340_v10 = vsel %vm6962_vm1, %v8314_v46, 0.0  ;;  %v8284_v63 = vpop.f32.mrf.mxu1  ;;  %v8460_v54 = vpop.permute.xlu1 %8459 }
 0x72a   : > { %v9846_v24 = vpop.f32.mrf.mxu0  ;;  %8332 = vadd.xlane.f32.xlu0 %v8331_v51  ;;  %v8456_v51 = vpop.permute.xlu0 %8455 }
 0x72b   : > { %v11901_v55 = vmax.f32 %v8245_v17, 0.0  ;;  %v8260_v52 = vadd.f32 %v9878_v56, %v9846_v24  ;;  %v8337_v34 = vsel %vm6962_vm1, %v8313_v44, 0.0  ;;  %v8316_v33 = vmul.f32 %v11898_v9, %v11898_v9 }
 0x72c   : > { %8338 = vadd.xlane.f32.xlu1 %v8337_v34  ;;  %v8077_v43 = vpop.f32.mrf.mxu0 }
 0x72d   : > { %v8315_v48 = vmul.f32 %v11901_v55, %v11901_v55  ;;  %v11908_v40 = vmax.f32 %v8260_v52, 0.0  ;;  %v8255_v22 = vadd.f32 %v8254_v1, %v8077_v43  ;;  %v8346_v25 = vsel %vm6962_vm1, %v8316_v33, 0.0  ;;  %v8454_v44 = vpop.permute.xlu1 %8453 }
 0x72e   : > { %v9849_v31 = vpop.f32.mrf.mxu0  ;;  %8341 = vadd.xlane.f32.xlu0 %v8340_v10 }
 0x72f   : > { %v11911_v3 = vmax.f32 %v8255_v22, 0.0  ;;  %v8270_v6 = vadd.f32 %v9881_v13, %v9849_v31  ;;  %v8343_v57 = vsel %vm6962_vm1, %v8315_v48, 0.0  ;;  %v8318_v30 = vmul.f32 %v11908_v40, %v11908_v40 }
 0x730   : > { %8344 = vadd.xlane.f32.xlu1 %v8343_v57  ;;  %v8087_v7 = vpop.f32.mrf.mxu0 }
 0x731   : > { %v8317_v59 = vmul.f32 %v11911_v3, %v11911_v3  ;;  %v11919_v0 = vmax.f32 %v8270_v6, 0.0  ;;  %v8265_v60 = vadd.f32 %v8264_v26, %v8087_v7  ;;  %v8352_v1 = vsel %vm6962_vm1, %v8318_v30, 0.0  ;;  %v11955_v17 = vpop.permute.xlu1 %8457 }
 0x732   : > { %v9852_v20 = vpop.f32.mrf.mxu0  ;;  %8347 = vadd.xlane.f32.xlu0 %v8346_v25 }
 0x733   : > { %v11921_v32 = vmax.f32 %v8265_v60, 0.0  ;;  %v8280_v41 = vadd.f32 %v9884_v50, %v9852_v20  ;;  %v8349_v49 = vsel %vm6962_vm1, %v8317_v59, 0.0  ;;  %v8320_v42 = vmul.f32 %v11919_v0, %v11919_v0  ;;  %v11959_v50 = vpop.permute.xlu0 %8461 }
 0x734   : > { %8350 = vadd.xlane.f32.xlu1 %v8349_v49  ;;  %v8097_v56 = vpop.f32.mrf.mxu0 }
 0x735   : > { %v8319_v38 = vmul.f32 %v11921_v32, %v11921_v32  ;;  %v11928_v27 = vmax.f32 %v8280_v41, 0.0  ;;  %v8275_v39 = vadd.f32 %v8274_v21, %v8097_v56  ;;  %v8358_v35 = vsel %vm6962_vm1, %v8320_v42, 0.0  ;;  %v11957_v24 = vpop.permute.xlu1 %8463 }
 0x736   : > { %v9855_v37 = vpop.f32.mrf.mxu0  ;;  %8353 = vadd.xlane.f32.xlu0 %v8352_v1 }
 0x737   : > { %v11931_v15 = vmax.f32 %v8275_v39, 0.0  ;;  %v8290_v16 = vadd.f32 %v9887_v28, %v9855_v37  ;;  %v8355_v5 = vsel %vm6962_vm1, %v8319_v38, 0.0  ;;  %v8322_v13 = vmul.f32 %v11928_v27, %v11928_v27  ;;  %v11963_v34 = vpop.permute.xlu0 %8465 }
 0x738   : > { %8356 = vadd.xlane.f32.xlu1 %v8355_v5  ;;  %v8107_v14 = vpop.f32.mrf.mxu0 }
 0x739   : > { %v8321_v8 = vmul.f32 %v11931_v15, %v11931_v15  ;;  %v11939_v36 = vmax.f32 %v8290_v16, 0.0  ;;  %v8285_v62 = vadd.f32 %v8284_v63, %v8107_v14  ;;  %v8364_v26 = vsel %vm6962_vm1, %v8322_v13, 0.0  ;;  %v11961_v52 = vpop.permute.xlu1 %8467 }
 0x73a   : > { %8359 = vadd.xlane.f32.xlu0 %v8358_v35 }
 0x73b   : > { %v11941_v19 = vmax.f32 %v8285_v62, 0.0  ;;  %v8361_v29 = vsel %vm6962_vm1, %v8321_v8, 0.0  ;;  %v8324_v23 = vmul.f32 %v11939_v36, %v11939_v36  ;;  %v11967_v43 = vpop.permute.xlu0 %8469 }
 0x73c   : > { %8362 = vadd.xlane.f32.xlu1 %v8361_v29 }
 0x73d   : > { %v8323_v11 = vmul.f32 %v11941_v19, %v11941_v19  ;;  %v8370_v46 = vsel %vm6962_vm1, %v8324_v23, 0.0  ;;  %v11965_v33 = vpop.permute.xlu1 %8471 }
 0x73e   : > { %8365 = vadd.xlane.f32.xlu0 %v8364_v26 }
 0x73f   : > { %v8367_v58 = vsel %vm6962_vm1, %v8323_v11, 0.0 }
 0x740   : > { %8368 = vadd.xlane.f32.xlu1 %v8367_v58 }
 0x742   : > { %8371 = vadd.xlane.f32.xlu0 %v8370_v46 }
 0x751   : > { %8483 = vrot.lane.b32.xlu1 %v11801_v18, %s10073_s28  ;;  %v11969_v18 = vpop.permute.xlu1 %8475 }
 0x755   : > { %v11973_v48 = vpop.permute.xlu1 %8479 }
 0x758   : > { %8481 = vrot.lane.b32.xlu0 %v11810_v61, %s10073_s28  ;;  %v11971_v61 = vpop.permute.xlu0 %8473 }
 0x75c   : > { %v11975_v22 = vpop.permute.xlu0 %8477 }
 0x7a9   : > { %v8330_v10 = vpop.xlane.xlu1 %8329 }
 0x7aa   : > { %v8374_v31 = vmax.f32 %v8330_v10, 1e-24 }
 0x7ab   : > { %v8327_v21 = vpop.xlane.xlu0 %8326 }
 0x7ac   : > { %10014 = vrsqrt.f32 %v8374_v31  ;;  %v8373_v6 = vmax.f32 %v8327_v21, 1e-24 }
 0x7ae   : > { %10016 = vrsqrt.f32 %v8373_v6 }
 0x7af   : > { %v8336_v57 = vpop.xlane.xlu0 %8335 }
 0x7b0   : > { %v8376_v7 = vmax.f32 %v8336_v57, 1e-24 }
 0x7b2   : > { %10018 = vrsqrt.f32 %v8376_v7 }
 0x7b3   : > { %v8333_v25 = vpop.xlane.xlu0 %8332 }
 0x7b4   : > { %v8375_v30 = vmax.f32 %v8333_v25, 1e-24 }
 0x7b5   : > { %v8339_v59 = vpop.xlane.xlu1 %8338 }
 0x7b6   : > { %v8377_v60 = vmax.f32 %v8339_v59, 1e-24  ;;  %10020 = vrsqrt.f32 %v8375_v30 }
 0x7b7   : > { %v8342_v20 = vpop.xlane.xlu0 %8341 }
 0x7b8   : > { %10022 = vrsqrt.f32 %v8377_v60  ;;  %v8378_v28 = vmax.f32 %v8342_v20, 1e-24 }
 0x7b9   : > { %v10015_v41 = vpop.eup %10014  ;;  %v8345_v49 = vpop.xlane.xlu1 %8344 }
 0x7ba   : > { %v8406_v42 = vmul.f32 %v10015_v41, %v11871_v45  ;;  %v8379_v56 = vmax.f32 %v8345_v49, 1e-24  ;;  %10024 = vrsqrt.f32 %v8378_v28 }
 0x7bb   : > { %v10017_v38 = vpop.eup %10016  ;;  %v8348_v39 = vpop.xlane.xlu0 %8347 }
 0x7bc   : > { %8422 = vst.msk [vmem:[%s11982_s3 + $0x8] sm:$0xff] %vm6962_vm1, %v8406_v42  ;;  %v8405_v1 = vmul.f32 %v10017_v38, %v11875_v53  ;;  %10026 = vrsqrt.f32 %v8379_v56  ;;  %v8380_v37 = vmax.f32 %v8348_v39, 1e-24 }
 0x7bd   : > { %8503 = vst.msk [vmem:[%s11982_s3 + $0x8] sm:$0xff] %vm8501_vm2, %v8456_v51  ;;  %v8351_v63 = vpop.xlane.xlu1 %8350 }
 0x7be   : > { %8421 = vst.msk [vmem:[%s11982_s3] sm:$0xff] %vm6962_vm1, %v8405_v1  ;;  %v8381_v16 = vmax.f32 %v8351_v63, 1e-24  ;;  %10028 = vrsqrt.f32 %v8380_v37 }
 0x7bf   : > { %v10019_v45 = vpop.eup %10018  ;;  %8502 = vst.msk [vmem:[%s11982_s3] sm:$0xff] %vm8501_vm2, %v8454_v44  ;;  %v8354_v5 = vpop.xlane.xlu0 %8353 }
 0x7c0   : > { %v8408_v14 = vmul.f32 %v10019_v45, %v11880_v12  ;;  %10030 = vrsqrt.f32 %v8381_v16  ;;  %v8382_v35 = vmax.f32 %v8354_v5, 1e-24 }
 0x7c1   : > { %v8357_v53 = vpop.xlane.xlu1 %8356 }
 0x7c2   : > { %8424 = vst.msk [vmem:[%s11982_s3 + $0x18] sm:$0xff] %vm6962_vm1, %v8408_v14  ;;  %v8383_v13 = vmax.f32 %v8357_v53, 1e-24  ;;  %10032 = vrsqrt.f32 %v8382_v35 }
 0x7c3   : > { %v10021_v8 = vpop.eup %10020  ;;  %8505 = vst.msk [vmem:[%s11982_s3 + $0x18] sm:$0xff] %vm8501_vm2, %v8460_v54  ;;  %v8360_v62 = vpop.xlane.xlu0 %8359 }
 0x7c4   : > { %v8407_v29 = vmul.f32 %v10021_v8, %v11885_v47  ;;  %10034 = vrsqrt.f32 %v8383_v13  ;;  %v8384_v23 = vmax.f32 %v8360_v62, 1e-24 }
 0x7c5   : > { %v10023_v12 = vpop.eup %10022  ;;  %v8363_v11 = vpop.xlane.xlu1 %8362 }
 0x7c6   : > { %v8409_v26 = vmul.f32 %v10023_v12, %v11892_v2  ;;  %8423 = vst.msk [vmem:[%s11982_s3 + $0x10] sm:$0xff] %vm6962_vm1, %v8407_v29  ;;  %v8385_v58 = vmax.f32 %v8363_v11, 1e-24  ;;  %10036 = vrsqrt.f32 %v8384_v23 }
 0x7c7   : > { %v10025_v46 = vpop.eup %10024  ;;  %8504 = vst.msk [vmem:[%s11982_s3 + $0x10] sm:$0xff] %vm8501_vm2, %v11955_v17  ;;  %v8366_v54 = vpop.xlane.xlu0 %8365 }
 0x7c8   : > { %8425 = vst.msk [vmem:[%s11982_s3 + $0x20] sm:$0xff] %vm6962_vm1, %v8409_v26  ;;  %v8410_v47 = vmul.f32 %v10025_v46, %v11889_v4  ;;  %10038 = vrsqrt.f32 %v8385_v58  ;;  %v8386_v44 = vmax.f32 %v8366_v54, 1e-24 }
 0x7c9   : > { %v10027_v51 = vpop.eup %10026  ;;  %8506 = vst.msk [vmem:[%s11982_s3 + $0x20] sm:$0xff] %vm8501_vm2, %v11959_v50  ;;  %v8369_v2 = vpop.xlane.xlu1 %8368 }
 0x7ca   : > { %v8411_v10 = vmul.f32 %v10027_v51, %v11901_v55  ;;  %8426 = vst.msk [vmem:[%s11982_s3 + $0x28] sm:$0xff] %vm6962_vm1, %v8410_v47  ;;  %v8387_v17 = vmax.f32 %v8369_v2, 1e-24  ;;  %10040 = vrsqrt.f32 %v8386_v44 }
 0x7cb   : > { %v10029_v31 = vpop.eup %10028  ;;  %8507 = vst.msk [vmem:[%s11982_s3 + $0x28] sm:$0xff] %vm8501_vm2, %v11957_v24  ;;  %v8372_v4 = vpop.xlane.xlu0 %8371 }
 0x7cc   : > { %8427 = vst.msk [vmem:[%s11982_s3 + $0x30] sm:$0xff] %vm6962_vm1, %v8411_v10  ;;  %v8412_v50 = vmul.f32 %v10029_v31, %v11898_v9  ;;  %10042 = vrsqrt.f32 %v8387_v17  ;;  %v8388_v55 = vmax.f32 %v8372_v4, 1e-24 }
 0x7cd   : > { %v10031_v21 = vpop.eup %10030  ;;  %8508 = vst.msk [vmem:[%s11982_s3 + $0x30] sm:$0xff] %vm8501_vm2, %v11963_v34 }
 0x7ce   : > { %v8413_v6 = vmul.f32 %v10031_v21, %v11911_v3  ;;  %8428 = vst.msk [vmem:[%s11982_s3 + $0x38] sm:$0xff] %vm6962_vm1, %v8412_v50  ;;  %10044 = vrsqrt.f32 %v8388_v55 }
 0x7cf   : > { %v10033_v24 = vpop.eup %10032  ;;  %8509 = vst.msk [vmem:[%s11982_s3 + $0x38] sm:$0xff] %vm8501_vm2, %v11961_v52 }
 0x7d0   : > { %8429 = vst.msk [vmem:[%s11982_s3 + $0x40] sm:$0xff] %vm6962_vm1, %v8413_v6  ;;  %v8414_v9 = vmul.f32 %v10033_v24, %v11908_v40 }
 0x7d1   : > { %v10035_v57 = vpop.eup %10034  ;;  %8510 = vst.msk [vmem:[%s11982_s3 + $0x40] sm:$0xff] %vm8501_vm2, %v11967_v43 }
 0x7d2   : > { %v8415_v3 = vmul.f32 %v10035_v57, %v11921_v32  ;;  %8430 = vst.msk [vmem:[%s11982_s3 + $0x48] sm:$0xff] %vm6962_vm1, %v8414_v9 }
 0x7d3   : > { %v10037_v34 = vpop.eup %10036  ;;  %8511 = vst.msk [vmem:[%s11982_s3 + $0x48] sm:$0xff] %vm8501_vm2, %v11965_v33 }
 0x7d4   : > { %8431 = vst.msk [vmem:[%s11982_s3 + $0x50] sm:$0xff] %vm6962_vm1, %v8415_v3  ;;  %v8416_v52 = vmul.f32 %v10037_v34, %v11919_v0 }
 0x7d5   : > { %v10039_v40 = vpop.eup %10038  ;;  %8512 = vst.msk [vmem:[%s11982_s3 + $0x50] sm:$0xff] %vm8501_vm2, %v11971_v61 }
 0x7d6   : > { %v8417_v32 = vmul.f32 %v10039_v40, %v11931_v15  ;;  %8432 = vst.msk [vmem:[%s11982_s3 + $0x58] sm:$0xff] %vm6962_vm1, %v8416_v52 }
 0x7d7   : > { %v10041_v43 = vpop.eup %10040  ;;  %8513 = vst.msk [vmem:[%s11982_s3 + $0x58] sm:$0xff] %vm8501_vm2, %v11969_v18  ;;  %v8482_v18 = vpop.permute.xlu0 %8481 }
 0x7d8   : > { %8433 = vst.msk [vmem:[%s11982_s3 + $0x60] sm:$0xff] %vm6962_vm1, %v8417_v32  ;;  %v8418_v0 = vmul.f32 %v10041_v43, %v11928_v27  ;;  %v8484_v27 = vpop.permute.xlu1 %8483 }
 0x7d9   : > { %v10043_v33 = vpop.eup %10042  ;;  %8514 = vst.msk [vmem:[%s11982_s3 + $0x60] sm:$0xff] %vm8501_vm2, %v11975_v22 }
 0x7da   : > { %8434 = vst.msk [vmem:[%s11982_s3 + $0x68] sm:$0xff] %vm6962_vm1, %v8418_v0  ;;  %v8419_v15 = vmul.f32 %v10043_v33, %v11941_v19 }
 0x7db   : > { %v10045_v61 = vpop.eup %10044  ;;  %8515 = vst.msk [vmem:[%s11982_s3 + $0x68] sm:$0xff] %vm8501_vm2, %v11973_v48 }
 0x7dc   : > { %v8420_v7 = vmul.f32 %v10045_v61, %v11939_v36  ;;  %8435 = vst.msk [vmem:[%s11982_s3 + $0x70] sm:$0xff] %vm6962_vm1, %v8419_v15 }
 0x7dd   : > { %8516 = vst.msk [vmem:[%s11982_s3 + $0x70] sm:$0xff] %vm8501_vm2, %v8482_v18 }
 0x7de   : > { %8436 = vst.msk [vmem:[%s11982_s3 + $0x78] sm:$0xff] %vm6962_vm1, %v8420_v7 }
 0x7df   : > { %8517 = vst.msk [vmem:[%s11982_s3 + $0x78] sm:$0xff] %vm8501_vm2, %v8484_v27 }
 0x7e0 PF: > { %s12_s9 = sadd.s32 1, %s10068_s9  }
 0x7e1   : > { %p9_p4 = scmp.ge.s32.totalorder %s12_s9, 10  }
 0x7e3   :  { %11 = sbr.rel (!%p9_p4) target bundleno = 1 (0x1), region = 58 }

</bundles_post_ra>
